<compile_context>
chip_gen: v7x
topology: tpu7x:2x2x1
jax: 0.10.0
libtpu: 0.0.40
codegen_flags: <defaults>
</compile_context>

<pallas_src>
import math

import numpy as np
import jax
import jax.numpy as jnp
from jax import lax
from jax.experimental import pallas as pl
from jax.experimental.pallas import tpu as pltpu


# ---------------- small, lane-dense model dims ----------------
B = 2            # batch
T = 16           # max sequence length
V = 128          # phoneme vocab (padded to a lane multiple)
D = 128          # d_model / d_word_vec
N_HEAD = 2
D_HEAD = D // N_HEAD
F = 256          # conv_filter_size of the position-wise FFN
K_CONV = 9       # FFT-block conv kernel size (FastSpeech2 uses [9, 1])
PAD = (K_CONV - 1) // 2
L = 2            # number of FFT blocks
LN_EPS = 1e-5
NEG_INF = -1e9

X_OFF = 8                      # 8-aligned sublane offset of x inside the halo scratch
SCRATCH_ROWS = T + 2 * X_OFF   # 32 rows: zeros | x | zeros


def _layer_norm(x, gamma, beta):
    mu = jnp.mean(x, axis=-1, keepdims=True)
    xc = x - mu
    var = jnp.mean(xc * xc, axis=-1, keepdims=True)
    return xc * lax.rsqrt(var + LN_EPS) * gamma + beta


def encoder_kernel(ids_ref, keymask_ref, nonpad_ref, emb_ref, pos_ref,
                   wq_ref, bq_ref, wk_ref, bk_ref, wv_ref, bv_ref,
                   wo_ref, bo_ref, ln1g_ref, ln1b_ref,
                   w1_ref, b1_ref, w2_ref, b2_ref, ln2g_ref, ln2b_ref,
                   out_ref, pad_ref):
    # ---- embedding lookup as a one-hot MXU matmul + position encoding ----
    ids = ids_ref[0]                                            # (T, 1) int32
    iota_v = lax.broadcasted_iota(jnp.int32, (T, V), 1)
    onehot = (ids == iota_v).astype(jnp.float32)                # (T, V)
    x = jnp.dot(onehot, emb_ref[...], preferred_element_type=jnp.float32)
    x = x + pos_ref[...]                                        # (T, D)

    keymask = keymask_ref[0]                                    # (1, T): 1.0 at padded keys
    neg = keymask * NEG_INF
    nonpad = nonpad_ref[0]                                      # (T, 1): 1.0 at valid frames
    inv_temp = 1.0 / math.sqrt(D_HEAD)

    # one zero halo buffer reused by every layer's k=9 conv (halo rows stay 0)
    pad_ref[...] = jnp.zeros_like(pad_ref)

    for l in range(L):                       # static unroll over FFT blocks
        # ---------- multi-head self-attention ----------
        residual = x
        attn = jnp.zeros((T, D), jnp.float32)
        for h in range(N_HEAD):
            qh = jnp.dot(x, wq_ref[l, h], preferred_element_type=jnp.float32) + bq_ref[l, h]
            kh = jnp.dot(x, wk_ref[l, h], preferred_element_type=jnp.float32) + bk_ref[l, h]
            vh = jnp.dot(x, wv_ref[l, h], preferred_element_type=jnp.float32) + bv_ref[l, h]
            scores = lax.dot_general(qh, kh, (((1,), (1,)), ((), ())),
                                     preferred_element_type=jnp.float32) * inv_temp
            scores = scores + neg                               # mask padded keys
            m = jnp.max(scores, axis=-1, keepdims=True)
            e = jnp.exp(scores - m)
            p = e / jnp.sum(e, axis=-1, keepdims=True)
            oh = jnp.dot(p, vh, preferred_element_type=jnp.float32)        # (T, D_HEAD)
            # fold the output projection per head: no in-kernel concat
            attn = attn + jnp.dot(oh, wo_ref[l, h], preferred_element_type=jnp.float32)
        attn = attn + bo_ref[l]
        x = _layer_norm(attn + residual, ln1g_ref[l], ln1b_ref[l])
        x = x * nonpad                                          # masked_fill padded frames -> 0

        # ---------- position-wise FFN: Conv1d(k=9) -> ReLU -> Conv1d(k=1) ----------
        residual = x
        pad_ref[pl.ds(X_OFF, T), :] = x                         # aligned store; halo stays zero
        acc = jnp.dot(pad_ref[pl.ds(X_OFF - PAD, T), :], w1_ref[l, 0],
                      preferred_element_type=jnp.float32)
        for tap in range(1, K_CONV):
            acc = acc + jnp.dot(pad_ref[pl.ds(X_OFF - PAD + tap, T), :], w1_ref[l, tap],
                                preferred_element_type=jnp.float32)
        hidden = jnp.maximum(acc + b1_ref[l], 0.0)              # ReLU in f32
        y = jnp.dot(hidden, w2_ref[l], preferred_element_type=jnp.float32) + b2_ref[l]
        x = _layer_norm(y + residual, ln2g_ref[l], ln2b_ref[l])
        x = x * nonpad

    out_ref[0] = x


def encoder_forward(src_seq, src_mask, params):
    """src_seq: (B, T) int32 token ids; src_mask: (B, T) bool, True = padded."""
    (emb, pos_enc, wq, bq, wk, bk, wv, bv, wo, bo,
     ln1g, ln1b, w1, b1, w2, b2, ln2g, ln2b) = params

    ids = src_seq.astype(jnp.int32).reshape(B, T, 1)
    keymask = src_mask.astype(jnp.float32).reshape(B, 1, T)
    nonpad = (1.0 - src_mask.astype(jnp.float32)).reshape(B, T, 1)

    def rep(shape):
        n = len(shape)
        return pl.BlockSpec(shape, lambda b, _n=n: (0,) * _n)

    out = pl.pallas_call(
        encoder_kernel,
        out_shape=jax.ShapeDtypeStruct((B, T, D), jnp.float32),
        grid=(B,),
        in_specs=[
            pl.BlockSpec((1, T, 1), lambda b: (b, 0, 0)),       # ids
            pl.BlockSpec((1, 1, T), lambda b: (b, 0, 0)),       # key mask (padded = 1)
            pl.BlockSpec((1, T, 1), lambda b: (b, 0, 0)),       # non-pad (valid = 1)
            rep((V, D)),                                        # embedding table
            rep((T, D)),                                        # sinusoid position enc
            rep((L, N_HEAD, D, D_HEAD)), rep((L, N_HEAD, 1, D_HEAD)),   # Wq, bq
            rep((L, N_HEAD, D, D_HEAD)), rep((L, N_HEAD, 1, D_HEAD)),   # Wk, bk
            rep((L, N_HEAD, D, D_HEAD)), rep((L, N_HEAD, 1, D_HEAD)),   # Wv, bv
            rep((L, N_HEAD, D_HEAD, D)), rep((L, 1, D)),                # Wo, bo
            rep((L, 1, D)), rep((L, 1, D)),                             # LN1 gamma/beta
            rep((L, K_CONV, D, F)), rep((L, 1, F)),                     # conv1 W/b
            rep((L, F, D)), rep((L, 1, D)),                             # conv2 W/b
            rep((L, 1, D)), rep((L, 1, D)),                             # LN2 gamma/beta
        ],
        out_specs=pl.BlockSpec((1, T, D), lambda b: (b, 0, 0)),
        scratch_shapes=[pltpu.VMEM((SCRATCH_ROWS, D), jnp.float32)],
        compiler_params=pltpu.CompilerParams(
            dimension_semantics=("parallel",),
            vmem_limit_bytes=32 * 1024 * 1024,
        ),
    )(ids, keymask, nonpad, emb, pos_enc, wq, bq, wk, bk, wv, bv,
      wo, bo, ln1g, ln1b, w1, b1, w2, b2, ln2g, ln2b)
    return out


def reference_forward(src_seq, src_mask, params):
    (emb, pos_enc, wq, bq, wk, bk, wv, bv, wo, bo,
     ln1g, ln1b, w1, b1, w2, b2, ln2g, ln2b) = params
    hi = lax.Precision.HIGHEST

    x = emb[src_seq] + pos_enc[None]                            # (B, T, D)
    keymask = src_mask.astype(jnp.float32)[:, None, :]          # (B, 1, T)
    nonpad = (1.0 - src_mask.astype(jnp.float32))[:, :, None]   # (B, T, 1)

    for l in range(L):
        residual = x
        attn = jnp.zeros_like(x)
        for h in range(N_HEAD):
            qh = jnp.einsum("btd,de->bte", x, wq[l, h], precision=hi) + bq[l, h]
            kh = jnp.einsum("btd,de->bte", x, wk[l, h], precision=hi) + bk[l, h]
            vh = jnp.einsum("btd,de->bte", x, wv[l, h], precision=hi) + bv[l, h]
            sc = jnp.einsum("bqe,bke->bqk", qh, kh, precision=hi) / math.sqrt(D_HEAD)
            sc = sc + keymask * NEG_INF
            p = jax.nn.softmax(sc, axis=-1)
            oh = jnp.einsum("bqk,bke->bqe", p, vh, precision=hi)
            attn = attn + jnp.einsum("bte,ed->btd", oh, wo[l, h], precision=hi)
        attn = attn + bo[l]
        x = _layer_norm(attn + residual, ln1g[l], ln1b[l]) * nonpad

        residual = x
        xp = jnp.pad(x, ((0, 0), (PAD, PAD), (0, 0)))
        acc = jnp.zeros((B, T, F), jnp.float32)
        for tap in range(K_CONV):
            acc = acc + jnp.einsum("btd,df->btf", xp[:, tap:tap + T], w1[l, tap], precision=hi)
        hidden = jnp.maximum(acc + b1[l], 0.0)
        y = jnp.einsum("btf,fd->btd", hidden, w2[l], precision=hi) + b2[l]
        x = _layer_norm(y + residual, ln2g[l], ln2b[l]) * nonpad
    return x


def sinusoid_table(n_position, d_hid):
    pos = np.arange(n_position)[:, None].astype(np.float64)
    i = np.arange(d_hid)[None, :]
    angle = pos / np.power(10000.0, 2.0 * (i // 2) / d_hid)
    tbl = np.zeros((n_position, d_hid), dtype=np.float32)
    tbl[:, 0::2] = np.sin(angle[:, 0::2])
    tbl[:, 1::2] = np.cos(angle[:, 1::2])
    return jnp.asarray(tbl)


if __name__ == "__main__":
    key = jax.random.PRNGKey(0)
    ks = jax.random.split(key, 20)

    # token ids with padding (padding_idx = 0); per-element sequence lengths
    lengths = jnp.array([T, T - 4], dtype=jnp.int32)
    positions = jnp.arange(T)[None, :]
    src_mask = positions >= lengths[:, None]                    # True = padded
    src_seq = jax.random.randint(ks[0], (B, T), 1, V)
    src_seq = jnp.where(src_mask, 0, src_seq)

    def nrm(k, shape, scale):
        return jax.random.normal(k, shape, dtype=jnp.float32) * scale

    emb = nrm(ks[1], (V, D), 0.3).at[0].set(0.0)                # padding_idx = 0
    pos_enc = sinusoid_table(T, D)

    wq = nrm(ks[2], (L, N_HEAD, D, D_HEAD), 0.06)
    bq = nrm(ks[3], (L, N_HEAD, 1, D_HEAD), 0.02)
    wk = nrm(ks[4], (L, N_HEAD, D, D_HEAD), 0.06)
    bk = nrm(ks[5], (L, N_HEAD, 1, D_HEAD), 0.02)
    wv = nrm(ks[6], (L, N_HEAD, D, D_HEAD), 0.06)
    bv = nrm(ks[7], (L, N_HEAD, 1, D_HEAD), 0.02)
    wo = nrm(ks[8], (L, N_HEAD, D_HEAD, D), 0.06)
    bo = nrm(ks[9], (L, 1, D), 0.02)
    ln1g = 1.0 + nrm(ks[10], (L, 1, D), 0.05)
    ln1b = nrm(ks[11], (L, 1, D), 0.02)
    w1 = nrm(ks[12], (L, K_CONV, D, F), 0.03)
    b1 = nrm(ks[13], (L, 1, F), 0.02)
    w2 = nrm(ks[14], (L, F, D), 0.04)
    b2 = nrm(ks[15], (L, 1, D), 0.02)
    ln2g = 1.0 + nrm(ks[16], (L, 1, D), 0.05)
    ln2b = nrm(ks[17], (L, 1, D), 0.02)

    params = (emb, pos_enc, wq, bq, wk, bk, wv, bv, wo, bo,
              ln1g, ln1b, w1, b1, w2, b2, ln2g, ln2b)

    out = encoder_forward(src_seq, src_mask, params)
    out = jax.block_until_ready(out)

    ref = reference_forward(src_seq, src_mask, params)
    assert out.shape == (B, T, D)
    assert bool(jnp.all(jnp.isfinite(out)))
    assert jnp.allclose(out, ref, atol=3e-4, rtol=3e-4), float(jnp.max(jnp.abs(out - ref)))

    print("KERNEL_OK")
</pallas_src>

<mosaic_0001>
module attributes {stable_mosaic.version = 11 : i64} {
  func.func @encoder_kernel(%arg0: i32, %arg1: memref<1x16x1xi32, #tpu.memory_space<vmem>>, %arg2: memref<1x1x16xf32, #tpu.memory_space<vmem>>, %arg3: memref<1x16x1xf32, #tpu.memory_space<vmem>>, %arg4: memref<128x128xf32, #tpu.memory_space<vmem>>, %arg5: memref<16x128xf32, #tpu.memory_space<vmem>>, %arg6: memref<2x2x128x64xf32, #tpu.memory_space<vmem>>, %arg7: memref<2x2x1x64xf32, #tpu.memory_space<vmem>>, %arg8: memref<2x2x128x64xf32, #tpu.memory_space<vmem>>, %arg9: memref<2x2x1x64xf32, #tpu.memory_space<vmem>>, %arg10: memref<2x2x128x64xf32, #tpu.memory_space<vmem>>, %arg11: memref<2x2x1x64xf32, #tpu.memory_space<vmem>>, %arg12: memref<2x2x64x128xf32, #tpu.memory_space<vmem>>, %arg13: memref<2x1x128xf32, #tpu.memory_space<vmem>>, %arg14: memref<2x1x128xf32, #tpu.memory_space<vmem>>, %arg15: memref<2x1x128xf32, #tpu.memory_space<vmem>>, %arg16: memref<2x9x128x256xf32, #tpu.memory_space<vmem>>, %arg17: memref<2x1x256xf32, #tpu.memory_space<vmem>>, %arg18: memref<2x256x128xf32, #tpu.memory_space<vmem>>, %arg19: memref<2x1x128xf32, #tpu.memory_space<vmem>>, %arg20: memref<2x1x128xf32, #tpu.memory_space<vmem>>, %arg21: memref<2x1x128xf32, #tpu.memory_space<vmem>>, %arg22: memref<1x16x128xf32, #tpu.memory_space<vmem>>, %arg23: memref<32x128xf32, #tpu.memory_space<vmem>>) attributes {dimension_semantics = [#tpu.dimension_semantics<parallel>], iteration_bounds = array<i64: 2>, scalar_prefetch = 0 : i64, scratch_operands = 1 : i64, tpu.core_type = #tpu.core_type<tc>, window_params = [{transform_indices = @transform_0, window_bounds = array<i64: 1, 16, 1>}, {transform_indices = @transform_1, window_bounds = array<i64: 1, 1, 16>}, {transform_indices = @transform_2, window_bounds = array<i64: 1, 16, 1>}, {pipeline_mode = #tpu.pipeline_mode<synchronous>, transform_indices = @transform_3, window_bounds = array<i64: 128, 128>}, {pipeline_mode = #tpu.pipeline_mode<synchronous>, transform_indices = @transform_4, window_bounds = array<i64: 16, 128>}, {pipeline_mode = #tpu.pipeline_mode<synchronous>, transform_indices = @transform_5, window_bounds = array<i64: 2, 2, 128, 64>}, {pipeline_mode = #tpu.pipeline_mode<synchronous>, transform_indices = @transform_6, window_bounds = array<i64: 2, 2, 1, 64>}, {pipeline_mode = #tpu.pipeline_mode<synchronous>, transform_indices = @transform_7, window_bounds = array<i64: 2, 2, 128, 64>}, {pipeline_mode = #tpu.pipeline_mode<synchronous>, transform_indices = @transform_8, window_bounds = array<i64: 2, 2, 1, 64>}, {pipeline_mode = #tpu.pipeline_mode<synchronous>, transform_indices = @transform_9, window_bounds = array<i64: 2, 2, 128, 64>}, {pipeline_mode = #tpu.pipeline_mode<synchronous>, transform_indices = @transform_10, window_bounds = array<i64: 2, 2, 1, 64>}, {pipeline_mode = #tpu.pipeline_mode<synchronous>, transform_indices = @transform_11, window_bounds = array<i64: 2, 2, 64, 128>}, {pipeline_mode = #tpu.pipeline_mode<synchronous>, transform_indices = @transform_12, window_bounds = array<i64: 2, 1, 128>}, {pipeline_mode = #tpu.pipeline_mode<synchronous>, transform_indices = @transform_13, window_bounds = array<i64: 2, 1, 128>}, {pipeline_mode = #tpu.pipeline_mode<synchronous>, transform_indices = @transform_14, window_bounds = array<i64: 2, 1, 128>}, {pipeline_mode = #tpu.pipeline_mode<synchronous>, transform_indices = @transform_15, window_bounds = array<i64: 2, 9, 128, 256>}, {pipeline_mode = #tpu.pipeline_mode<synchronous>, transform_indices = @transform_16, window_bounds = array<i64: 2, 1, 256>}, {pipeline_mode = #tpu.pipeline_mode<synchronous>, transform_indices = @transform_17, window_bounds = array<i64: 2, 256, 128>}, {pipeline_mode = #tpu.pipeline_mode<synchronous>, transform_indices = @transform_18, window_bounds = array<i64: 2, 1, 128>}, {pipeline_mode = #tpu.pipeline_mode<synchronous>, transform_indices = @transform_19, window_bounds = array<i64: 2, 1, 128>}, {pipeline_mode = #tpu.pipeline_mode<synchronous>, transform_indices = @transform_20, window_bounds = array<i64: 2, 1, 128>}, {transform_indices = @transform_21, window_bounds = array<i64: 1, 16, 128>}]} {
    %c0 = arith.constant 0 : index
    %c0_0 = arith.constant 0 : index
    %c0_1 = arith.constant 0 : index
    %0 = vector.load %arg1[%c0, %c0_0, %c0_1] : memref<1x16x1xi32, #tpu.memory_space<vmem>>, vector<1x16x1xi32>
    %1 = vector.shape_cast %0 : vector<1x16x1xi32> to vector<16x1xi32>
    %2 = tpu.iota {dimensions = array<i32: 1>} : vector<16x128xi32>
    %3 = vector.broadcast %1 : vector<16x1xi32> to vector<16x128xi32>
    %4 = arith.cmpi eq, %3, %2 : vector<16x128xi32>
    %5 = arith.extui %4 : vector<16x128xi1> to vector<16x128xi32>
    %6 = arith.sitofp %5 : vector<16x128xi32> to vector<16x128xf32>
    %c0_2 = arith.constant 0 : index
    %c0_3 = arith.constant 0 : index
    %7 = vector.load %arg4[%c0_2, %c0_3] : memref<128x128xf32, #tpu.memory_space<vmem>>, vector<128x128xf32>
    %cst = arith.constant dense<0.000000e+00> : vector<16x128xf32>
    %8 = tpu.matmul %6, %7, %cst {dimension_numbers = #tpu.dot_dimension_numbers<[1], [0], [0], [1], [0, 0, 1, 1], [], []>} : vector<16x128xf32>, vector<128x128xf32>, vector<16x128xf32> -> vector<16x128xf32>
    %c0_4 = arith.constant 0 : index
    %c0_5 = arith.constant 0 : index
    %9 = vector.load %arg5[%c0_4, %c0_5] : memref<16x128xf32, #tpu.memory_space<vmem>>, vector<16x128xf32>
    %10 = arith.addf %8, %9 : vector<16x128xf32>
    %c0_6 = arith.constant 0 : index
    %c0_7 = arith.constant 0 : index
    %c0_8 = arith.constant 0 : index
    %11 = vector.load %arg2[%c0_6, %c0_7, %c0_8] : memref<1x1x16xf32, #tpu.memory_space<vmem>>, vector<1x1x16xf32>
    %12 = vector.shape_cast %11 : vector<1x1x16xf32> to vector<1x16xf32>
    %cst_9 = arith.constant -1.000000e+09 : f32
    %13 = vector.broadcast %cst_9 : f32 to vector<1x16xf32>
    %14 = arith.mulf %12, %13 : vector<1x16xf32>
    %c0_10 = arith.constant 0 : index
    %c0_11 = arith.constant 0 : index
    %c0_12 = arith.constant 0 : index
    %15 = vector.load %arg3[%c0_10, %c0_11, %c0_12] : memref<1x16x1xf32, #tpu.memory_space<vmem>>, vector<1x16x1xf32>
    %16 = vector.shape_cast %15 : vector<1x16x1xf32> to vector<16x1xf32>
    %cst_13 = arith.constant 0.000000e+00 : f32
    %17 = vector.broadcast %cst_13 : f32 to vector<32x128xf32>
    %c0_14 = arith.constant 0 : index
    %c0_15 = arith.constant 0 : index
    %18 = vector.load %arg23[%c0_14, %c0_15] : memref<32x128xf32, #tpu.memory_space<vmem>>, vector<32x128xf32>
    tpu.vector_store %arg23[%c0_14, %c0_15], %17 {strides = array<i32>} : memref<32x128xf32, #tpu.memory_space<vmem>>, vector<32x128xf32>,
    %cst_16 = arith.constant 0.000000e+00 : f32
    %19 = vector.broadcast %cst_16 : f32 to vector<16x128xf32>
    %c0_17 = arith.constant 0 : index
    %c0_18 = arith.constant 0 : index
    %c0_19 = arith.constant 0 : index
    %c0_20 = arith.constant 0 : index
    %20 = vector.load %arg6[%c0_17, %c0_18, %c0_19, %c0_20] : memref<2x2x128x64xf32, #tpu.memory_space<vmem>>, vector<1x1x128x64xf32>
    %21 = vector.shape_cast %20 : vector<1x1x128x64xf32> to vector<128x64xf32>
    %cst_21 = arith.constant dense<0.000000e+00> : vector<16x64xf32>
    %22 = tpu.matmul %10, %21, %cst_21 {dimension_numbers = #tpu.dot_dimension_numbers<[1], [0], [0], [1], [0, 0, 1, 1], [], []>} : vector<16x128xf32>, vector<128x64xf32>, vector<16x64xf32> -> vector<16x64xf32>
    %c0_22 = arith.constant 0 : index
    %c0_23 = arith.constant 0 : index
    %c0_24 = arith.constant 0 : index
    %c0_25 = arith.constant 0 : index
    %23 = vector.load %arg7[%c0_22, %c0_23, %c0_24, %c0_25] : memref<2x2x1x64xf32, #tpu.memory_space<vmem>>, vector<1x1x1x64xf32>
    %24 = vector.shape_cast %23 : vector<1x1x1x64xf32> to vector<1x64xf32>
    %25 = vector.broadcast %24 : vector<1x64xf32> to vector<16x64xf32>
    %26 = arith.addf %22, %25 : vector<16x64xf32>
    %c0_26 = arith.constant 0 : index
    %c0_27 = arith.constant 0 : index
    %c0_28 = arith.constant 0 : index
    %c0_29 = arith.constant 0 : index
    %27 = vector.load %arg8[%c0_26, %c0_27, %c0_28, %c0_29] : memref<2x2x128x64xf32, #tpu.memory_space<vmem>>, vector<1x1x128x64xf32>
    %28 = vector.shape_cast %27 : vector<1x1x128x64xf32> to vector<128x64xf32>
    %cst_30 = arith.constant dense<0.000000e+00> : vector<16x64xf32>
    %29 = tpu.matmul %10, %28, %cst_30 {dimension_numbers = #tpu.dot_dimension_numbers<[1], [0], [0], [1], [0, 0, 1, 1], [], []>} : vector<16x128xf32>, vector<128x64xf32>, vector<16x64xf32> -> vector<16x64xf32>
    %c0_31 = arith.constant 0 : index
    %c0_32 = arith.constant 0 : index
    %c0_33 = arith.constant 0 : index
    %c0_34 = arith.constant 0 : index
    %30 = vector.load %arg9[%c0_31, %c0_32, %c0_33, %c0_34] : memref<2x2x1x64xf32, #tpu.memory_space<vmem>>, vector<1x1x1x64xf32>
    %31 = vector.shape_cast %30 : vector<1x1x1x64xf32> to vector<1x64xf32>
    %32 = vector.broadcast %31 : vector<1x64xf32> to vector<16x64xf32>
    %33 = arith.addf %29, %32 : vector<16x64xf32>
    %c0_35 = arith.constant 0 : index
    %c0_36 = arith.constant 0 : index
    %c0_37 = arith.constant 0 : index
    %c0_38 = arith.constant 0 : index
    %34 = vector.load %arg10[%c0_35, %c0_36, %c0_37, %c0_38] : memref<2x2x128x64xf32, #tpu.memory_space<vmem>>, vector<1x1x128x64xf32>
    %35 = vector.shape_cast %34 : vector<1x1x128x64xf32> to vector<128x64xf32>
    %cst_39 = arith.constant dense<0.000000e+00> : vector<16x64xf32>
    %36 = tpu.matmul %10, %35, %cst_39 {dimension_numbers = #tpu.dot_dimension_numbers<[1], [0], [0], [1], [0, 0, 1, 1], [], []>} : vector<16x128xf32>, vector<128x64xf32>, vector<16x64xf32> -> vector<16x64xf32>
    %c0_40 = arith.constant 0 : index
    %c0_41 = arith.constant 0 : index
    %c0_42 = arith.constant 0 : index
    %c0_43 = arith.constant 0 : index
    %37 = vector.load %arg11[%c0_40, %c0_41, %c0_42, %c0_43] : memref<2x2x1x64xf32, #tpu.memory_space<vmem>>, vector<1x1x1x64xf32>
    %38 = vector.shape_cast %37 : vector<1x1x1x64xf32> to vector<1x64xf32>
    %39 = vector.broadcast %38 : vector<1x64xf32> to vector<16x64xf32>
    %40 = arith.addf %36, %39 : vector<16x64xf32>
    %cst_44 = arith.constant dense<0.000000e+00> : vector<16x16xf32>
    %41 = tpu.matmul %26, %33, %cst_44 {dimension_numbers = #tpu.dot_dimension_numbers<[1], [1], [0], [0], [0, 0, 1, 0], [], []>} : vector<16x64xf32>, vector<16x64xf32>, vector<16x16xf32> -> vector<16x16xf32>
    %cst_45 = arith.constant 1.250000e-01 : f32
    %42 = vector.broadcast %cst_45 : f32 to vector<16x16xf32>
    %43 = arith.mulf %41, %42 : vector<16x16xf32>
    %44 = vector.broadcast %14 : vector<1x16xf32> to vector<16x16xf32>
    %45 = arith.addf %43, %44 : vector<16x16xf32>
    %cst_46 = arith.constant dense<0xFF800000> : vector<16xf32>
    %46 = vector.multi_reduction <maximumf>, %45, %cst_46 [1] : vector<16x16xf32> to vector<16xf32>
    %47 = vector.shape_cast %46 : vector<16xf32> to vector<16x1xf32>
    %48 = vector.broadcast %47 : vector<16x1xf32> to vector<16x16xf32>
    %49 = arith.subf %45, %48 : vector<16x16xf32>
    %50 = math.exp %49 : vector<16x16xf32>
    %cst_47 = arith.constant dense<0.000000e+00> : vector<16xf32>
    %51 = vector.multi_reduction <add>, %50, %cst_47 [1] : vector<16x16xf32> to vector<16xf32>
    %52 = vector.shape_cast %51 : vector<16xf32> to vector<16x1xf32>
    %53 = vector.broadcast %52 : vector<16x1xf32> to vector<16x16xf32>
    %54 = arith.divf %50, %53 : vector<16x16xf32>
    %cst_48 = arith.constant dense<0.000000e+00> : vector<16x64xf32>
    %55 = tpu.matmul %54, %40, %cst_48 {dimension_numbers = #tpu.dot_dimension_numbers<[1], [0], [0], [1], [0, 0, 1, 1], [], []>} : vector<16x16xf32>, vector<16x64xf32>, vector<16x64xf32> -> vector<16x64xf32>
    %c0_49 = arith.constant 0 : index
    %c0_50 = arith.constant 0 : index
    %c0_51 = arith.constant 0 : index
    %c0_52 = arith.constant 0 : index
    %56 = vector.load %arg12[%c0_49, %c0_50, %c0_51, %c0_52] : memref<2x2x64x128xf32, #tpu.memory_space<vmem>>, vector<1x1x64x128xf32>
    %57 = vector.shape_cast %56 : vector<1x1x64x128xf32> to vector<64x128xf32>
    %cst_53 = arith.constant dense<0.000000e+00> : vector<16x128xf32>
    %58 = tpu.matmul %55, %57, %cst_53 {dimension_numbers = #tpu.dot_dimension_numbers<[1], [0], [0], [1], [0, 0, 1, 1], [], []>} : vector<16x64xf32>, vector<64x128xf32>, vector<16x128xf32> -> vector<16x128xf32>
    %59 = arith.addf %19, %58 : vector<16x128xf32>
    %c0_54 = arith.constant 0 : index
    %c1 = arith.constant 1 : index
    %c0_55 = arith.constant 0 : index
    %c0_56 = arith.constant 0 : index
    %60 = vector.load %arg6[%c0_54, %c1, %c0_55, %c0_56] : memref<2x2x128x64xf32, #tpu.memory_space<vmem>>, vector<1x1x128x64xf32>
    %61 = vector.shape_cast %60 : vector<1x1x128x64xf32> to vector<128x64xf32>
    %cst_57 = arith.constant dense<0.000000e+00> : vector<16x64xf32>
    %62 = tpu.matmul %10, %61, %cst_57 {dimension_numbers = #tpu.dot_dimension_numbers<[1], [0], [0], [1], [0, 0, 1, 1], [], []>} : vector<16x128xf32>, vector<128x64xf32>, vector<16x64xf32> -> vector<16x64xf32>
    %c0_58 = arith.constant 0 : index
    %c1_59 = arith.constant 1 : index
    %c0_60 = arith.constant 0 : index
    %c0_61 = arith.constant 0 : index
    %63 = vector.load %arg7[%c0_58, %c1_59, %c0_60, %c0_61] : memref<2x2x1x64xf32, #tpu.memory_space<vmem>>, vector<1x1x1x64xf32>
    %64 = vector.shape_cast %63 : vector<1x1x1x64xf32> to vector<1x64xf32>
    %65 = vector.broadcast %64 : vector<1x64xf32> to vector<16x64xf32>
    %66 = arith.addf %62, %65 : vector<16x64xf32>
    %c0_62 = arith.constant 0 : index
    %c1_63 = arith.constant 1 : index
    %c0_64 = arith.constant 0 : index
    %c0_65 = arith.constant 0 : index
    %67 = vector.load %arg8[%c0_62, %c1_63, %c0_64, %c0_65] : memref<2x2x128x64xf32, #tpu.memory_space<vmem>>, vector<1x1x128x64xf32>
    %68 = vector.shape_cast %67 : vector<1x1x128x64xf32> to vector<128x64xf32>
    %cst_66 = arith.constant dense<0.000000e+00> : vector<16x64xf32>
    %69 = tpu.matmul %10, %68, %cst_66 {dimension_numbers = #tpu.dot_dimension_numbers<[1], [0], [0], [1], [0, 0, 1, 1], [], []>} : vector<16x128xf32>, vector<128x64xf32>, vector<16x64xf32> -> vector<16x64xf32>
    %c0_67 = arith.constant 0 : index
    %c1_68 = arith.constant 1 : index
    %c0_69 = arith.constant 0 : index
    %c0_70 = arith.constant 0 : index
    %70 = vector.load %arg9[%c0_67, %c1_68, %c0_69, %c0_70] : memref<2x2x1x64xf32, #tpu.memory_space<vmem>>, vector<1x1x1x64xf32>
    %71 = vector.shape_cast %70 : vector<1x1x1x64xf32> to vector<1x64xf32>
    %72 = vector.broadcast %71 : vector<1x64xf32> to vector<16x64xf32>
    %73 = arith.addf %69, %72 : vector<16x64xf32>
    %c0_71 = arith.constant 0 : index
    %c1_72 = arith.constant 1 : index
    %c0_73 = arith.constant 0 : index
    %c0_74 = arith.constant 0 : index
    %74 = vector.load %arg10[%c0_71, %c1_72, %c0_73, %c0_74] : memref<2x2x128x64xf32, #tpu.memory_space<vmem>>, vector<1x1x128x64xf32>
    %75 = vector.shape_cast %74 : vector<1x1x128x64xf32> to vector<128x64xf32>
    %cst_75 = arith.constant dense<0.000000e+00> : vector<16x64xf32>
    %76 = tpu.matmul %10, %75, %cst_75 {dimension_numbers = #tpu.dot_dimension_numbers<[1], [0], [0], [1], [0, 0, 1, 1], [], []>} : vector<16x128xf32>, vector<128x64xf32>, vector<16x64xf32> -> vector<16x64xf32>
    %c0_76 = arith.constant 0 : index
    %c1_77 = arith.constant 1 : index
    %c0_78 = arith.constant 0 : index
    %c0_79 = arith.constant 0 : index
    %77 = vector.load %arg11[%c0_76, %c1_77, %c0_78, %c0_79] : memref<2x2x1x64xf32, #tpu.memory_space<vmem>>, vector<1x1x1x64xf32>
    %78 = vector.shape_cast %77 : vector<1x1x1x64xf32> to vector<1x64xf32>
    %79 = vector.broadcast %78 : vector<1x64xf32> to vector<16x64xf32>
    %80 = arith.addf %76, %79 : vector<16x64xf32>
    %cst_80 = arith.constant dense<0.000000e+00> : vector<16x16xf32>
    %81 = tpu.matmul %66, %73, %cst_80 {dimension_numbers = #tpu.dot_dimension_numbers<[1], [1], [0], [0], [0, 0, 1, 0], [], []>} : vector<16x64xf32>, vector<16x64xf32>, vector<16x16xf32> -> vector<16x16xf32>
    %cst_81 = arith.constant 1.250000e-01 : f32
    %82 = vector.broadcast %cst_81 : f32 to vector<16x16xf32>
    %83 = arith.mulf %81, %82 : vector<16x16xf32>
    %84 = vector.broadcast %14 : vector<1x16xf32> to vector<16x16xf32>
    %85 = arith.addf %83, %84 : vector<16x16xf32>
    %cst_82 = arith.constant dense<0xFF800000> : vector<16xf32>
    %86 = vector.multi_reduction <maximumf>, %85, %cst_82 [1] : vector<16x16xf32> to vector<16xf32>
    %87 = vector.shape_cast %86 : vector<16xf32> to vector<16x1xf32>
    %88 = vector.broadcast %87 : vector<16x1xf32> to vector<16x16xf32>
    %89 = arith.subf %85, %88 : vector<16x16xf32>
    %90 = math.exp %89 : vector<16x16xf32>
    %cst_83 = arith.constant dense<0.000000e+00> : vector<16xf32>
    %91 = vector.multi_reduction <add>, %90, %cst_83 [1] : vector<16x16xf32> to vector<16xf32>
    %92 = vector.shape_cast %91 : vector<16xf32> to vector<16x1xf32>
    %93 = vector.broadcast %92 : vector<16x1xf32> to vector<16x16xf32>
    %94 = arith.divf %90, %93 : vector<16x16xf32>
    %cst_84 = arith.constant dense<0.000000e+00> : vector<16x64xf32>
    %95 = tpu.matmul %94, %80, %cst_84 {dimension_numbers = #tpu.dot_dimension_numbers<[1], [0], [0], [1], [0, 0, 1, 1], [], []>} : vector<16x16xf32>, vector<16x64xf32>, vector<16x64xf32> -> vector<16x64xf32>
    %c0_85 = arith.constant 0 : index
    %c1_86 = arith.constant 1 : index
    %c0_87 = arith.constant 0 : index
    %c0_88 = arith.constant 0 : index
    %96 = vector.load %arg12[%c0_85, %c1_86, %c0_87, %c0_88] : memref<2x2x64x128xf32, #tpu.memory_space<vmem>>, vector<1x1x64x128xf32>
    %97 = vector.shape_cast %96 : vector<1x1x64x128xf32> to vector<64x128xf32>
    %cst_89 = arith.constant dense<0.000000e+00> : vector<16x128xf32>
    %98 = tpu.matmul %95, %97, %cst_89 {dimension_numbers = #tpu.dot_dimension_numbers<[1], [0], [0], [1], [0, 0, 1, 1], [], []>} : vector<16x64xf32>, vector<64x128xf32>, vector<16x128xf32> -> vector<16x128xf32>
    %99 = arith.addf %59, %98 : vector<16x128xf32>
    %c0_90 = arith.constant 0 : index
    %c0_91 = arith.constant 0 : index
    %c0_92 = arith.constant 0 : index
    %100 = vector.load %arg13[%c0_90, %c0_91, %c0_92] : memref<2x1x128xf32, #tpu.memory_space<vmem>>, vector<1x1x128xf32>
    %101 = vector.shape_cast %100 : vector<1x1x128xf32> to vector<1x128xf32>
    %102 = vector.broadcast %101 : vector<1x128xf32> to vector<16x128xf32>
    %103 = arith.addf %99, %102 : vector<16x128xf32>
    %104 = arith.addf %103, %10 : vector<16x128xf32>
    %c0_93 = arith.constant 0 : index
    %c0_94 = arith.constant 0 : index
    %c0_95 = arith.constant 0 : index
    %105 = vector.load %arg14[%c0_93, %c0_94, %c0_95] : memref<2x1x128xf32, #tpu.memory_space<vmem>>, vector<1x1x128xf32>
    %106 = vector.shape_cast %105 : vector<1x1x128xf32> to vector<1x128xf32>
    %c0_96 = arith.constant 0 : index
    %c0_97 = arith.constant 0 : index
    %c0_98 = arith.constant 0 : index
    %107 = vector.load %arg15[%c0_96, %c0_97, %c0_98] : memref<2x1x128xf32, #tpu.memory_space<vmem>>, vector<1x1x128xf32>
    %108 = vector.shape_cast %107 : vector<1x1x128xf32> to vector<1x128xf32>
    %cst_99 = arith.constant dense<0.000000e+00> : vector<16xf32>
    %109 = vector.multi_reduction <add>, %104, %cst_99 [1] : vector<16x128xf32> to vector<16xf32>
    %110 = vector.shape_cast %109 : vector<16xf32> to vector<16x1xf32>
    %cst_100 = arith.constant 1.280000e+02 : f32
    %111 = vector.broadcast %cst_100 : f32 to vector<16x1xf32>
    %112 = arith.divf %110, %111 : vector<16x1xf32>
    %113 = vector.broadcast %112 : vector<16x1xf32> to vector<16x128xf32>
    %114 = arith.subf %104, %113 : vector<16x128xf32>
    %115 = arith.mulf %114, %114 : vector<16x128xf32>
    %cst_101 = arith.constant dense<0.000000e+00> : vector<16xf32>
    %116 = vector.multi_reduction <add>, %115, %cst_101 [1] : vector<16x128xf32> to vector<16xf32>
    %117 = vector.shape_cast %116 : vector<16xf32> to vector<16x1xf32>
    %cst_102 = arith.constant 1.280000e+02 : f32
    %118 = vector.broadcast %cst_102 : f32 to vector<16x1xf32>
    %119 = arith.divf %117, %118 : vector<16x1xf32>
    %cst_103 = arith.constant 9.99999974E-6 : f32
    %120 = vector.broadcast %cst_103 : f32 to vector<16x1xf32>
    %121 = arith.addf %119, %120 : vector<16x1xf32>
    %122 = math.rsqrt %121 : vector<16x1xf32>
    %123 = vector.broadcast %122 : vector<16x1xf32> to vector<16x128xf32>
    %124 = arith.mulf %114, %123 : vector<16x128xf32>
    %125 = vector.broadcast %106 : vector<1x128xf32> to vector<16x128xf32>
    %126 = arith.mulf %124, %125 : vector<16x128xf32>
    %127 = vector.broadcast %108 : vector<1x128xf32> to vector<16x128xf32>
    %128 = arith.addf %126, %127 : vector<16x128xf32>
    %129 = vector.broadcast %16 : vector<16x1xf32> to vector<16x128xf32>
    %130 = arith.mulf %128, %129 : vector<16x128xf32>
    %c8 = arith.constant 8 : index
    %c0_104 = arith.constant 0 : index
    %131 = vector.load %arg23[%c8, %c0_104] : memref<32x128xf32, #tpu.memory_space<vmem>>, vector<16x128xf32>
    tpu.vector_store %arg23[%c8, %c0_104], %130 {strides = array<i32>} : memref<32x128xf32, #tpu.memory_space<vmem>>, vector<16x128xf32>,
    %c4 = arith.constant 4 : index
    %c0_105 = arith.constant 0 : index
    %132 = vector.load %arg23[%c4, %c0_105] : memref<32x128xf32, #tpu.memory_space<vmem>>, vector<16x128xf32>
    %c0_106 = arith.constant 0 : index
    %c0_107 = arith.constant 0 : index
    %c0_108 = arith.constant 0 : index
    %c0_109 = arith.constant 0 : index
    %133 = vector.load %arg16[%c0_106, %c0_107, %c0_108, %c0_109] : memref<2x9x128x256xf32, #tpu.memory_space<vmem>>, vector<1x1x128x256xf32>
    %134 = vector.shape_cast %133 : vector<1x1x128x256xf32> to vector<128x256xf32>
    %cst_110 = arith.constant dense<0.000000e+00> : vector<16x256xf32>
    %135 = tpu.matmul %132, %134, %cst_110 {dimension_numbers = #tpu.dot_dimension_numbers<[1], [0], [0], [1], [0, 0, 1, 1], [], []>} : vector<16x128xf32>, vector<128x256xf32>, vector<16x256xf32> -> vector<16x256xf32>
    %c5 = arith.constant 5 : index
    %c0_111 = arith.constant 0 : index
    %136 = vector.load %arg23[%c5, %c0_111] : memref<32x128xf32, #tpu.memory_space<vmem>>, vector<16x128xf32>
    %c0_112 = arith.constant 0 : index
    %c1_113 = arith.constant 1 : index
    %c0_114 = arith.constant 0 : index
    %c0_115 = arith.constant 0 : index
    %137 = vector.load %arg16[%c0_112, %c1_113, %c0_114, %c0_115] : memref<2x9x128x256xf32, #tpu.memory_space<vmem>>, vector<1x1x128x256xf32>
    %138 = vector.shape_cast %137 : vector<1x1x128x256xf32> to vector<128x256xf32>
    %cst_116 = arith.constant dense<0.000000e+00> : vector<16x256xf32>
    %139 = tpu.matmul %136, %138, %cst_116 {dimension_numbers = #tpu.dot_dimension_numbers<[1], [0], [0], [1], [0, 0, 1, 1], [], []>} : vector<16x128xf32>, vector<128x256xf32>, vector<16x256xf32> -> vector<16x256xf32>
    %140 = arith.addf %135, %139 : vector<16x256xf32>
    %c6 = arith.constant 6 : index
    %c0_117 = arith.constant 0 : index
    %141 = vector.load %arg23[%c6, %c0_117] : memref<32x128xf32, #tpu.memory_space<vmem>>, vector<16x128xf32>
    %c0_118 = arith.constant 0 : index
    %c2 = arith.constant 2 : index
    %c0_119 = arith.constant 0 : index
    %c0_120 = arith.constant 0 : index
    %142 = vector.load %arg16[%c0_118, %c2, %c0_119, %c0_120] : memref<2x9x128x256xf32, #tpu.memory_space<vmem>>, vector<1x1x128x256xf32>
    %143 = vector.shape_cast %142 : vector<1x1x128x256xf32> to vector<128x256xf32>
    %cst_121 = arith.constant dense<0.000000e+00> : vector<16x256xf32>
    %144 = tpu.matmul %141, %143, %cst_121 {dimension_numbers = #tpu.dot_dimension_numbers<[1], [0], [0], [1], [0, 0, 1, 1], [], []>} : vector<16x128xf32>, vector<128x256xf32>, vector<16x256xf32> -> vector<16x256xf32>
    %145 = arith.addf %140, %144 : vector<16x256xf32>
    %c7 = arith.constant 7 : index
    %c0_122 = arith.constant 0 : index
    %146 = vector.load %arg23[%c7, %c0_122] : memref<32x128xf32, #tpu.memory_space<vmem>>, vector<16x128xf32>
    %c0_123 = arith.constant 0 : index
    %c3 = arith.constant 3 : index
    %c0_124 = arith.constant 0 : index
    %c0_125 = arith.constant 0 : index
    %147 = vector.load %arg16[%c0_123, %c3, %c0_124, %c0_125] : memref<2x9x128x256xf32, #tpu.memory_space<vmem>>, vector<1x1x128x256xf32>
    %148 = vector.shape_cast %147 : vector<1x1x128x256xf32> to vector<128x256xf32>
    %cst_126 = arith.constant dense<0.000000e+00> : vector<16x256xf32>
    %149 = tpu.matmul %146, %148, %cst_126 {dimension_numbers = #tpu.dot_dimension_numbers<[1], [0], [0], [1], [0, 0, 1, 1], [], []>} : vector<16x128xf32>, vector<128x256xf32>, vector<16x256xf32> -> vector<16x256xf32>
    %150 = arith.addf %145, %149 : vector<16x256xf32>
    %c8_127 = arith.constant 8 : index
    %c0_128 = arith.constant 0 : index
    %151 = vector.load %arg23[%c8_127, %c0_128] : memref<32x128xf32, #tpu.memory_space<vmem>>, vector<16x128xf32>
    %c0_129 = arith.constant 0 : index
    %c4_130 = arith.constant 4 : index
    %c0_131 = arith.constant 0 : index
    %c0_132 = arith.constant 0 : index
    %152 = vector.load %arg16[%c0_129, %c4_130, %c0_131, %c0_132] : memref<2x9x128x256xf32, #tpu.memory_space<vmem>>, vector<1x1x128x256xf32>
    %153 = vector.shape_cast %152 : vector<1x1x128x256xf32> to vector<128x256xf32>
    %cst_133 = arith.constant dense<0.000000e+00> : vector<16x256xf32>
    %154 = tpu.matmul %151, %153, %cst_133 {dimension_numbers = #tpu.dot_dimension_numbers<[1], [0], [0], [1], [0, 0, 1, 1], [], []>} : vector<16x128xf32>, vector<128x256xf32>, vector<16x256xf32> -> vector<16x256xf32>
    %155 = arith.addf %150, %154 : vector<16x256xf32>
    %c9 = arith.constant 9 : index
    %c0_134 = arith.constant 0 : index
    %156 = vector.load %arg23[%c9, %c0_134] : memref<32x128xf32, #tpu.memory_space<vmem>>, vector<16x128xf32>
    %c0_135 = arith.constant 0 : index
    %c5_136 = arith.constant 5 : index
    %c0_137 = arith.constant 0 : index
    %c0_138 = arith.constant 0 : index
    %157 = vector.load %arg16[%c0_135, %c5_136, %c0_137, %c0_138] : memref<2x9x128x256xf32, #tpu.memory_space<vmem>>, vector<1x1x128x256xf32>
    %158 = vector.shape_cast %157 : vector<1x1x128x256xf32> to vector<128x256xf32>
    %cst_139 = arith.constant dense<0.000000e+00> : vector<16x256xf32>
    %159 = tpu.matmul %156, %158, %cst_139 {dimension_numbers = #tpu.dot_dimension_numbers<[1], [0], [0], [1], [0, 0, 1, 1], [], []>} : vector<16x128xf32>, vector<128x256xf32>, vector<16x256xf32> -> vector<16x256xf32>
    %160 = arith.addf %155, %159 : vector<16x256xf32>
    %c10 = arith.constant 10 : index
    %c0_140 = arith.constant 0 : index
    %161 = vector.load %arg23[%c10, %c0_140] : memref<32x128xf32, #tpu.memory_space<vmem>>, vector<16x128xf32>
    %c0_141 = arith.constant 0 : index
    %c6_142 = arith.constant 6 : index
    %c0_143 = arith.constant 0 : index
    %c0_144 = arith.constant 0 : index
    %162 = vector.load %arg16[%c0_141, %c6_142, %c0_143, %c0_144] : memref<2x9x128x256xf32, #tpu.memory_space<vmem>>, vector<1x1x128x256xf32>
    %163 = vector.shape_cast %162 : vector<1x1x128x256xf32> to vector<128x256xf32>
    %cst_145 = arith.constant dense<0.000000e+00> : vector<16x256xf32>
    %164 = tpu.matmul %161, %163, %cst_145 {dimension_numbers = #tpu.dot_dimension_numbers<[1], [0], [0], [1], [0, 0, 1, 1], [], []>} : vector<16x128xf32>, vector<128x256xf32>, vector<16x256xf32> -> vector<16x256xf32>
    %165 = arith.addf %160, %164 : vector<16x256xf32>
    %c11 = arith.constant 11 : index
    %c0_146 = arith.constant 0 : index
    %166 = vector.load %arg23[%c11, %c0_146] : memref<32x128xf32, #tpu.memory_space<vmem>>, vector<16x128xf32>
    %c0_147 = arith.constant 0 : index
    %c7_148 = arith.constant 7 : index
    %c0_149 = arith.constant 0 : index
    %c0_150 = arith.constant 0 : index
    %167 = vector.load %arg16[%c0_147, %c7_148, %c0_149, %c0_150] : memref<2x9x128x256xf32, #tpu.memory_space<vmem>>, vector<1x1x128x256xf32>
    %168 = vector.shape_cast %167 : vector<1x1x128x256xf32> to vector<128x256xf32>
    %cst_151 = arith.constant dense<0.000000e+00> : vector<16x256xf32>
    %169 = tpu.matmul %166, %168, %cst_151 {dimension_numbers = #tpu.dot_dimension_numbers<[1], [0], [0], [1], [0, 0, 1, 1], [], []>} : vector<16x128xf32>, vector<128x256xf32>, vector<16x256xf32> -> vector<16x256xf32>
    %170 = arith.addf %165, %169 : vector<16x256xf32>
    %c12 = arith.constant 12 : index
    %c0_152 = arith.constant 0 : index
    %171 = vector.load %arg23[%c12, %c0_152] : memref<32x128xf32, #tpu.memory_space<vmem>>, vector<16x128xf32>
    %c0_153 = arith.constant 0 : index
    %c8_154 = arith.constant 8 : index
    %c0_155 = arith.constant 0 : index
    %c0_156 = arith.constant 0 : index
    %172 = vector.load %arg16[%c0_153, %c8_154, %c0_155, %c0_156] : memref<2x9x128x256xf32, #tpu.memory_space<vmem>>, vector<1x1x128x256xf32>
    %173 = vector.shape_cast %172 : vector<1x1x128x256xf32> to vector<128x256xf32>
    %cst_157 = arith.constant dense<0.000000e+00> : vector<16x256xf32>
    %174 = tpu.matmul %171, %173, %cst_157 {dimension_numbers = #tpu.dot_dimension_numbers<[1], [0], [0], [1], [0, 0, 1, 1], [], []>} : vector<16x128xf32>, vector<128x256xf32>, vector<16x256xf32> -> vector<16x256xf32>
    %175 = arith.addf %170, %174 : vector<16x256xf32>
    %c0_158 = arith.constant 0 : index
    %c0_159 = arith.constant 0 : index
    %c0_160 = arith.constant 0 : index
    %176 = vector.load %arg17[%c0_158, %c0_159, %c0_160] : memref<2x1x256xf32, #tpu.memory_space<vmem>>, vector<1x1x256xf32>
    %177 = vector.shape_cast %176 : vector<1x1x256xf32> to vector<1x256xf32>
    %178 = vector.broadcast %177 : vector<1x256xf32> to vector<16x256xf32>
    %179 = arith.addf %175, %178 : vector<16x256xf32>
    %cst_161 = arith.constant 0.000000e+00 : f32
    %180 = vector.broadcast %cst_161 : f32 to vector<16x256xf32>
    %181 = arith.maximumf %179, %180 : vector<16x256xf32>
    %c0_162 = arith.constant 0 : index
    %c0_163 = arith.constant 0 : index
    %c0_164 = arith.constant 0 : index
    %182 = vector.load %arg18[%c0_162, %c0_163, %c0_164] : memref<2x256x128xf32, #tpu.memory_space<vmem>>, vector<1x256x128xf32>
    %183 = vector.shape_cast %182 : vector<1x256x128xf32> to vector<256x128xf32>
    %cst_165 = arith.constant dense<0.000000e+00> : vector<16x128xf32>
    %184 = tpu.matmul %181, %183, %cst_165 {dimension_numbers = #tpu.dot_dimension_numbers<[1], [0], [0], [1], [0, 0, 1, 1], [], []>} : vector<16x256xf32>, vector<256x128xf32>, vector<16x128xf32> -> vector<16x128xf32>
    %c0_166 = arith.constant 0 : index
    %c0_167 = arith.constant 0 : index
    %c0_168 = arith.constant 0 : index
    %185 = vector.load %arg19[%c0_166, %c0_167, %c0_168] : memref<2x1x128xf32, #tpu.memory_space<vmem>>, vector<1x1x128xf32>
    %186 = vector.shape_cast %185 : vector<1x1x128xf32> to vector<1x128xf32>
    %187 = vector.broadcast %186 : vector<1x128xf32> to vector<16x128xf32>
    %188 = arith.addf %184, %187 : vector<16x128xf32>
    %189 = arith.addf %188, %130 : vector<16x128xf32>
    %c0_169 = arith.constant 0 : index
    %c0_170 = arith.constant 0 : index
    %c0_171 = arith.constant 0 : index
    %190 = vector.load %arg20[%c0_169, %c0_170, %c0_171] : memref<2x1x128xf32, #tpu.memory_space<vmem>>, vector<1x1x128xf32>
    %191 = vector.shape_cast %190 : vector<1x1x128xf32> to vector<1x128xf32>
    %c0_172 = arith.constant 0 : index
    %c0_173 = arith.constant 0 : index
    %c0_174 = arith.constant 0 : index
    %192 = vector.load %arg21[%c0_172, %c0_173, %c0_174] : memref<2x1x128xf32, #tpu.memory_space<vmem>>, vector<1x1x128xf32>
    %193 = vector.shape_cast %192 : vector<1x1x128xf32> to vector<1x128xf32>
    %cst_175 = arith.constant dense<0.000000e+00> : vector<16xf32>
    %194 = vector.multi_reduction <add>, %189, %cst_175 [1] : vector<16x128xf32> to vector<16xf32>
    %195 = vector.shape_cast %194 : vector<16xf32> to vector<16x1xf32>
    %cst_176 = arith.constant 1.280000e+02 : f32
    %196 = vector.broadcast %cst_176 : f32 to vector<16x1xf32>
    %197 = arith.divf %195, %196 : vector<16x1xf32>
    %198 = vector.broadcast %197 : vector<16x1xf32> to vector<16x128xf32>
    %199 = arith.subf %189, %198 : vector<16x128xf32>
    %200 = arith.mulf %199, %199 : vector<16x128xf32>
    %cst_177 = arith.constant dense<0.000000e+00> : vector<16xf32>
    %201 = vector.multi_reduction <add>, %200, %cst_177 [1] : vector<16x128xf32> to vector<16xf32>
    %202 = vector.shape_cast %201 : vector<16xf32> to vector<16x1xf32>
    %cst_178 = arith.constant 1.280000e+02 : f32
    %203 = vector.broadcast %cst_178 : f32 to vector<16x1xf32>
    %204 = arith.divf %202, %203 : vector<16x1xf32>
    %cst_179 = arith.constant 9.99999974E-6 : f32
    %205 = vector.broadcast %cst_179 : f32 to vector<16x1xf32>
    %206 = arith.addf %204, %205 : vector<16x1xf32>
    %207 = math.rsqrt %206 : vector<16x1xf32>
    %208 = vector.broadcast %207 : vector<16x1xf32> to vector<16x128xf32>
    %209 = arith.mulf %199, %208 : vector<16x128xf32>
    %210 = vector.broadcast %191 : vector<1x128xf32> to vector<16x128xf32>
    %211 = arith.mulf %209, %210 : vector<16x128xf32>
    %212 = vector.broadcast %193 : vector<1x128xf32> to vector<16x128xf32>
    %213 = arith.addf %211, %212 : vector<16x128xf32>
    %214 = vector.broadcast %16 : vector<16x1xf32> to vector<16x128xf32>
    %215 = arith.mulf %213, %214 : vector<16x128xf32>
    %cst_180 = arith.constant 0.000000e+00 : f32
    %216 = vector.broadcast %cst_180 : f32 to vector<16x128xf32>
    %c1_181 = arith.constant 1 : index
    %c0_182 = arith.constant 0 : index
    %c0_183 = arith.constant 0 : index
    %c0_184 = arith.constant 0 : index
    %217 = vector.load %arg6[%c1_181, %c0_182, %c0_183, %c0_184] : memref<2x2x128x64xf32, #tpu.memory_space<vmem>>, vector<1x1x128x64xf32>
    %218 = vector.shape_cast %217 : vector<1x1x128x64xf32> to vector<128x64xf32>
    %cst_185 = arith.constant dense<0.000000e+00> : vector<16x64xf32>
    %219 = tpu.matmul %215, %218, %cst_185 {dimension_numbers = #tpu.dot_dimension_numbers<[1], [0], [0], [1], [0, 0, 1, 1], [], []>} : vector<16x128xf32>, vector<128x64xf32>, vector<16x64xf32> -> vector<16x64xf32>
    %c1_186 = arith.constant 1 : index
    %c0_187 = arith.constant 0 : index
    %c0_188 = arith.constant 0 : index
    %c0_189 = arith.constant 0 : index
    %220 = vector.load %arg7[%c1_186, %c0_187, %c0_188, %c0_189] : memref<2x2x1x64xf32, #tpu.memory_space<vmem>>, vector<1x1x1x64xf32>
    %221 = vector.shape_cast %220 : vector<1x1x1x64xf32> to vector<1x64xf32>
    %222 = vector.broadcast %221 : vector<1x64xf32> to vector<16x64xf32>
    %223 = arith.addf %219, %222 : vector<16x64xf32>
    %c1_190 = arith.constant 1 : index
    %c0_191 = arith.constant 0 : index
    %c0_192 = arith.constant 0 : index
    %c0_193 = arith.constant 0 : index
    %224 = vector.load %arg8[%c1_190, %c0_191, %c0_192, %c0_193] : memref<2x2x128x64xf32, #tpu.memory_space<vmem>>, vector<1x1x128x64xf32>
    %225 = vector.shape_cast %224 : vector<1x1x128x64xf32> to vector<128x64xf32>
    %cst_194 = arith.constant dense<0.000000e+00> : vector<16x64xf32>
    %226 = tpu.matmul %215, %225, %cst_194 {dimension_numbers = #tpu.dot_dimension_numbers<[1], [0], [0], [1], [0, 0, 1, 1], [], []>} : vector<16x128xf32>, vector<128x64xf32>, vector<16x64xf32> -> vector<16x64xf32>
    %c1_195 = arith.constant 1 : index
    %c0_196 = arith.constant 0 : index
    %c0_197 = arith.constant 0 : index
    %c0_198 = arith.constant 0 : index
    %227 = vector.load %arg9[%c1_195, %c0_196, %c0_197, %c0_198] : memref<2x2x1x64xf32, #tpu.memory_space<vmem>>, vector<1x1x1x64xf32>
    %228 = vector.shape_cast %227 : vector<1x1x1x64xf32> to vector<1x64xf32>
    %229 = vector.broadcast %228 : vector<1x64xf32> to vector<16x64xf32>
    %230 = arith.addf %226, %229 : vector<16x64xf32>
    %c1_199 = arith.constant 1 : index
    %c0_200 = arith.constant 0 : index
    %c0_201 = arith.constant 0 : index
    %c0_202 = arith.constant 0 : index
    %231 = vector.load %arg10[%c1_199, %c0_200, %c0_201, %c0_202] : memref<2x2x128x64xf32, #tpu.memory_space<vmem>>, vector<1x1x128x64xf32>
    %232 = vector.shape_cast %231 : vector<1x1x128x64xf32> to vector<128x64xf32>
    %cst_203 = arith.constant dense<0.000000e+00> : vector<16x64xf32>
    %233 = tpu.matmul %215, %232, %cst_203 {dimension_numbers = #tpu.dot_dimension_numbers<[1], [0], [0], [1], [0, 0, 1, 1], [], []>} : vector<16x128xf32>, vector<128x64xf32>, vector<16x64xf32> -> vector<16x64xf32>
    %c1_204 = arith.constant 1 : index
    %c0_205 = arith.constant 0 : index
    %c0_206 = arith.constant 0 : index
    %c0_207 = arith.constant 0 : index
    %234 = vector.load %arg11[%c1_204, %c0_205, %c0_206, %c0_207] : memref<2x2x1x64xf32, #tpu.memory_space<vmem>>, vector<1x1x1x64xf32>
    %235 = vector.shape_cast %234 : vector<1x1x1x64xf32> to vector<1x64xf32>
    %236 = vector.broadcast %235 : vector<1x64xf32> to vector<16x64xf32>
    %237 = arith.addf %233, %236 : vector<16x64xf32>
    %cst_208 = arith.constant dense<0.000000e+00> : vector<16x16xf32>
    %238 = tpu.matmul %223, %230, %cst_208 {dimension_numbers = #tpu.dot_dimension_numbers<[1], [1], [0], [0], [0, 0, 1, 0], [], []>} : vector<16x64xf32>, vector<16x64xf32>, vector<16x16xf32> -> vector<16x16xf32>
    %cst_209 = arith.constant 1.250000e-01 : f32
    %239 = vector.broadcast %cst_209 : f32 to vector<16x16xf32>
    %240 = arith.mulf %238, %239 : vector<16x16xf32>
    %241 = vector.broadcast %14 : vector<1x16xf32> to vector<16x16xf32>
    %242 = arith.addf %240, %241 : vector<16x16xf32>
    %cst_210 = arith.constant dense<0xFF800000> : vector<16xf32>
    %243 = vector.multi_reduction <maximumf>, %242, %cst_210 [1] : vector<16x16xf32> to vector<16xf32>
    %244 = vector.shape_cast %243 : vector<16xf32> to vector<16x1xf32>
    %245 = vector.broadcast %244 : vector<16x1xf32> to vector<16x16xf32>
    %246 = arith.subf %242, %245 : vector<16x16xf32>
    %247 = math.exp %246 : vector<16x16xf32>
    %cst_211 = arith.constant dense<0.000000e+00> : vector<16xf32>
    %248 = vector.multi_reduction <add>, %247, %cst_211 [1] : vector<16x16xf32> to vector<16xf32>
    %249 = vector.shape_cast %248 : vector<16xf32> to vector<16x1xf32>
    %250 = vector.broadcast %249 : vector<16x1xf32> to vector<16x16xf32>
    %251 = arith.divf %247, %250 : vector<16x16xf32>
    %cst_212 = arith.constant dense<0.000000e+00> : vector<16x64xf32>
    %252 = tpu.matmul %251, %237, %cst_212 {dimension_numbers = #tpu.dot_dimension_numbers<[1], [0], [0], [1], [0, 0, 1, 1], [], []>} : vector<16x16xf32>, vector<16x64xf32>, vector<16x64xf32> -> vector<16x64xf32>
    %c1_213 = arith.constant 1 : index
    %c0_214 = arith.constant 0 : index
    %c0_215 = arith.constant 0 : index
    %c0_216 = arith.constant 0 : index
    %253 = vector.load %arg12[%c1_213, %c0_214, %c0_215, %c0_216] : memref<2x2x64x128xf32, #tpu.memory_space<vmem>>, vector<1x1x64x128xf32>
    %254 = vector.shape_cast %253 : vector<1x1x64x128xf32> to vector<64x128xf32>
    %cst_217 = arith.constant dense<0.000000e+00> : vector<16x128xf32>
    %255 = tpu.matmul %252, %254, %cst_217 {dimension_numbers = #tpu.dot_dimension_numbers<[1], [0], [0], [1], [0, 0, 1, 1], [], []>} : vector<16x64xf32>, vector<64x128xf32>, vector<16x128xf32> -> vector<16x128xf32>
    %256 = arith.addf %216, %255 : vector<16x128xf32>
    %c1_218 = arith.constant 1 : index
    %c1_219 = arith.constant 1 : index
    %c0_220 = arith.constant 0 : index
    %c0_221 = arith.constant 0 : index
    %257 = vector.load %arg6[%c1_218, %c1_219, %c0_220, %c0_221] : memref<2x2x128x64xf32, #tpu.memory_space<vmem>>, vector<1x1x128x64xf32>
    %258 = vector.shape_cast %257 : vector<1x1x128x64xf32> to vector<128x64xf32>
    %cst_222 = arith.constant dense<0.000000e+00> : vector<16x64xf32>
    %259 = tpu.matmul %215, %258, %cst_222 {dimension_numbers = #tpu.dot_dimension_numbers<[1], [0], [0], [1], [0, 0, 1, 1], [], []>} : vector<16x128xf32>, vector<128x64xf32>, vector<16x64xf32> -> vector<16x64xf32>
    %c1_223 = arith.constant 1 : index
    %c1_224 = arith.constant 1 : index
    %c0_225 = arith.constant 0 : index
    %c0_226 = arith.constant 0 : index
    %260 = vector.load %arg7[%c1_223, %c1_224, %c0_225, %c0_226] : memref<2x2x1x64xf32, #tpu.memory_space<vmem>>, vector<1x1x1x64xf32>
    %261 = vector.shape_cast %260 : vector<1x1x1x64xf32> to vector<1x64xf32>
    %262 = vector.broadcast %261 : vector<1x64xf32> to vector<16x64xf32>
    %263 = arith.addf %259, %262 : vector<16x64xf32>
    %c1_227 = arith.constant 1 : index
    %c1_228 = arith.constant 1 : index
    %c0_229 = arith.constant 0 : index
    %c0_230 = arith.constant 0 : index
    %264 = vector.load %arg8[%c1_227, %c1_228, %c0_229, %c0_230] : memref<2x2x128x64xf32, #tpu.memory_space<vmem>>, vector<1x1x128x64xf32>
    %265 = vector.shape_cast %264 : vector<1x1x128x64xf32> to vector<128x64xf32>
    %cst_231 = arith.constant dense<0.000000e+00> : vector<16x64xf32>
    %266 = tpu.matmul %215, %265, %cst_231 {dimension_numbers = #tpu.dot_dimension_numbers<[1], [0], [0], [1], [0, 0, 1, 1], [], []>} : vector<16x128xf32>, vector<128x64xf32>, vector<16x64xf32> -> vector<16x64xf32>
    %c1_232 = arith.constant 1 : index
    %c1_233 = arith.constant 1 : index
    %c0_234 = arith.constant 0 : index
    %c0_235 = arith.constant 0 : index
    %267 = vector.load %arg9[%c1_232, %c1_233, %c0_234, %c0_235] : memref<2x2x1x64xf32, #tpu.memory_space<vmem>>, vector<1x1x1x64xf32>
    %268 = vector.shape_cast %267 : vector<1x1x1x64xf32> to vector<1x64xf32>
    %269 = vector.broadcast %268 : vector<1x64xf32> to vector<16x64xf32>
    %270 = arith.addf %266, %269 : vector<16x64xf32>
    %c1_236 = arith.constant 1 : index
    %c1_237 = arith.constant 1 : index
    %c0_238 = arith.constant 0 : index
    %c0_239 = arith.constant 0 : index
    %271 = vector.load %arg10[%c1_236, %c1_237, %c0_238, %c0_239] : memref<2x2x128x64xf32, #tpu.memory_space<vmem>>, vector<1x1x128x64xf32>
    %272 = vector.shape_cast %271 : vector<1x1x128x64xf32> to vector<128x64xf32>
    %cst_240 = arith.constant dense<0.000000e+00> : vector<16x64xf32>
    %273 = tpu.matmul %215, %272, %cst_240 {dimension_numbers = #tpu.dot_dimension_numbers<[1], [0], [0], [1], [0, 0, 1, 1], [], []>} : vector<16x128xf32>, vector<128x64xf32>, vector<16x64xf32> -> vector<16x64xf32>
    %c1_241 = arith.constant 1 : index
    %c1_242 = arith.constant 1 : index
    %c0_243 = arith.constant 0 : index
    %c0_244 = arith.constant 0 : index
    %274 = vector.load %arg11[%c1_241, %c1_242, %c0_243, %c0_244] : memref<2x2x1x64xf32, #tpu.memory_space<vmem>>, vector<1x1x1x64xf32>
    %275 = vector.shape_cast %274 : vector<1x1x1x64xf32> to vector<1x64xf32>
    %276 = vector.broadcast %275 : vector<1x64xf32> to vector<16x64xf32>
    %277 = arith.addf %273, %276 : vector<16x64xf32>
    %cst_245 = arith.constant dense<0.000000e+00> : vector<16x16xf32>
    %278 = tpu.matmul %263, %270, %cst_245 {dimension_numbers = #tpu.dot_dimension_numbers<[1], [1], [0], [0], [0, 0, 1, 0], [], []>} : vector<16x64xf32>, vector<16x64xf32>, vector<16x16xf32> -> vector<16x16xf32>
    %cst_246 = arith.constant 1.250000e-01 : f32
    %279 = vector.broadcast %cst_246 : f32 to vector<16x16xf32>
    %280 = arith.mulf %278, %279 : vector<16x16xf32>
    %281 = vector.broadcast %14 : vector<1x16xf32> to vector<16x16xf32>
    %282 = arith.addf %280, %281 : vector<16x16xf32>
    %cst_247 = arith.constant dense<0xFF800000> : vector<16xf32>
    %283 = vector.multi_reduction <maximumf>, %282, %cst_247 [1] : vector<16x16xf32> to vector<16xf32>
    %284 = vector.shape_cast %283 : vector<16xf32> to vector<16x1xf32>
    %285 = vector.broadcast %284 : vector<16x1xf32> to vector<16x16xf32>
    %286 = arith.subf %282, %285 : vector<16x16xf32>
    %287 = math.exp %286 : vector<16x16xf32>
    %cst_248 = arith.constant dense<0.000000e+00> : vector<16xf32>
    %288 = vector.multi_reduction <add>, %287, %cst_248 [1] : vector<16x16xf32> to vector<16xf32>
    %289 = vector.shape_cast %288 : vector<16xf32> to vector<16x1xf32>
    %290 = vector.broadcast %289 : vector<16x1xf32> to vector<16x16xf32>
    %291 = arith.divf %287, %290 : vector<16x16xf32>
    %cst_249 = arith.constant dense<0.000000e+00> : vector<16x64xf32>
    %292 = tpu.matmul %291, %277, %cst_249 {dimension_numbers = #tpu.dot_dimension_numbers<[1], [0], [0], [1], [0, 0, 1, 1], [], []>} : vector<16x16xf32>, vector<16x64xf32>, vector<16x64xf32> -> vector<16x64xf32>
    %c1_250 = arith.constant 1 : index
    %c1_251 = arith.constant 1 : index
    %c0_252 = arith.constant 0 : index
    %c0_253 = arith.constant 0 : index
    %293 = vector.load %arg12[%c1_250, %c1_251, %c0_252, %c0_253] : memref<2x2x64x128xf32, #tpu.memory_space<vmem>>, vector<1x1x64x128xf32>
    %294 = vector.shape_cast %293 : vector<1x1x64x128xf32> to vector<64x128xf32>
    %cst_254 = arith.constant dense<0.000000e+00> : vector<16x128xf32>
    %295 = tpu.matmul %292, %294, %cst_254 {dimension_numbers = #tpu.dot_dimension_numbers<[1], [0], [0], [1], [0, 0, 1, 1], [], []>} : vector<16x64xf32>, vector<64x128xf32>, vector<16x128xf32> -> vector<16x128xf32>
    %296 = arith.addf %256, %295 : vector<16x128xf32>
    %c1_255 = arith.constant 1 : index
    %c0_256 = arith.constant 0 : index
    %c0_257 = arith.constant 0 : index
    %297 = vector.load %arg13[%c1_255, %c0_256, %c0_257] : memref<2x1x128xf32, #tpu.memory_space<vmem>>, vector<1x1x128xf32>
    %298 = vector.shape_cast %297 : vector<1x1x128xf32> to vector<1x128xf32>
    %299 = vector.broadcast %298 : vector<1x128xf32> to vector<16x128xf32>
    %300 = arith.addf %296, %299 : vector<16x128xf32>
    %301 = arith.addf %300, %215 : vector<16x128xf32>
    %c1_258 = arith.constant 1 : index
    %c0_259 = arith.constant 0 : index
    %c0_260 = arith.constant 0 : index
    %302 = vector.load %arg14[%c1_258, %c0_259, %c0_260] : memref<2x1x128xf32, #tpu.memory_space<vmem>>, vector<1x1x128xf32>
    %303 = vector.shape_cast %302 : vector<1x1x128xf32> to vector<1x128xf32>
    %c1_261 = arith.constant 1 : index
    %c0_262 = arith.constant 0 : index
    %c0_263 = arith.constant 0 : index
    %304 = vector.load %arg15[%c1_261, %c0_262, %c0_263] : memref<2x1x128xf32, #tpu.memory_space<vmem>>, vector<1x1x128xf32>
    %305 = vector.shape_cast %304 : vector<1x1x128xf32> to vector<1x128xf32>
    %cst_264 = arith.constant dense<0.000000e+00> : vector<16xf32>
    %306 = vector.multi_reduction <add>, %301, %cst_264 [1] : vector<16x128xf32> to vector<16xf32>
    %307 = vector.shape_cast %306 : vector<16xf32> to vector<16x1xf32>
    %cst_265 = arith.constant 1.280000e+02 : f32
    %308 = vector.broadcast %cst_265 : f32 to vector<16x1xf32>
    %309 = arith.divf %307, %308 : vector<16x1xf32>
    %310 = vector.broadcast %309 : vector<16x1xf32> to vector<16x128xf32>
    %311 = arith.subf %301, %310 : vector<16x128xf32>
    %312 = arith.mulf %311, %311 : vector<16x128xf32>
    %cst_266 = arith.constant dense<0.000000e+00> : vector<16xf32>
    %313 = vector.multi_reduction <add>, %312, %cst_266 [1] : vector<16x128xf32> to vector<16xf32>
    %314 = vector.shape_cast %313 : vector<16xf32> to vector<16x1xf32>
    %cst_267 = arith.constant 1.280000e+02 : f32
    %315 = vector.broadcast %cst_267 : f32 to vector<16x1xf32>
    %316 = arith.divf %314, %315 : vector<16x1xf32>
    %cst_268 = arith.constant 9.99999974E-6 : f32
    %317 = vector.broadcast %cst_268 : f32 to vector<16x1xf32>
    %318 = arith.addf %316, %317 : vector<16x1xf32>
    %319 = math.rsqrt %318 : vector<16x1xf32>
    %320 = vector.broadcast %319 : vector<16x1xf32> to vector<16x128xf32>
    %321 = arith.mulf %311, %320 : vector<16x128xf32>
    %322 = vector.broadcast %303 : vector<1x128xf32> to vector<16x128xf32>
    %323 = arith.mulf %321, %322 : vector<16x128xf32>
    %324 = vector.broadcast %305 : vector<1x128xf32> to vector<16x128xf32>
    %325 = arith.addf %323, %324 : vector<16x128xf32>
    %326 = vector.broadcast %16 : vector<16x1xf32> to vector<16x128xf32>
    %327 = arith.mulf %325, %326 : vector<16x128xf32>
    %c8_269 = arith.constant 8 : index
    %c0_270 = arith.constant 0 : index
    %328 = vector.load %arg23[%c8_269, %c0_270] : memref<32x128xf32, #tpu.memory_space<vmem>>, vector<16x128xf32>
    tpu.vector_store %arg23[%c8_269, %c0_270], %327 {strides = array<i32>} : memref<32x128xf32, #tpu.memory_space<vmem>>, vector<16x128xf32>,
    %c4_271 = arith.constant 4 : index
    %c0_272 = arith.constant 0 : index
    %329 = vector.load %arg23[%c4_271, %c0_272] : memref<32x128xf32, #tpu.memory_space<vmem>>, vector<16x128xf32>
    %c1_273 = arith.constant 1 : index
    %c0_274 = arith.constant 0 : index
    %c0_275 = arith.constant 0 : index
    %c0_276 = arith.constant 0 : index
    %330 = vector.load %arg16[%c1_273, %c0_274, %c0_275, %c0_276] : memref<2x9x128x256xf32, #tpu.memory_space<vmem>>, vector<1x1x128x256xf32>
    %331 = vector.shape_cast %330 : vector<1x1x128x256xf32> to vector<128x256xf32>
    %cst_277 = arith.constant dense<0.000000e+00> : vector<16x256xf32>
    %332 = tpu.matmul %329, %331, %cst_277 {dimension_numbers = #tpu.dot_dimension_numbers<[1], [0], [0], [1], [0, 0, 1, 1], [], []>} : vector<16x128xf32>, vector<128x256xf32>, vector<16x256xf32> -> vector<16x256xf32>
    %c5_278 = arith.constant 5 : index
    %c0_279 = arith.constant 0 : index
    %333 = vector.load %arg23[%c5_278, %c0_279] : memref<32x128xf32, #tpu.memory_space<vmem>>, vector<16x128xf32>
    %c1_280 = arith.constant 1 : index
    %c1_281 = arith.constant 1 : index
    %c0_282 = arith.constant 0 : index
    %c0_283 = arith.constant 0 : index
    %334 = vector.load %arg16[%c1_280, %c1_281, %c0_282, %c0_283] : memref<2x9x128x256xf32, #tpu.memory_space<vmem>>, vector<1x1x128x256xf32>
    %335 = vector.shape_cast %334 : vector<1x1x128x256xf32> to vector<128x256xf32>
    %cst_284 = arith.constant dense<0.000000e+00> : vector<16x256xf32>
    %336 = tpu.matmul %333, %335, %cst_284 {dimension_numbers = #tpu.dot_dimension_numbers<[1], [0], [0], [1], [0, 0, 1, 1], [], []>} : vector<16x128xf32>, vector<128x256xf32>, vector<16x256xf32> -> vector<16x256xf32>
    %337 = arith.addf %332, %336 : vector<16x256xf32>
    %c6_285 = arith.constant 6 : index
    %c0_286 = arith.constant 0 : index
    %338 = vector.load %arg23[%c6_285, %c0_286] : memref<32x128xf32, #tpu.memory_space<vmem>>, vector<16x128xf32>
    %c1_287 = arith.constant 1 : index
    %c2_288 = arith.constant 2 : index
    %c0_289 = arith.constant 0 : index
    %c0_290 = arith.constant 0 : index
    %339 = vector.load %arg16[%c1_287, %c2_288, %c0_289, %c0_290] : memref<2x9x128x256xf32, #tpu.memory_space<vmem>>, vector<1x1x128x256xf32>
    %340 = vector.shape_cast %339 : vector<1x1x128x256xf32> to vector<128x256xf32>
    %cst_291 = arith.constant dense<0.000000e+00> : vector<16x256xf32>
    %341 = tpu.matmul %338, %340, %cst_291 {dimension_numbers = #tpu.dot_dimension_numbers<[1], [0], [0], [1], [0, 0, 1, 1], [], []>} : vector<16x128xf32>, vector<128x256xf32>, vector<16x256xf32> -> vector<16x256xf32>
    %342 = arith.addf %337, %341 : vector<16x256xf32>
    %c7_292 = arith.constant 7 : index
    %c0_293 = arith.constant 0 : index
    %343 = vector.load %arg23[%c7_292, %c0_293] : memref<32x128xf32, #tpu.memory_space<vmem>>, vector<16x128xf32>
    %c1_294 = arith.constant 1 : index
    %c3_295 = arith.constant 3 : index
    %c0_296 = arith.constant 0 : index
    %c0_297 = arith.constant 0 : index
    %344 = vector.load %arg16[%c1_294, %c3_295, %c0_296, %c0_297] : memref<2x9x128x256xf32, #tpu.memory_space<vmem>>, vector<1x1x128x256xf32>
    %345 = vector.shape_cast %344 : vector<1x1x128x256xf32> to vector<128x256xf32>
    %cst_298 = arith.constant dense<0.000000e+00> : vector<16x256xf32>
    %346 = tpu.matmul %343, %345, %cst_298 {dimension_numbers = #tpu.dot_dimension_numbers<[1], [0], [0], [1], [0, 0, 1, 1], [], []>} : vector<16x128xf32>, vector<128x256xf32>, vector<16x256xf32> -> vector<16x256xf32>
    %347 = arith.addf %342, %346 : vector<16x256xf32>
    %c8_299 = arith.constant 8 : index
    %c0_300 = arith.constant 0 : index
    %348 = vector.load %arg23[%c8_299, %c0_300] : memref<32x128xf32, #tpu.memory_space<vmem>>, vector<16x128xf32>
    %c1_301 = arith.constant 1 : index
    %c4_302 = arith.constant 4 : index
    %c0_303 = arith.constant 0 : index
    %c0_304 = arith.constant 0 : index
    %349 = vector.load %arg16[%c1_301, %c4_302, %c0_303, %c0_304] : memref<2x9x128x256xf32, #tpu.memory_space<vmem>>, vector<1x1x128x256xf32>
    %350 = vector.shape_cast %349 : vector<1x1x128x256xf32> to vector<128x256xf32>
    %cst_305 = arith.constant dense<0.000000e+00> : vector<16x256xf32>
    %351 = tpu.matmul %348, %350, %cst_305 {dimension_numbers = #tpu.dot_dimension_numbers<[1], [0], [0], [1], [0, 0, 1, 1], [], []>} : vector<16x128xf32>, vector<128x256xf32>, vector<16x256xf32> -> vector<16x256xf32>
    %352 = arith.addf %347, %351 : vector<16x256xf32>
    %c9_306 = arith.constant 9 : index
    %c0_307 = arith.constant 0 : index
    %353 = vector.load %arg23[%c9_306, %c0_307] : memref<32x128xf32, #tpu.memory_space<vmem>>, vector<16x128xf32>
    %c1_308 = arith.constant 1 : index
    %c5_309 = arith.constant 5 : index
    %c0_310 = arith.constant 0 : index
    %c0_311 = arith.constant 0 : index
    %354 = vector.load %arg16[%c1_308, %c5_309, %c0_310, %c0_311] : memref<2x9x128x256xf32, #tpu.memory_space<vmem>>, vector<1x1x128x256xf32>
    %355 = vector.shape_cast %354 : vector<1x1x128x256xf32> to vector<128x256xf32>
    %cst_312 = arith.constant dense<0.000000e+00> : vector<16x256xf32>
    %356 = tpu.matmul %353, %355, %cst_312 {dimension_numbers = #tpu.dot_dimension_numbers<[1], [0], [0], [1], [0, 0, 1, 1], [], []>} : vector<16x128xf32>, vector<128x256xf32>, vector<16x256xf32> -> vector<16x256xf32>
    %357 = arith.addf %352, %356 : vector<16x256xf32>
    %c10_313 = arith.constant 10 : index
    %c0_314 = arith.constant 0 : index
    %358 = vector.load %arg23[%c10_313, %c0_314] : memref<32x128xf32, #tpu.memory_space<vmem>>, vector<16x128xf32>
    %c1_315 = arith.constant 1 : index
    %c6_316 = arith.constant 6 : index
    %c0_317 = arith.constant 0 : index
    %c0_318 = arith.constant 0 : index
    %359 = vector.load %arg16[%c1_315, %c6_316, %c0_317, %c0_318] : memref<2x9x128x256xf32, #tpu.memory_space<vmem>>, vector<1x1x128x256xf32>
    %360 = vector.shape_cast %359 : vector<1x1x128x256xf32> to vector<128x256xf32>
    %cst_319 = arith.constant dense<0.000000e+00> : vector<16x256xf32>
    %361 = tpu.matmul %358, %360, %cst_319 {dimension_numbers = #tpu.dot_dimension_numbers<[1], [0], [0], [1], [0, 0, 1, 1], [], []>} : vector<16x128xf32>, vector<128x256xf32>, vector<16x256xf32> -> vector<16x256xf32>
    %362 = arith.addf %357, %361 : vector<16x256xf32>
    %c11_320 = arith.constant 11 : index
    %c0_321 = arith.constant 0 : index
    %363 = vector.load %arg23[%c11_320, %c0_321] : memref<32x128xf32, #tpu.memory_space<vmem>>, vector<16x128xf32>
    %c1_322 = arith.constant 1 : index
    %c7_323 = arith.constant 7 : index
    %c0_324 = arith.constant 0 : index
    %c0_325 = arith.constant 0 : index
    %364 = vector.load %arg16[%c1_322, %c7_323, %c0_324, %c0_325] : memref<2x9x128x256xf32, #tpu.memory_space<vmem>>, vector<1x1x128x256xf32>
    %365 = vector.shape_cast %364 : vector<1x1x128x256xf32> to vector<128x256xf32>
    %cst_326 = arith.constant dense<0.000000e+00> : vector<16x256xf32>
    %366 = tpu.matmul %363, %365, %cst_326 {dimension_numbers = #tpu.dot_dimension_numbers<[1], [0], [0], [1], [0, 0, 1, 1], [], []>} : vector<16x128xf32>, vector<128x256xf32>, vector<16x256xf32> -> vector<16x256xf32>
    %367 = arith.addf %362, %366 : vector<16x256xf32>
    %c12_327 = arith.constant 12 : index
    %c0_328 = arith.constant 0 : index
    %368 = vector.load %arg23[%c12_327, %c0_328] : memref<32x128xf32, #tpu.memory_space<vmem>>, vector<16x128xf32>
    %c1_329 = arith.constant 1 : index
    %c8_330 = arith.constant 8 : index
    %c0_331 = arith.constant 0 : index
    %c0_332 = arith.constant 0 : index
    %369 = vector.load %arg16[%c1_329, %c8_330, %c0_331, %c0_332] : memref<2x9x128x256xf32, #tpu.memory_space<vmem>>, vector<1x1x128x256xf32>
    %370 = vector.shape_cast %369 : vector<1x1x128x256xf32> to vector<128x256xf32>
    %cst_333 = arith.constant dense<0.000000e+00> : vector<16x256xf32>
    %371 = tpu.matmul %368, %370, %cst_333 {dimension_numbers = #tpu.dot_dimension_numbers<[1], [0], [0], [1], [0, 0, 1, 1], [], []>} : vector<16x128xf32>, vector<128x256xf32>, vector<16x256xf32> -> vector<16x256xf32>
    %372 = arith.addf %367, %371 : vector<16x256xf32>
    %c1_334 = arith.constant 1 : index
    %c0_335 = arith.constant 0 : index
    %c0_336 = arith.constant 0 : index
    %373 = vector.load %arg17[%c1_334, %c0_335, %c0_336] : memref<2x1x256xf32, #tpu.memory_space<vmem>>, vector<1x1x256xf32>
    %374 = vector.shape_cast %373 : vector<1x1x256xf32> to vector<1x256xf32>
    %375 = vector.broadcast %374 : vector<1x256xf32> to vector<16x256xf32>
    %376 = arith.addf %372, %375 : vector<16x256xf32>
    %cst_337 = arith.constant 0.000000e+00 : f32
    %377 = vector.broadcast %cst_337 : f32 to vector<16x256xf32>
    %378 = arith.maximumf %376, %377 : vector<16x256xf32>
    %c1_338 = arith.constant 1 : index
    %c0_339 = arith.constant 0 : index
    %c0_340 = arith.constant 0 : index
    %379 = vector.load %arg18[%c1_338, %c0_339, %c0_340] : memref<2x256x128xf32, #tpu.memory_space<vmem>>, vector<1x256x128xf32>
    %380 = vector.shape_cast %379 : vector<1x256x128xf32> to vector<256x128xf32>
    %cst_341 = arith.constant dense<0.000000e+00> : vector<16x128xf32>
    %381 = tpu.matmul %378, %380, %cst_341 {dimension_numbers = #tpu.dot_dimension_numbers<[1], [0], [0], [1], [0, 0, 1, 1], [], []>} : vector<16x256xf32>, vector<256x128xf32>, vector<16x128xf32> -> vector<16x128xf32>
    %c1_342 = arith.constant 1 : index
    %c0_343 = arith.constant 0 : index
    %c0_344 = arith.constant 0 : index
    %382 = vector.load %arg19[%c1_342, %c0_343, %c0_344] : memref<2x1x128xf32, #tpu.memory_space<vmem>>, vector<1x1x128xf32>
    %383 = vector.shape_cast %382 : vector<1x1x128xf32> to vector<1x128xf32>
    %384 = vector.broadcast %383 : vector<1x128xf32> to vector<16x128xf32>
    %385 = arith.addf %381, %384 : vector<16x128xf32>
    %386 = arith.addf %385, %327 : vector<16x128xf32>
    %c1_345 = arith.constant 1 : index
    %c0_346 = arith.constant 0 : index
    %c0_347 = arith.constant 0 : index
    %387 = vector.load %arg20[%c1_345, %c0_346, %c0_347] : memref<2x1x128xf32, #tpu.memory_space<vmem>>, vector<1x1x128xf32>
    %388 = vector.shape_cast %387 : vector<1x1x128xf32> to vector<1x128xf32>
    %c1_348 = arith.constant 1 : index
    %c0_349 = arith.constant 0 : index
    %c0_350 = arith.constant 0 : index
    %389 = vector.load %arg21[%c1_348, %c0_349, %c0_350] : memref<2x1x128xf32, #tpu.memory_space<vmem>>, vector<1x1x128xf32>
    %390 = vector.shape_cast %389 : vector<1x1x128xf32> to vector<1x128xf32>
    %cst_351 = arith.constant dense<0.000000e+00> : vector<16xf32>
    %391 = vector.multi_reduction <add>, %386, %cst_351 [1] : vector<16x128xf32> to vector<16xf32>
    %392 = vector.shape_cast %391 : vector<16xf32> to vector<16x1xf32>
    %cst_352 = arith.constant 1.280000e+02 : f32
    %393 = vector.broadcast %cst_352 : f32 to vector<16x1xf32>
    %394 = arith.divf %392, %393 : vector<16x1xf32>
    %395 = vector.broadcast %394 : vector<16x1xf32> to vector<16x128xf32>
    %396 = arith.subf %386, %395 : vector<16x128xf32>
    %397 = arith.mulf %396, %396 : vector<16x128xf32>
    %cst_353 = arith.constant dense<0.000000e+00> : vector<16xf32>
    %398 = vector.multi_reduction <add>, %397, %cst_353 [1] : vector<16x128xf32> to vector<16xf32>
    %399 = vector.shape_cast %398 : vector<16xf32> to vector<16x1xf32>
    %cst_354 = arith.constant 1.280000e+02 : f32
    %400 = vector.broadcast %cst_354 : f32 to vector<16x1xf32>
    %401 = arith.divf %399, %400 : vector<16x1xf32>
    %cst_355 = arith.constant 9.99999974E-6 : f32
    %402 = vector.broadcast %cst_355 : f32 to vector<16x1xf32>
    %403 = arith.addf %401, %402 : vector<16x1xf32>
    %404 = math.rsqrt %403 : vector<16x1xf32>
    %405 = vector.broadcast %404 : vector<16x1xf32> to vector<16x128xf32>
    %406 = arith.mulf %396, %405 : vector<16x128xf32>
    %407 = vector.broadcast %388 : vector<1x128xf32> to vector<16x128xf32>
    %408 = arith.mulf %406, %407 : vector<16x128xf32>
    %409 = vector.broadcast %390 : vector<1x128xf32> to vector<16x128xf32>
    %410 = arith.addf %408, %409 : vector<16x128xf32>
    %411 = vector.broadcast %16 : vector<16x1xf32> to vector<16x128xf32>
    %412 = arith.mulf %410, %411 : vector<16x128xf32>
    %c0_356 = arith.constant 0 : index
    %c0_357 = arith.constant 0 : index
    %c0_358 = arith.constant 0 : index
    %413 = vector.load %arg22[%c0_356, %c0_357, %c0_358] : memref<1x16x128xf32, #tpu.memory_space<vmem>>, vector<1x16x128xf32>
    %414 = vector.shape_cast %413 : vector<1x16x128xf32> to vector<16x128xf32>
    %415 = vector.shape_cast %412 : vector<16x128xf32> to vector<1x16x128xf32>
    tpu.vector_store %arg22[%c0_356, %c0_357, %c0_358], %415 {strides = array<i32>} : memref<1x16x128xf32, #tpu.memory_space<vmem>>, vector<1x16x128xf32>,
    return
  }
  func.func @transform_0(%arg0: i32) -> (i32, i32, i32) {
    %c0_i32 = arith.constant 0 : i32
    %c0_i32_0 = arith.constant 0 : i32
    %c0_i32_1 = arith.constant 0 : i32
    return %arg0, %c0_i32, %c0_i32_0 : i32, i32, i32
  }
  func.func @transform_1(%arg0: i32) -> (i32, i32, i32) {
    %c0_i32 = arith.constant 0 : i32
    %c0_i32_0 = arith.constant 0 : i32
    %c0_i32_1 = arith.constant 0 : i32
    return %arg0, %c0_i32, %c0_i32_0 : i32, i32, i32
  }
  func.func @transform_2(%arg0: i32) -> (i32, i32, i32) {
    %c0_i32 = arith.constant 0 : i32
    %c0_i32_0 = arith.constant 0 : i32
    %c0_i32_1 = arith.constant 0 : i32
    return %arg0, %c0_i32, %c0_i32_0 : i32, i32, i32
  }
  func.func @transform_3(%arg0: i32) -> (i32, i32) {
    %c0_i32 = arith.constant 0 : i32
    %c0_i32_0 = arith.constant 0 : i32
    %c0_i32_1 = arith.constant 0 : i32
    return %c0_i32, %c0_i32_0 : i32, i32
  }
  func.func @transform_4(%arg0: i32) -> (i32, i32) {
    %c0_i32 = arith.constant 0 : i32
    %c0_i32_0 = arith.constant 0 : i32
    %c0_i32_1 = arith.constant 0 : i32
    return %c0_i32, %c0_i32_0 : i32, i32
  }
  func.func @transform_5(%arg0: i32) -> (i32, i32, i32, i32) {
    %c0_i32 = arith.constant 0 : i32
    %c0_i32_0 = arith.constant 0 : i32
    %c0_i32_1 = arith.constant 0 : i32
    %c0_i32_2 = arith.constant 0 : i32
    %c0_i32_3 = arith.constant 0 : i32
    return %c0_i32, %c0_i32_0, %c0_i32_1, %c0_i32_2 : i32, i32, i32, i32
  }
  func.func @transform_6(%arg0: i32) -> (i32, i32, i32, i32) {
    %c0_i32 = arith.constant 0 : i32
    %c0_i32_0 = arith.constant 0 : i32
    %c0_i32_1 = arith.constant 0 : i32
    %c0_i32_2 = arith.constant 0 : i32
    %c0_i32_3 = arith.constant 0 : i32
    return %c0_i32, %c0_i32_0, %c0_i32_1, %c0_i32_2 : i32, i32, i32, i32
  }
  func.func @transform_7(%arg0: i32) -> (i32, i32, i32, i32) {
    %c0_i32 = arith.constant 0 : i32
    %c0_i32_0 = arith.constant 0 : i32
    %c0_i32_1 = arith.constant 0 : i32
    %c0_i32_2 = arith.constant 0 : i32
    %c0_i32_3 = arith.constant 0 : i32
    return %c0_i32, %c0_i32_0, %c0_i32_1, %c0_i32_2 : i32, i32, i32, i32
  }
  func.func @transform_8(%arg0: i32) -> (i32, i32, i32, i32) {
    %c0_i32 = arith.constant 0 : i32
    %c0_i32_0 = arith.constant 0 : i32
    %c0_i32_1 = arith.constant 0 : i32
    %c0_i32_2 = arith.constant 0 : i32
    %c0_i32_3 = arith.constant 0 : i32
    return %c0_i32, %c0_i32_0, %c0_i32_1, %c0_i32_2 : i32, i32, i32, i32
  }
  func.func @transform_9(%arg0: i32) -> (i32, i32, i32, i32) {
    %c0_i32 = arith.constant 0 : i32
    %c0_i32_0 = arith.constant 0 : i32
    %c0_i32_1 = arith.constant 0 : i32
    %c0_i32_2 = arith.constant 0 : i32
    %c0_i32_3 = arith.constant 0 : i32
    return %c0_i32, %c0_i32_0, %c0_i32_1, %c0_i32_2 : i32, i32, i32, i32
  }
  func.func @transform_10(%arg0: i32) -> (i32, i32, i32, i32) {
    %c0_i32 = arith.constant 0 : i32
    %c0_i32_0 = arith.constant 0 : i32
    %c0_i32_1 = arith.constant 0 : i32
    %c0_i32_2 = arith.constant 0 : i32
    %c0_i32_3 = arith.constant 0 : i32
    return %c0_i32, %c0_i32_0, %c0_i32_1, %c0_i32_2 : i32, i32, i32, i32
  }
  func.func @transform_11(%arg0: i32) -> (i32, i32, i32, i32) {
    %c0_i32 = arith.constant 0 : i32
    %c0_i32_0 = arith.constant 0 : i32
    %c0_i32_1 = arith.constant 0 : i32
    %c0_i32_2 = arith.constant 0 : i32
    %c0_i32_3 = arith.constant 0 : i32
    return %c0_i32, %c0_i32_0, %c0_i32_1, %c0_i32_2 : i32, i32, i32, i32
  }
  func.func @transform_12(%arg0: i32) -> (i32, i32, i32) {
    %c0_i32 = arith.constant 0 : i32
    %c0_i32_0 = arith.constant 0 : i32
    %c0_i32_1 = arith.constant 0 : i32
    %c0_i32_2 = arith.constant 0 : i32
    return %c0_i32, %c0_i32_0, %c0_i32_1 : i32, i32, i32
  }
  func.func @transform_13(%arg0: i32) -> (i32, i32, i32) {
    %c0_i32 = arith.constant 0 : i32
    %c0_i32_0 = arith.constant 0 : i32
    %c0_i32_1 = arith.constant 0 : i32
    %c0_i32_2 = arith.constant 0 : i32
    return %c0_i32, %c0_i32_0, %c0_i32_1 : i32, i32, i32
  }
  func.func @transform_14(%arg0: i32) -> (i32, i32, i32) {
    %c0_i32 = arith.constant 0 : i32
    %c0_i32_0 = arith.constant 0 : i32
    %c0_i32_1 = arith.constant 0 : i32
    %c0_i32_2 = arith.constant 0 : i32
    return %c0_i32, %c0_i32_0, %c0_i32_1 : i32, i32, i32
  }
  func.func @transform_15(%arg0: i32) -> (i32, i32, i32, i32) {
    %c0_i32 = arith.constant 0 : i32
    %c0_i32_0 = arith.constant 0 : i32
    %c0_i32_1 = arith.constant 0 : i32
    %c0_i32_2 = arith.constant 0 : i32
    %c0_i32_3 = arith.constant 0 : i32
    return %c0_i32, %c0_i32_0, %c0_i32_1, %c0_i32_2 : i32, i32, i32, i32
  }
  func.func @transform_16(%arg0: i32) -> (i32, i32, i32) {
    %c0_i32 = arith.constant 0 : i32
    %c0_i32_0 = arith.constant 0 : i32
    %c0_i32_1 = arith.constant 0 : i32
    %c0_i32_2 = arith.constant 0 : i32
    return %c0_i32, %c0_i32_0, %c0_i32_1 : i32, i32, i32
  }
  func.func @transform_17(%arg0: i32) -> (i32, i32, i32) {
    %c0_i32 = arith.constant 0 : i32
    %c0_i32_0 = arith.constant 0 : i32
    %c0_i32_1 = arith.constant 0 : i32
    %c0_i32_2 = arith.constant 0 : i32
    return %c0_i32, %c0_i32_0, %c0_i32_1 : i32, i32, i32
  }
  func.func @transform_18(%arg0: i32) -> (i32, i32, i32) {
    %c0_i32 = arith.constant 0 : i32
    %c0_i32_0 = arith.constant 0 : i32
    %c0_i32_1 = arith.constant 0 : i32
    %c0_i32_2 = arith.constant 0 : i32
    return %c0_i32, %c0_i32_0, %c0_i32_1 : i32, i32, i32
  }
  func.func @transform_19(%arg0: i32) -> (i32, i32, i32) {
    %c0_i32 = arith.constant 0 : i32
    %c0_i32_0 = arith.constant 0 : i32
    %c0_i32_1 = arith.constant 0 : i32
    %c0_i32_2 = arith.constant 0 : i32
    return %c0_i32, %c0_i32_0, %c0_i32_1 : i32, i32, i32
  }
  func.func @transform_20(%arg0: i32) -> (i32, i32, i32) {
    %c0_i32 = arith.constant 0 : i32
    %c0_i32_0 = arith.constant 0 : i32
    %c0_i32_1 = arith.constant 0 : i32
    %c0_i32_2 = arith.constant 0 : i32
    return %c0_i32, %c0_i32_0, %c0_i32_1 : i32, i32, i32
  }
  func.func @transform_21(%arg0: i32) -> (i32, i32, i32) {
    %c0_i32 = arith.constant 0 : i32
    %c0_i32_0 = arith.constant 0 : i32
    %c0_i32_1 = arith.constant 0 : i32
    return %arg0, %c0_i32, %c0_i32_0 : i32, i32, i32
  }
}

</mosaic_0001>

<bundles_post_ra>
// kernel: tpu_custom_call.1
= control target key start
LH: loop header
LB: loop body
LE: loop exit
PB: predicated region body
PF: predicated region fallthrough
CT: control target
= control target key end

     0   :  { %s10967_s0 = inlined_call_operand.vmem [shape: s32[2,16,1], index: 0, kind: input, shape index: {}]   ;;  %s10968_s1 = inlined_call_operand.hbm [shape: f32[2,1,16], index: 1, kind: input, shape index: {}]   ;;  %s10969_s2 = inlined_call_operand.vmem [shape: f32[2,16,1], index: 2, kind: input, shape index: {}]   ;;  %s10970_s3 = inlined_call_operand.hbm [shape: f32[128,128], index: 3, kind: input, shape index: {}]   ;;  %s10971_s4 = inlined_call_operand.hbm [shape: f32[16,128], index: 4, kind: input, shape index: {}]   ;;  %s10972_s5 = inlined_call_operand.vmem [shape: f32[2,2,128,64], index: 5, kind: input, shape index: {}]   ;;  %s10973_s6 = inlined_call_operand.hbm [shape: f32[2,2,1,64], index: 6, kind: input, shape index: {}]   ;;  %s10974_s7 = inlined_call_operand.vmem [shape: f32[2,2,128,64], index: 7, kind: input, shape index: {}]   ;;  %s10975_s8 = inlined_call_operand.hbm [shape: f32[2,2,1,64], index: 8, kind: input, shape index: {}]   ;;  %s10976_s9 = inlined_call_operand.vmem [shape: f32[2,2,128,64], index: 9, kind: input, shape index: {}]   ;;  %s10977_s10 = inlined_call_operand.hbm [shape: f32[2,2,1,64], index: 10, kind: input, shape index: {}]   ;;  %s10978_s11 = inlined_call_operand.hbm [shape: f32[2,2,64,128], index: 11, kind: input, shape index: {}]   ;;  %s10979_s12 = inlined_call_operand.hbm [shape: f32[2,1,128], index: 12, kind: input, shape index: {}]   ;;  %s10980_s13 = inlined_call_operand.hbm [shape: f32[2,1,128], index: 13, kind: input, shape index: {}]   ;;  %s10981_s14 = inlined_call_operand.hbm [shape: f32[2,1,128], index: 14, kind: input, shape index: {}]   ;;  %s10982_s15 = inlined_call_operand.hbm [shape: f32[2,9,128,256], index: 15, kind: input, shape index: {}]   ;;  %s10983_s16 = inlined_call_operand.hbm [shape: f32[2,1,256], index: 16, kind: input, shape index: {}]   ;;  %s10984_s17 = inlined_call_operand.hbm [shape: f32[2,256,128], index: 17, kind: input, shape index: {}]   ;;  %s10985_s18 = inlined_call_operand.hbm [shape: f32[2,1,128], index: 18, kind: input, shape index: {}]   ;;  %s10986_s19 = inlined_call_operand.hbm [shape: f32[2,1,128], index: 19, kind: input, shape index: {}]   ;;  %s10987_s20 = inlined_call_operand.hbm [shape: f32[2,1,128], index: 20, kind: input, shape index: {}]   ;;  %s10988_s21 = inlined_call_operand.hbm [shape: f32[2,16,128], index: 21, kind: output, shape index: {}]  }
   0x1   :  { %11017 = sst [smem:[#allocation45_spill]] %s10967_s0 }
   0x2   :  { %11018 = sst [smem:[#allocation46_spill]] %s10968_s1 }
   0x3   :  { %11019 = sst [smem:[#allocation47_spill]] %s10969_s2 }
   0x4   :  { %11020 = sst [smem:[#allocation48_spill]] %s10970_s3 }
   0x5   :  { %11021 = sst [smem:[#allocation49_spill]] %s10971_s4 }
   0x6   :  { %11022 = sst [smem:[#allocation50_spill]] %s10972_s5 }
   0x7   :  { %11023 = sst [smem:[#allocation51_spill]] %s10973_s6 }
   0x8   :  { %11024 = sst [smem:[#allocation52_spill]] %s10974_s7 }
   0x9   :  { %11025 = sst [smem:[#allocation53_spill]] %s10975_s8 }
   0xa   :  { %11026 = sst [smem:[#allocation54_spill]] %s10976_s9 }
   0xb   :  { %11027 = sst [smem:[#allocation55_spill]] %s10977_s10 }
   0xc   :  { %11028 = sst [smem:[#allocation56_spill]] %s10988_s21 }
   0xd   :  { %26 = vsyncpa [#allocation4], 0 }
   0xe   :  { %28 = vsyncpa [#allocation4 + $0x1], 0 }
   0xf   :  { %29 = vsyncpa [#allocation7], 0 }
  0x10   :  { %30 = vsyncpa [#allocation10], 0 }
  0x11   :  { %31 = vsyncpa [#allocation13], 0 }
  0x12   :  { %32 = vsyncpa [#allocation16], 0 }
  0x13   :  { %33 = vsyncpa [#allocation19], 0 }
  0x14   :  { %34 = vsyncpa [#allocation22], 0 }
  0x15   :  { %35 = vsyncpa [#allocation25], 0 }
  0x16   :  { %36 = vsyncpa [#allocation28], 0 }
  0x17   :  { %37 = vsyncpa [#allocation5], 0 }
  0x18   :  { %39 = vsyncpa [#allocation5 + $0x1], 0  ;;  %s9596_s2 = smov 0   ;;  %s9598_s25 = smov 0  }
  0x19   :  { %s9600_s26 = smov 0   ;;  %s9602_s27 = smov 0  }
  0x1a LB: > { %11029 = sst [smem:[#allocation40_spill]] %s9443_s2  ;;  %s9457_s3 = smov [#allocation6]   ;;  %s9455_s27 = sphi %s9602_s27, %s11096_s27   ;;  %s9451_s26 = sphi %s9600_s26, %s11095_s26   ;;  %s9447_s25 = sphi %s9598_s25, %s11094_s25   ;;  %s9443_s2 = sphi %s9596_s2, %s11093_s2  }
  0x1b   : > { %11030 = sst [smem:[#allocation41_spill]] %s9447_s25  ;;  %s544_s28 = sshll.u32 %s9457_s3, 4  ;;  %s9622_s28 = int_to_ptr.vmem [resolvable:$true] %s544_s28 }
  0x1c   : > { %11031 = sst [smem:[#allocation42_spill]] %s9451_s26  ;;  %s9617_s29 = sadd.s32 4294967295, %s9455_s27  }
  0x1d   : > { %11032 = sst [smem:[#allocation43_spill]] %s9617_s29  ;;  %p6191_p0 = scmp.ge.s32.totalorder %s9455_s27, 1 }
  0x1e   : > { %p11004_p1 = scmp.eq.s32.totalorder %s9617_s29, 0  ;;  %p532_p2 = scmp.lt.s32.totalorder %s9455_s27, 3 }
  0x1f   : > { %s9458_s4 = smov [#allocation9]   ;;  %s9459_s22 = smov [#allocation12]  }
  0x20   : > { %p9624_p3 = pnand %p6191_p0, %p532_p2  ;;  %s573_s30 = sshll.u32 %s9458_s4, 4  ;;  %s9637_s30 = int_to_ptr.vmem [resolvable:$true] %s573_s30 }
  0x21   : > { %s9639_s23 = sshll.u32 %s9459_s22, 4  ;;  %s11036_s3 = sld [smem:[#allocation48_spill]]  ;;  %s606_s23 = int_to_ptr.vmem [resolvable:$true] %s9639_s23 }
  0x22   : > { %s11033_s0 = scalar_select %p9624_p3, 1, 0 }
  0x23   : > { %p8703_p5 = pneg %p9624_p3 }
  0x24   : > { %11034 = sst [smem:[#allocation44_spill]] %s11033_s0 }
  0x25   : > { %p9633_p6 = pnand %p8703_p5, %p11004_p1 }
  0x27   : > { %s8907_s21 = scalar_lea.hbm %s11036_s3, 2048  ;;  %p9649_p8 = pneg %p9633_p6 }
  0x28   : > { %p8908_p7 = scmp.ne.s32.totalorder %s11036_s3, %s8907_s21  ;;  %p8914_p11 = scmp.lt.u32.totalorder %s8907_s21, %s11036_s3 }
  0x2a   : > { %p8910_p9 = pnand %p9649_p8, %p8908_p7 }
  0x2c   : > { %p8911_p10 = pneg %p8910_p9 }
  0x2e   : > { %p8916_p12 = pnand %p8914_p11, %p8911_p10 }
  0x30   : > { %8919 = shalt.err (!%p8916_p12)
}
  0x31   : > { %s8920_s7 = scalar_lea.vmem %s9622_s28, 2048  ;;  %p8928_p5 = scmp.lt.s32.totalorder %s9622_s28, %s9622_s28 }
  0x32   : > { %p8921_p13 = scmp.ne.s32.totalorder %s9622_s28, %s8920_s7  ;;  %p8929_p4 = scmp.lt.s32.totalorder %s8920_s7, %s8920_s7 }
  0x34   : > { %p8923_p0 = pnand %p8921_p13, %p9649_p8  ;;  %p8930_p7 = por %p8929_p4, %p8928_p5 }
  0x36   : > { %p8924_p2 = pneg %p8923_p0 }
  0x38   : > { %p8931_p9 = pnand %p8930_p7, %p8924_p2 }
  0x3a   : > { %8934 = shalt.err (!%p8931_p9)
}
  0x3b   : > { %s11002_s9 = smov 128   ;;  %s11006_s21 = smov 8  }
  0x3c   : > { %8706 = dma.hbm_to_vmem [thread:$0]  (!%p9633_p6), %s11036_s3, 2048, %s9622_s28, [#allocation7], %s11002_s9, %s11002_s9, %s11006_s21  }
  0x3d   : > { %s11038_s6 = sld [smem:[#allocation51_spill]] }
  0x43   : > { %s8935_s7 = scalar_lea.hbm %s11038_s6, 64 }
  0x44   : > { %p8936_p4 = scmp.ne.s32.totalorder %s11038_s6, %s8935_s7  ;;  %p8942_p12 = scmp.lt.u32.totalorder %s8935_s7, %s11038_s6 }
  0x46   : > { %p8938_p10 = pnand %p8936_p4, %p9649_p8 }
  0x48   : > { %p8939_p11 = pneg %p8938_p10 }
  0x4a   : > { %p8944_p13 = pnand %p8942_p12, %p8939_p11 }
  0x4c   : > { %8947 = shalt.err (!%p8944_p13)
}
  0x4d   : > { %s8948_s28 = scalar_lea.vmem %s9637_s30, 64  ;;  %p8956_p7 = scmp.lt.s32.totalorder %s9637_s30, %s9637_s30 }
  0x4e   : > { %p8949_p0 = scmp.ne.s32.totalorder %s9637_s30, %s8948_s28  ;;  %p8957_p9 = scmp.lt.s32.totalorder %s8948_s28, %s8948_s28 }
  0x50   : > { %p8951_p2 = pnand %p8949_p0, %p9649_p8  ;;  %p8958_p4 = por %p8957_p9, %p8956_p7 }
  0x52   : > { %p8952_p5 = pneg %p8951_p2 }
  0x54   : > { %p8959_p10 = pnand %p8958_p4, %p8952_p5 }
  0x56   : > { %8962 = shalt.err (!%p8959_p10)
}
  0x57   : > { %s11009_s2 = smov 16   ;;  %s11011_s25 = smov 1  }
  0x58   : > { %8712 = dma.hbm_to_vmem [thread:$0]  (!%p9633_p6), %s11038_s6, 64, %s9637_s30, [#allocation10], %s11009_s2, %s11009_s2, %s11011_s25  }
  0x59   : > { %s11039_s10 = sld [smem:[#allocation55_spill]] }
  0x5f   : > { %s8963_s24 = scalar_lea.hbm %s11039_s10, 64 }
  0x60   : > { %p8964_p11 = scmp.ne.s32.totalorder %s11039_s10, %s8963_s24  ;;  %p8970_p0 = scmp.lt.u32.totalorder %s8963_s24, %s11039_s10 }
  0x62   : > { %p8966_p12 = pnand %p8964_p11, %p9649_p8 }
  0x64   : > { %p8967_p13 = pneg %p8966_p12 }
  0x66   : > { %p8972_p2 = pnand %p8970_p0, %p8967_p13 }
  0x68   : > { %8975 = shalt.err (!%p8972_p2)
}
  0x69   : > { %s8976_s26 = scalar_lea.vmem %s606_s23, 64  ;;  %p8984_p4 = scmp.lt.s32.totalorder %s606_s23, %s606_s23 }
  0x6a   : > { %p8977_p5 = scmp.ne.s32.totalorder %s606_s23, %s8976_s26  ;;  %p8985_p10 = scmp.lt.s32.totalorder %s8976_s26, %s8976_s26 }
  0x6c   : > { %p8979_p7 = pnand %p8977_p5, %p9649_p8  ;;  %p8986_p1 = por %p8985_p10, %p8984_p4 }
  0x6e   : > { %p8980_p9 = pneg %p8979_p7 }
  0x70   : > { %p8987_p3 = pnand %p8986_p1, %p8980_p9 }
  0x72   : > { %8990 = shalt.err (!%p8987_p3)
}
  0x73   : > { %8718 = dma.hbm_to_vmem [thread:$0]  (!%p9633_p6), %s11039_s10, 64, %s606_s23, [#allocation13], %s11009_s2, %s11009_s2, %s11011_s25  }
  0x74   : > { %s9464_s29 = smov [#allocation15]   ;;  %s9465_s1 = smov [#allocation18]  }
  0x75   : > { %s631_s0 = sshll.u32 %s9464_s29, 4  ;;  %s657_s24 = sshll.u32 %s9465_s1, 4  ;;  %s632_s0 = int_to_ptr.vmem [resolvable:$true] %s631_s0  ;;  %s658_s24 = int_to_ptr.vmem [resolvable:$true] %s657_s24 }
  0x76   : > { %s8991_s28 = scalar_lea.hbm %s10979_s12, 32 }
  0x77   : > { %p8992_p1 = scmp.ne.s32.totalorder %s10979_s12, %s8991_s28  ;;  %p8998_p12 = scmp.lt.u32.totalorder %s8991_s28, %s10979_s12 }
  0x79   : > { %p8994_p3 = pnand %p8992_p1, %p9649_p8 }
  0x7b   : > { %p8995_p11 = pneg %p8994_p3 }
  0x7d   : > { %p9000_p13 = pnand %p8998_p12, %p8995_p11 }
  0x7f   : > { %9003 = shalt.err (!%p9000_p13)
}
  0x80   : > { %s9004_s23 = scalar_lea.vmem %s632_s0, 32  ;;  %p9012_p7 = scmp.lt.s32.totalorder %s632_s0, %s632_s0 }
  0x81   : > { %p9005_p0 = scmp.ne.s32.totalorder %s632_s0, %s9004_s23  ;;  %p9013_p9 = scmp.lt.s32.totalorder %s9004_s23, %s9004_s23 }
  0x83   : > { %p9007_p2 = pnand %p9005_p0, %p9649_p8  ;;  %p9014_p4 = por %p9013_p9, %p9012_p7 }
  0x85   : > { %p9008_p5 = pneg %p9007_p2 }
  0x87   : > { %p9015_p10 = pnand %p9014_p4, %p9008_p5 }
  0x89   : > { %9018 = shalt.err (!%p9015_p10)
}
  0x8a   : > { %8724 = dma.hbm_to_vmem [thread:$0]  (!%p9633_p6), %s10979_s12, 32, %s632_s0, [#allocation16], %s11009_s2, %s11009_s2, %s11011_s25  }
  0x8b   : > { %s9019_s1 = scalar_lea.hbm %s10981_s14, 32 }
  0x8c   : > { %p9020_p1 = scmp.ne.s32.totalorder %s10981_s14, %s9019_s1  ;;  %p9026_p12 = scmp.lt.u32.totalorder %s9019_s1, %s10981_s14 }
  0x8e   : > { %p9022_p3 = pnand %p9020_p1, %p9649_p8 }
  0x90   : > { %p9023_p11 = pneg %p9022_p3 }
  0x92   : > { %p9028_p13 = pnand %p9026_p12, %p9023_p11 }
  0x94   : > { %9031 = shalt.err (!%p9028_p13)
}
  0x95   : > { %s9032_s30 = scalar_lea.vmem %s658_s24, 32  ;;  %p9040_p7 = scmp.lt.s32.totalorder %s658_s24, %s658_s24 }
  0x96   : > { %p9033_p0 = scmp.ne.s32.totalorder %s658_s24, %s9032_s30  ;;  %p9041_p9 = scmp.lt.s32.totalorder %s9032_s30, %s9032_s30 }
  0x98   : > { %p9035_p2 = pnand %p9033_p0, %p9649_p8  ;;  %p9042_p4 = por %p9041_p9, %p9040_p7 }
  0x9a   : > { %p9036_p5 = pneg %p9035_p2 }
  0x9c   : > { %p9043_p10 = pnand %p9042_p4, %p9036_p5 }
  0x9e   : > { %9046 = shalt.err (!%p9043_p10)
}
  0x9f   : > { %8730 = dma.hbm_to_vmem [thread:$0]  (!%p9633_p6), %s10981_s14, 32, %s658_s24, [#allocation19], %s11009_s2, %s11009_s2, %s11011_s25  }
  0xa0   : > { %s9466_s3 = smov [#allocation21]   ;;  %s9047_s1 = scalar_lea.hbm %s10983_s16, 64 }
  0xa1   : > { %s683_s21 = sshll.u32 %s9466_s3, 4  ;;  %p9048_p1 = scmp.ne.s32.totalorder %s10983_s16, %s9047_s1  ;;  %s684_s21 = int_to_ptr.vmem [resolvable:$true] %s683_s21 }
  0xa2   : > { %p9054_p12 = scmp.lt.u32.totalorder %s9047_s1, %s10983_s16 }
  0xa3   : > { %p9050_p3 = pnand %p9048_p1, %p9649_p8 }
  0xa5   : > { %p9051_p11 = pneg %p9050_p3 }
  0xa7   : > { %p9056_p13 = pnand %p9054_p12, %p9051_p11 }
  0xa9   : > { %9059 = shalt.err (!%p9056_p13)
}
  0xaa   : > { %s9060_s24 = scalar_lea.vmem %s684_s21, 64  ;;  %p9068_p7 = scmp.lt.s32.totalorder %s684_s21, %s684_s21 }
  0xab   : > { %p9061_p0 = scmp.ne.s32.totalorder %s684_s21, %s9060_s24  ;;  %p9069_p9 = scmp.lt.s32.totalorder %s9060_s24, %s9060_s24 }
  0xad   : > { %p9063_p2 = pnand %p9061_p0, %p9649_p8  ;;  %p9070_p4 = por %p9069_p9, %p9068_p7 }
  0xaf   : > { %p9064_p5 = pneg %p9063_p2 }
  0xb1   : > { %p9071_p10 = pnand %p9070_p4, %p9064_p5 }
  0xb3   : > { %9074 = shalt.err (!%p9071_p10)
}
  0xb4   : > { %s9467_s30 = smov 32   ;;  %s9468_s0 = smov 2  }
  0xb5   : > { %8736 = dma.hbm_to_vmem [thread:$0]  (!%p9633_p6), %s10983_s16, 64, %s684_s21, [#allocation22], %s9467_s30, %s9467_s30, %s9468_s0  }
  0xb6   : > { %s9469_s9 = smov [#allocation24]   ;;  %s9470_s1 = smov [#allocation8]  }
  0xb7   : > { %s709_s29 = sshll.u32 %s9469_s9, 4  ;;  %s557_s22 = sshll.u32 %s9470_s1, 4  ;;  %s710_s29 = int_to_ptr.vmem [resolvable:$true] %s709_s29  ;;  %s9781_s22 = int_to_ptr.vmem [resolvable:$true] %s557_s22 }
  0xb8   : > { %s9075_s26 = scalar_lea.hbm %s10985_s18, 32 }
  0xb9   : > { %p9076_p1 = scmp.ne.s32.totalorder %s10985_s18, %s9075_s26  ;;  %p9082_p12 = scmp.lt.u32.totalorder %s9075_s26, %s10985_s18 }
  0xbb   : > { %p9078_p3 = pnand %p9076_p1, %p9649_p8 }
  0xbd   : > { %p9079_p11 = pneg %p9078_p3 }
  0xbf   : > { %p9084_p13 = pnand %p9082_p12, %p9079_p11 }
  0xc1   : > { %9087 = shalt.err (!%p9084_p13)
}
  0xc2   : > { %s9088_s30 = scalar_lea.vmem %s710_s29, 32  ;;  %p9096_p7 = scmp.lt.s32.totalorder %s710_s29, %s710_s29 }
  0xc3   : > { %p9089_p0 = scmp.ne.s32.totalorder %s710_s29, %s9088_s30  ;;  %p9097_p9 = scmp.lt.s32.totalorder %s9088_s30, %s9088_s30 }
  0xc5   : > { %p9091_p2 = pnand %p9089_p0, %p9649_p8  ;;  %p9098_p4 = por %p9097_p9, %p9096_p7 }
  0xc7   : > { %p9092_p5 = pneg %p9091_p2 }
  0xc9   : > { %p9099_p10 = pnand %p9098_p4, %p9092_p5 }
  0xcb   : > { %9102 = shalt.err (!%p9099_p10)
}
  0xcc   : > { %s11040_s2 = smov 16   ;;  %s11041_s7 = sld [smem:[#allocation49_spill]] }
  0xcd   : > { %8742 = dma.hbm_to_vmem [thread:$0]  (!%p9633_p6), %s10985_s18, 32, %s710_s29, [#allocation25], %s11040_s2, %s11040_s2, %s11011_s25  }
  0xd2   : > { %s9103_s28 = scalar_lea.hbm %s11041_s7, 256 }
  0xd3   : > { %p9104_p1 = scmp.ne.s32.totalorder %s11041_s7, %s9103_s28  ;;  %p9110_p12 = scmp.lt.u32.totalorder %s9103_s28, %s11041_s7 }
  0xd5   : > { %p9106_p3 = pnand %p9104_p1, %p9649_p8 }
  0xd7   : > { %p9107_p11 = pneg %p9106_p3 }
  0xd9   : > { %p9112_p13 = pnand %p9110_p12, %p9107_p11 }
  0xdb   : > { %9115 = shalt.err (!%p9112_p13)
}
  0xdc   : > { %s9116_s29 = scalar_lea.vmem %s9781_s22, 256  ;;  %p9124_p7 = scmp.lt.s32.totalorder %s9781_s22, %s9781_s22 }
  0xdd   : > { %p9117_p0 = scmp.ne.s32.totalorder %s9781_s22, %s9116_s29  ;;  %p9125_p9 = scmp.lt.s32.totalorder %s9116_s29, %s9116_s29 }
  0xdf   : > { %p9119_p2 = pnand %p9117_p0, %p9649_p8  ;;  %p9126_p4 = por %p9125_p9, %p9124_p7 }
  0xe1   : > { %p9120_p5 = pneg %p9119_p2 }
  0xe3   : > { %p9127_p10 = pnand %p9126_p4, %p9120_p5 }
  0xe5   : > { %9130 = shalt.err (!%p9127_p10)
}
  0xe6   : > { %s11042_s30 = smov 8   ;;  %s11043_s0 = smov 128  }
  0xe7   : > { %8709 = dma.hbm_to_vmem [thread:$0]  (!%p9633_p6), %s11041_s7, 256, %s9781_s22, [#allocation7], %s11043_s0, %s11043_s0, %s11042_s30  }
  0xe8   : > { %s9471_s1 = smov [#allocation11]   ;;  %s9472_s26 = smov [#allocation14]  }
  0xe9   : > { %s589_s28 = sshll.u32 %s9471_s1, 4  ;;  %s618_s24 = sshll.u32 %s9472_s26, 4  ;;  %s590_s28 = int_to_ptr.vmem [resolvable:$true] %s589_s28  ;;  %s9830_s24 = int_to_ptr.vmem [resolvable:$true] %s618_s24 }
  0xea   : > { %s11044_s8 = sld [smem:[#allocation53_spill]] }
  0xf0   : > { %s9131_s29 = scalar_lea.hbm %s11044_s8, 64 }
  0xf1   : > { %p9132_p1 = scmp.ne.s32.totalorder %s11044_s8, %s9131_s29  ;;  %p9138_p12 = scmp.lt.u32.totalorder %s9131_s29, %s11044_s8 }
  0xf3   : > { %p9134_p3 = pnand %p9132_p1, %p9649_p8 }
  0xf5   : > { %p9135_p11 = pneg %p9134_p3 }
  0xf7   : > { %p9140_p13 = pnand %p9138_p12, %p9135_p11 }
  0xf9   : > { %9143 = shalt.err (!%p9140_p13)
}
  0xfa   : > { %s9144_s9 = scalar_lea.vmem %s590_s28, 64  ;;  %p9152_p7 = scmp.lt.s32.totalorder %s590_s28, %s590_s28 }
  0xfb   : > { %p9145_p0 = scmp.ne.s32.totalorder %s590_s28, %s9144_s9  ;;  %p9153_p9 = scmp.lt.s32.totalorder %s9144_s9, %s9144_s9 }
  0xfd   : > { %p9147_p2 = pnand %p9145_p0, %p9649_p8  ;;  %p9154_p4 = por %p9153_p9, %p9152_p7 }
  0xff   : > { %p9148_p5 = pneg %p9147_p2 }
 0x101   : > { %p9155_p10 = pnand %p9154_p4, %p9148_p5 }
 0x103   : > { %9158 = shalt.err (!%p9155_p10)
}
 0x104   : > { %s11045_s6 = smov 1   ;;  %s9159_s21 = scalar_lea.hbm %s10978_s11, 4096 }
 0x105   : > { %8715 = dma.hbm_to_vmem [thread:$0]  (!%p9633_p6), %s11044_s8, 64, %s590_s28, [#allocation10], %s11040_s2, %s11040_s2, %s11045_s6  }
 0x106   : > { %p9160_p1 = scmp.ne.s32.totalorder %s10978_s11, %s9159_s21  ;;  %p9166_p12 = scmp.lt.u32.totalorder %s9159_s21, %s10978_s11 }
 0x108   : > { %p9162_p3 = pnand %p9160_p1, %p9649_p8 }
 0x10a   : > { %p9163_p11 = pneg %p9162_p3 }
 0x10c   : > { %p9168_p13 = pnand %p9166_p12, %p9163_p11 }
 0x10e   : > { %9171 = shalt.err (!%p9168_p13)
}
 0x10f   : > { %s9172_s28 = scalar_lea.vmem %s9830_s24, 4096  ;;  %p9180_p7 = scmp.lt.s32.totalorder %s9830_s24, %s9830_s24 }
 0x110   : > { %p9173_p0 = scmp.ne.s32.totalorder %s9830_s24, %s9172_s28  ;;  %p9181_p9 = scmp.lt.s32.totalorder %s9172_s28, %s9172_s28 }
 0x112   : > { %p9175_p2 = pnand %p9173_p0, %p9649_p8  ;;  %p9182_p4 = por %p9181_p9, %p9180_p7 }
 0x114   : > { %p9176_p5 = pneg %p9175_p2 }
 0x116   : > { %p9183_p10 = pnand %p9182_p4, %p9176_p5 }
 0x118   : > { %9186 = shalt.err (!%p9183_p10)
}
 0x119   : > { %8721 = dma.hbm_to_vmem [thread:$0]  (!%p9633_p6), %s10978_s11, 4096, %s9830_s24, [#allocation13], %s11043_s0, %s11043_s0, %s11042_s30  }
 0x11a   : > { %s9473_s26 = smov [#allocation17]   ;;  %s9474_s21 = smov [#allocation20]  }
 0x11b   : > { %s644_s23 = sshll.u32 %s9473_s26, 4  ;;  %s670_s29 = sshll.u32 %s9474_s21, 4  ;;  %s645_s23 = int_to_ptr.vmem [resolvable:$true] %s644_s23  ;;  %s9879_s29 = int_to_ptr.vmem [resolvable:$true] %s670_s29 }
 0x11c   : > { %s9187_s9 = scalar_lea.hbm %s10980_s13, 32 }
 0x11d   : > { %p9188_p1 = scmp.ne.s32.totalorder %s10980_s13, %s9187_s9  ;;  %p9194_p12 = scmp.lt.u32.totalorder %s9187_s9, %s10980_s13 }
 0x11f   : > { %p9190_p3 = pnand %p9188_p1, %p9649_p8 }
 0x121   : > { %p9191_p11 = pneg %p9190_p3 }
 0x123   : > { %p9196_p13 = pnand %p9194_p12, %p9191_p11 }
 0x125   : > { %9199 = shalt.err (!%p9196_p13)
}
 0x126   : > { %s9200_s1 = scalar_lea.vmem %s645_s23, 32  ;;  %p9208_p7 = scmp.lt.s32.totalorder %s645_s23, %s645_s23 }
 0x127   : > { %p9201_p0 = scmp.ne.s32.totalorder %s645_s23, %s9200_s1  ;;  %p9209_p9 = scmp.lt.s32.totalorder %s9200_s1, %s9200_s1 }
 0x129   : > { %p9203_p2 = pnand %p9201_p0, %p9649_p8  ;;  %p9210_p4 = por %p9209_p9, %p9208_p7 }
 0x12b   : > { %p9204_p5 = pneg %p9203_p2 }
 0x12d   : > { %p9211_p10 = pnand %p9210_p4, %p9204_p5 }
 0x12f   : > { %9214 = shalt.err (!%p9211_p10)
}
 0x130   : > { %8727 = dma.hbm_to_vmem [thread:$0]  (!%p9633_p6), %s10980_s13, 32, %s645_s23, [#allocation16], %s11040_s2, %s11040_s2, %s11045_s6  }
 0x131   : > { %s9215_s22 = scalar_lea.hbm %s10982_s15, 73728 }
 0x132   : > { %p9216_p1 = scmp.ne.s32.totalorder %s10982_s15, %s9215_s22  ;;  %p9222_p12 = scmp.lt.u32.totalorder %s9215_s22, %s10982_s15 }
 0x134   : > { %p9218_p3 = pnand %p9216_p1, %p9649_p8 }
 0x136   : > { %p9219_p11 = pneg %p9218_p3 }
 0x138   : > { %p9224_p13 = pnand %p9222_p12, %p9219_p11 }
 0x13a   : > { %9227 = shalt.err (!%p9224_p13)
}
 0x13b   : > { %s9228_s23 = scalar_lea.vmem %s9879_s29, 73728  ;;  %p9236_p7 = scmp.lt.s32.totalorder %s9879_s29, %s9879_s29 }
 0x13c   : > { %p9229_p0 = scmp.ne.s32.totalorder %s9879_s29, %s9228_s23  ;;  %p9237_p9 = scmp.lt.s32.totalorder %s9228_s23, %s9228_s23 }
 0x13e   : > { %p9231_p2 = pnand %p9229_p0, %p9649_p8  ;;  %p9238_p4 = por %p9237_p9, %p9236_p7 }
 0x140   : > { %p9232_p5 = pneg %p9231_p2 }
 0x142   : > { %p9239_p10 = pnand %p9238_p4, %p9232_p5 }
 0x144   : > { %9242 = shalt.err (!%p9239_p10)
}
 0x145   : > { %s9475_s1 = smov 256   ;;  %s9476_s21 = smov [#allocation23]  }
 0x146   : > { %8733 = dma.hbm_to_vmem [thread:$0]  (!%p9633_p6), %s10982_s15, 73728, %s9879_s29, [#allocation19], %s9475_s1, %s9475_s1, %s11040_s2  }
 0x147   : > { %s696_s3 = sshll.u32 %s9476_s21, 4  ;;  %s9477_s22 = smov [#allocation26]   ;;  %s697_s3 = int_to_ptr.vmem [resolvable:$true] %s696_s3 }
 0x148   : > { %s722_s9 = sshll.u32 %s9477_s22, 4  ;;  %s9243_s24 = scalar_lea.hbm %s10984_s17, 8192  ;;  %s723_s9 = int_to_ptr.vmem [resolvable:$true] %s722_s9 }
 0x149   : > { %p9244_p1 = scmp.ne.s32.totalorder %s10984_s17, %s9243_s24  ;;  %p9250_p12 = scmp.lt.u32.totalorder %s9243_s24, %s10984_s17 }
 0x14b   : > { %p9246_p3 = pnand %p9244_p1, %p9649_p8 }
 0x14d   : > { %p9247_p11 = pneg %p9246_p3 }
 0x14f   : > { %p9252_p13 = pnand %p9250_p12, %p9247_p11 }
 0x151   : > { %9255 = shalt.err (!%p9252_p13)
}
 0x152   : > { %s9256_s29 = scalar_lea.vmem %s697_s3, 8192  ;;  %p9264_p7 = scmp.lt.s32.totalorder %s697_s3, %s697_s3 }
 0x153   : > { %p9257_p0 = scmp.ne.s32.totalorder %s697_s3, %s9256_s29  ;;  %p9265_p9 = scmp.lt.s32.totalorder %s9256_s29, %s9256_s29 }
 0x155   : > { %p9259_p2 = pnand %p9257_p0, %p9649_p8  ;;  %p9266_p4 = por %p9265_p9, %p9264_p7 }
 0x157   : > { %p9260_p5 = pneg %p9259_p2 }
 0x159   : > { %p9267_p10 = pnand %p9266_p4, %p9260_p5 }
 0x15b   : > { %9270 = shalt.err (!%p9267_p10)
}
 0x15c   : > { %8739 = dma.hbm_to_vmem [thread:$0]  (!%p9633_p6), %s10984_s17, 8192, %s697_s3, [#allocation22], %s11043_s0, %s11043_s0, %s11042_s30  }
 0x15d   : > { %s9271_s21 = scalar_lea.hbm %s10986_s19, 32 }
 0x15e   : > { %p9272_p1 = scmp.ne.s32.totalorder %s10986_s19, %s9271_s21  ;;  %p9278_p12 = scmp.lt.u32.totalorder %s9271_s21, %s10986_s19 }
 0x160   : > { %p9274_p3 = pnand %p9272_p1, %p9649_p8 }
 0x162   : > { %p9275_p11 = pneg %p9274_p3 }
 0x164   : > { %p9280_p13 = pnand %p9278_p12, %p9275_p11 }
 0x166   : > { %9283 = shalt.err (!%p9280_p13)
}
 0x167   : > { %s9284_s23 = scalar_lea.vmem %s723_s9, 32  ;;  %p9292_p7 = scmp.lt.s32.totalorder %s723_s9, %s723_s9 }
 0x168   : > { %p9285_p0 = scmp.ne.s32.totalorder %s723_s9, %s9284_s23  ;;  %p9293_p9 = scmp.lt.s32.totalorder %s9284_s23, %s9284_s23 }
 0x16a   : > { %p9287_p2 = pnand %p9285_p0, %p9649_p8  ;;  %p9294_p4 = por %p9293_p9, %p9292_p7 }
 0x16c   : > { %p9288_p5 = pneg %p9287_p2 }
 0x16e   : > { %p9295_p10 = pnand %p9294_p4, %p9288_p5 }
 0x170   : > { %9298 = shalt.err (!%p9295_p10)
}
 0x171   : > { %8745 = dma.hbm_to_vmem [thread:$0]  (!%p9633_p6), %s10986_s19, 32, %s723_s9, [#allocation25], %s11040_s2, %s11040_s2, %s11045_s6  }
 0x172   : > { %s9478_s3 = smov [#allocation27]   ;;  %s9299_s10 = scalar_lea.hbm %s10987_s20, 32 }
 0x173   : > { %s735_s7 = sshll.u32 %s9478_s3, 4  ;;  %p9300_p1 = scmp.ne.s32.totalorder %s10987_s20, %s9299_s10  ;;  %s736_s7 = int_to_ptr.vmem [resolvable:$true] %s735_s7 }
 0x174   : > { %p9306_p12 = scmp.lt.u32.totalorder %s9299_s10, %s10987_s20 }
 0x175   : > { %p9302_p3 = pnand %p9300_p1, %p9649_p8 }
 0x177   : > { %p9303_p11 = pneg %p9302_p3 }
 0x179   : > { %p9308_p13 = pnand %p9306_p12, %p9303_p11 }
 0x17b   : > { %9311 = shalt.err (!%p9308_p13)
}
 0x17c   : > { %s9312_s9 = scalar_lea.vmem %s736_s7, 32  ;;  %p9320_p7 = scmp.lt.s32.totalorder %s736_s7, %s736_s7 }
 0x17d   : > { %p9313_p0 = scmp.ne.s32.totalorder %s736_s7, %s9312_s9  ;;  %p9321_p9 = scmp.lt.s32.totalorder %s9312_s9, %s9312_s9 }
 0x17f   : > { %p9315_p2 = pnand %p9313_p0, %p9649_p8  ;;  %p9322_p4 = por %p9321_p9, %p9320_p7 }
 0x181   : > { %p9316_p5 = pneg %p9315_p2 }
 0x183   : > { %p9323_p10 = pnand %p9322_p4, %p9316_p5 }
 0x185   : > { %9326 = shalt.err (!%p9323_p10)
}
 0x186   : > { %s11046_s24 = sld [smem:[#allocation42_spill]]  ;;  %s11047_s4 = sld [smem:[#allocation41_spill]] }
 0x187   : > { %s11048_s23 = sld [smem:[#allocation40_spill]]  ;;  %s11049_s30 = sld [smem:[#allocation43_spill]] }
 0x188   : > { %8748 = dma.hbm_to_vmem [thread:$0]  (!%p9633_p6), %s10987_s20, 32, %s736_s7, [#allocation28], %s11040_s2, %s11040_s2, %s11045_s6  }
 0x189   : > { %s6190_s5 = sadd.s32 4294967294, %s9455_s27   ;;  %s9991_s0 = sadd.s32 1, %s9455_s27  }
 0x18a   : > { %s75_s3 = ssub.s32 %s9455_s27, %s9991_s0  ;;  %p86_p3 = scmp.eq.s32.totalorder %s9455_s27, 0 }
 0x18b   : > { %p76_p8 = scmp.eq.s32.totalorder %s75_s3, 0  ;;  %p525_p2 = scmp.eq.s32.totalorder %s6190_s5, 1 }
 0x18c   : > { %s78_s29 = sadd.s32 1, %s11046_s24  ;;  %p85_p1 = scmp.ne.s32.totalorder %s11046_s24, %s11047_s4 }
 0x18d   : > { %p91_p11 = scmp.ne.s32.totalorder %s11047_s4, %s11048_s23  ;;  %p11051_p13 = scmp.eq.s32.totalorder %s11049_s30, 0 }
 0x18e   : > { %s10002_s8 = scalar_select %p76_p8, %s11046_s24, %s78_s29  }
 0x18f   : > { %p10004_p12 = por %p86_p3, %p85_p1  ;;  %p10010_p6 = por %p11051_p13, %p91_p11 }
 0x190   : > { %p519_p0 = scmp.eq.s32.totalorder %s11049_s30, 1  ;;  %p8772_p5 = scmp.lt.s32.totalorder %s9455_s27, 2 }
 0x191   : > { %s757_s6 = sand.u32 1, %s11046_s24   ;;  %p10021_p9 = por %p525_p2, %p91_p11 }
 0x192   : > { %p10017_p7 = por %p519_p0, %p85_p1  ;;  %s6208_s26 = sshll.u32 %s9455_s27, 4 }
 0x193   : > { %s11054_s1 = scalar_select %p10021_p9, 1, 0 }
 0x194   : > { %s11053_s7 = scalar_select %p10017_p7, 1, 0 }
 0x195   : > { %s760_s21 = scalar_lea.vmem [#allocation3], %s757_s6  ;;  %s11055_s25 = sld [smem:[#allocation46_spill]] }
 0x196   : > { %s767_s22 = sshll.u32 %s760_s21, 4  ;;  %p10035_p4 = pnand %p8772_p5, %p10004_p12  ;;  %s10031_s22 = int_to_ptr.vmem [resolvable:$true] %s767_s22 }
 0x197   : > { %s758_s30 = scalar_lea.sflag [#allocation4], %s757_s6 }
 0x198   : > { %p9329_p8 = pneg %p10035_p4 }
 0x19b   : > { %s11056_s4 = smov %s11055_s25  ;;  %s10029_s23 = scalar_lea.hbm %s11055_s25, %s6208_s26 }
 0x19c   : > { %s9327_s5 = scalar_lea.hbm %s10029_s23, 16  ;;  %s9332_s26 = scalar_lea.hbm %s11056_s4, 32 }
 0x19d   : > { %p9328_p10 = scmp.ne.s32.totalorder %s10029_s23, %s9327_s5  ;;  %p9333_p11 = scmp.lt.u32.totalorder %s10029_s23, %s11056_s4 }
 0x19e   : > { %p9334_p12 = scmp.lt.u32.totalorder %s9332_s26, %s9327_s5  ;;  %p9336_p0 = scmp.lt.u32.totalorder %s9327_s5, %s10029_s23 }
 0x19f   : > { %p9330_p1 = pnand %p9329_p8, %p9328_p10 }
 0x1a0   : > { %p9335_p13 = por %p9334_p12, %p9333_p11 }
 0x1a1   : > { %p9331_p3 = pneg %p9330_p1 }
 0x1a2   : > { %p9337_p2 = por %p9336_p0, %p9335_p13 }
 0x1a4   : > { %p9338_p5 = pnand %p9337_p2, %p9331_p3 }
 0x1a6   : > { %9341 = shalt.err (!%p9338_p5)
}
 0x1a7   : > { %s9342_s6 = scalar_lea.vmem %s10031_s22, 16  ;;  %s9479_s9 = smov [#allocation3]  }
 0x1a8   : > { %p9343_p10 = scmp.ne.s32.totalorder %s10031_s22, %s9342_s6  ;;  %s9347_s28 = sshll.u32 %s9479_s9, 4  ;;  %s9348_s28 = int_to_ptr.vmem [resolvable:$false] %s9347_s28 }
 0x1a9   : > { %s9349_s25 = scalar_lea.vmem %s9348_s28, 32  ;;  %p9350_p7 = scmp.lt.s32.totalorder %s10031_s22, %s9348_s28 }
 0x1aa   : > { %p9345_p1 = pnand %p9343_p10, %p9329_p8  ;;  %p9351_p11 = scmp.lt.s32.totalorder %s9349_s25, %s9342_s6 }
 0x1ac   : > { %p9346_p9 = pneg %p9345_p1  ;;  %p9352_p12 = por %p9351_p11, %p9350_p7 }
 0x1ae   : > { %p9353_p13 = pnand %p9352_p12, %p9346_p9 }
 0x1b0   : > { %9356 = shalt.err (!%p9353_p13)
}
 0x1b1   : > { %8752 = dma.hbm_to_vmem [thread:$0]  (!%p10035_p4), %s10029_s23, 16, %s10031_s22, %s758_s30  }
 0x1b2   : > { %s11058_s5 = sld [smem:[#allocation44_spill]] }
 0x1b8   : > { %p11059_p3 = scmp.ne.s32.totalorder %s11058_s5, 0 }
 0x1b9   : > { %s11060_s3 = sld [smem:[#allocation41_spill]] (!%p11059_p3) }
 0x1ba   : > { %784 = sbr.rel (%p11059_p3) target bundleno = 7100 (0x1bbc), region = 104 }
 0x1bf   : > { %s10067_s29 = sand.u32 (!%p11059_p3), 1, %s11060_s3  }
 0x1c0   : > { %s787_s26 = scalar_lea.sflag (!%p11059_p3), [#allocation4], %s10067_s29  ;;  %s789_s10 = scalar_lea.vmem (!%p11059_p3), [#allocation3], %s10067_s29 }
 0x1c1   : > { %9402 = dma.done.wait (%p10010_p6), %s787_s26, 16  }
 0x1c2   : > { %9404 = vsyncadd (%p10010_p6), %s787_s26, 4294967280  ;;  %s11061_s24 = sld [smem:[#allocation43_spill]] }
 0x1c8   : > { %p11062_p7 = scmp.eq.s32.totalorder %s11061_s24, 0 }
 0x1ca   : > { %9406 = dma.done.wait (%p11062_p7), [#allocation7], 2304   ;;  %p11063_p9 = pmov %p11062_p7 }
 0x1cb   : > { %p11064_p4 = pmov %p11062_p7 }
 0x1cc   : > { %9408 = vsyncadd (%p11063_p9), [#allocation7], 4294964992 }
 0x1cd   : > { %9410 = dma.done.wait (%p11064_p4), [#allocation10], 128   ;;  %p11065_p8 = pmov %p11064_p4 }
 0x1ce   : > { %p11066_p0 = pmov %p11064_p4 }
 0x1cf   : > { %9412 = vsyncadd (%p11065_p8), [#allocation10], 4294967168 }
 0x1d0   : > { %9414 = dma.done.wait (%p11066_p0), [#allocation13], 4160   ;;  %p11067_p2 = pmov %p11066_p0 }
 0x1d1   : > { %p11068_p6 = pmov %p11066_p0 }
 0x1d2   : > { %9416 = vsyncadd (%p11067_p2), [#allocation13], 4294963136 }
 0x1d3   : > { %9418 = dma.done.wait (%p11068_p6), [#allocation16], 64   ;;  %p11069_p5 = pmov %p11066_p0 }
 0x1d4   : > { %p11070_p10 = pmov %p11066_p0 }
 0x1d5   : > { %9420 = vsyncadd (%p11069_p5), [#allocation16], 4294967232 }
 0x1d6   : > { %9422 = dma.done.wait (%p11070_p10), [#allocation19], 73760   ;;  %p11071_p1 = pmov %p11066_p0 }
 0x1d7   : > { %p11072_p11 = pmov %p11066_p0 }
 0x1d8   : > { %9424 = vsyncadd (%p11071_p1), [#allocation19], 4294893536 }
 0x1d9   : > { %9426 = dma.done.wait (%p11072_p11), [#allocation22], 8256   ;;  %p11073_p12 = pmov %p11066_p0 }
 0x1da   : > { %p11074_p13 = pmov %p11066_p0 }
 0x1db   : > { %9428 = vsyncadd (%p11073_p12), [#allocation22], 4294959040 }
 0x1dc   : > { %9430 = dma.done.wait (%p11074_p13), [#allocation25], 64   ;;  %p11075_p3 = pmov %p11066_p0 }
 0x1dd   : > { %p11076_p7 = pmov %p11066_p0 }
 0x1de   : > { %9432 = vsyncadd (%p11075_p3), [#allocation25], 4294967232 }
 0x1df   : > { %9434 = dma.done.wait (%p11076_p7), [#allocation28], 32   ;;  %p11077_p9 = pmov %p11066_p0 }
 0x1e0   : > { %p917_p4 = scmp.lt.s32.totalorder %s11061_s24, 1  ;;  %v9480_v0 = vmov 0   ;;  %s11078_s21 = sld [smem:[#allocation45_spill]]  ;;  %v943_v2 = vld [vmem:[#allocation6] sm:$0xff]  ;;  %v944_v3 = vld [vmem:[#allocation6 + $0x8] sm:$0xff]  ;;  %v945_v4 = vld [vmem:[#allocation6 + $0x10] sm:$0xff]  ;;  %v929_v30 = vlaneseq }
 0x1e1   : > { %9436 = vsyncadd (%p11077_p9), [#allocation28], 4294967264  ;;  %8848 = vset.pattern.permute.xlu0 %v9480_v0  ;;  %8849 = vset.pattern.permute.xlu1 %v9480_v0  ;;  %v946_v5 = vld [vmem:[#allocation6 + $0x18] sm:$0xff]  ;;  %v7411_v7 = vpack.c.bf16 %v944_v3, %v943_v2  ;;  %v947_v9 = vld [vmem:[#allocation6 + $0x20] sm:$0xff]  ;;  %s11079_s25 = sld [smem:[#allocation50_spill]]  ;;  %v9481_v35 = vmov 1.0  }
 0x1e2   : > { %s10109_s2 = scalar_select %p917_p4, %s11061_s24, 1  ;;  %v7415_v8 = vpack.c.bf16 %v946_v5, %v945_v4  ;;  %v948_v10 = vld [vmem:[#allocation6 + $0x28] sm:$0xff]  ;;  %v949_v12 = vld [vmem:[#allocation6 + $0x30] sm:$0xff]  ;;  %v950_v13 = vld [vmem:[#allocation6 + $0x38] sm:$0xff]  ;;  %v930_v31 = vand.u32 127, %v929_v30  ;;  %vm1338_vm2 = vcmask 523264  }
 0x1e3   : > { %7412 = vmatprep.subr.bf16.mxu0 %v7411_v7  ;;  %v7419_v11 = vpack.c.bf16 %v948_v10, %v947_v9  ;;  %v7423_v14 = vpack.c.bf16 %v950_v13, %v949_v12  ;;  %v951_v15 = vld [vmem:[#allocation6 + $0x40] sm:$0xff]  ;;  %v952_v16 = vld [vmem:[#allocation6 + $0x48] sm:$0xff]  ;;  %v953_v18 = vld [vmem:[#allocation6 + $0x50] sm:$0xff]  ;;  %vm1436_vm4 = vcmask 130048   ;;  %s11086_s9 = sld [smem:[#allocation47_spill]]  ;;  %s6225_s3 = sshll.u32 %s10067_s29, 4 }
 0x1e4   : > { %s11015_s22 = sshll.u32 %s10109_s2, 4  ;;  %7414 = vmatpush3.bf16.msra.mxu0 %v7411_v7  ;;  %v7427_v17 = vpack.c.bf16 %v952_v16, %v951_v15  ;;  %v954_v19 = vld [vmem:[#allocation6 + $0x58] sm:$0xff]  ;;  %v955_v21 = vld [vmem:[#allocation6 + $0x60] sm:$0xff]  ;;  %v956_v22 = vld [vmem:[#allocation6 + $0x68] sm:$0xff]  ;;  %s6441_s26 = sshll.u32 %s11061_s24, 8 }
 0x1e5   : > { %7416 = vmatprep.subr.bf16.mxu0 %v7415_v8  ;;  %v7431_v20 = vpack.c.bf16 %v954_v19, %v953_v18  ;;  %v7435_v23 = vpack.c.bf16 %v956_v22, %v955_v21  ;;  %v957_v24 = vld [vmem:[#allocation6 + $0x70] sm:$0xff]  ;;  %v958_v25 = vld [vmem:[#allocation6 + $0x78] sm:$0xff]  ;;  %v959_v59 = vld [vmem:[#allocation8] sm:$0xff]  ;;  %s916_s23 = scalar_lea.vmem [#allocation29], %s6225_s3  ;;  %p11088_p0 = scmp.ne.s32.totalorder %s11053_s7, 0 }
 0x1e6   : > { %s921_s6 = scalar_lea.vmem %s11078_s21, %s11015_s22  ;;  %v7439_v26 = vpack.c.bf16 %v958_v25, %v957_v24  ;;  %v960_v60 = vld [vmem:[#allocation8 + $0x8] sm:$0xff]  ;;  %s11082_s22 = sld [smem:[#allocation54_spill]]  ;;  %vm10281_vm3 = vmpackc.low %vm1338_vm2, %vm1338_vm2 }
 0x1e7   : > { %v927_v1 = vld [vmem:[%s921_s6] sm:$0xff]  ;;  %v928_v6 = vld [vmem:[%s921_s6 + $0x8] sm:$0xff]  ;;  %s11080_s5 = smov %s11079_s25  ;;  %s11081_s6 = sld [smem:[#allocation52_spill]] }
 0x1e8   : > { %932 = vperm.xlu0 %8848, %v927_v1   ;;  %7418 = vmatpush3.bf16.msra.mxu0 %v7415_v8  ;;  %v1044_v27 = vld [vmem:[%s11079_s25] sm:$0xff]  ;;  %v1045_v28 = vld [vmem:[%s11080_s5 + $0x8] sm:$0xff]  ;;  %v1046_v33 = vld [vmem:[%s11080_s5 + $0x10] sm:$0xff]  ;;  %s9483_s24 = smov [#allocation29]  }
 0x1e9   : > { %7420 = vmatprep.subr.bf16.mxu0 %v7419_v11  ;;  %v7443_v29 = vpack.c.bf16 %v1045_v28, %v1044_v27  ;;  %v1047_v34 = vld [vmem:[%s11080_s5 + $0x18] sm:$0xff]  ;;  %v1048_v38 = vld [vmem:[%s11080_s5 + $0x20] sm:$0xff]  ;;  %v1049_v39 = vld [vmem:[%s11080_s5 + $0x28] sm:$0xff]  ;;  %s9361_s3 = sshll.u32 %s9483_s24, 4  ;;  %s9362_s3 = int_to_ptr.vmem [resolvable:$false] %s9361_s3 }
 0x1ea   : > { %v7447_v37 = vpack.c.bf16 %v1047_v34, %v1046_v33  ;;  %v7451_v40 = vpack.c.bf16 %v1049_v39, %v1048_v38  ;;  %v1050_v41 = vld [vmem:[%s11080_s5 + $0x30] sm:$0xff]  ;;  %v1051_v42 = vld [vmem:[%s11080_s5 + $0x38] sm:$0xff]  ;;  %v1052_v44 = vld [vmem:[%s11080_s5 + $0x40] sm:$0xff]  ;;  %s9363_s30 = scalar_lea.vmem %s9362_s3, 512 }
 0x1eb   : > { %v7455_v43 = vpack.c.bf16 %v1051_v42, %v1050_v41  ;;  %v1053_v45 = vld [vmem:[%s11080_s5 + $0x48] sm:$0xff]  ;;  %v1054_v47 = vld [vmem:[%s11080_s5 + $0x50] sm:$0xff]  ;;  %v1055_v48 = vld [vmem:[%s11080_s5 + $0x58] sm:$0xff] }
 0x1ec   : > { %935 = vperm.xlu0 %8848, %v928_v6   ;;  %7422 = vmatpush3.bf16.msra.mxu0 %v7419_v11  ;;  %v7459_v46 = vpack.c.bf16 %v1053_v45, %v1052_v44  ;;  %v7463_v49 = vpack.c.bf16 %v1055_v48, %v1054_v47  ;;  %v1056_v50 = vld [vmem:[%s11080_s5 + $0x60] sm:$0xff]  ;;  %v1057_v51 = vld [vmem:[%s11080_s5 + $0x68] sm:$0xff]  ;;  %v1058_v53 = vld [vmem:[%s11080_s5 + $0x70] sm:$0xff] }
 0x1ed   : > { %7424 = vmatprep.subr.bf16.mxu0 %v7423_v14  ;;  %v7467_v52 = vpack.c.bf16 %v1057_v51, %v1056_v50  ;;  %v1059_v54 = vld [vmem:[%s11080_s5 + $0x78] sm:$0xff]  ;;  %v1142_v56 = vld [vmem:[%s11081_s6] sm:$0xff]  ;;  %v1143_v57 = vld [vmem:[%s11081_s6 + $0x8] sm:$0xff] }
 0x1ee   : > { %v7471_v55 = vpack.c.bf16 %v1059_v54, %v1058_v53  ;;  %v7475_v58 = vpack.c.bf16 %v1143_v57, %v1142_v56  ;;  %v1144_v62 = vld [vmem:[%s11081_s6 + $0x10] sm:$0xff]  ;;  %v1145_v63 = vld [vmem:[%s11081_s6 + $0x18] sm:$0xff]  ;;  %v1146_v4 = vld [vmem:[%s11081_s6 + $0x20] sm:$0xff] }
 0x1ef   : > { %v7479_v3 = vpack.c.bf16 %v1145_v63, %v1144_v62  ;;  %v1147_v5 = vld [vmem:[%s11081_s6 + $0x28] sm:$0xff]  ;;  %v1148_v7 = vld [vmem:[%s11081_s6 + $0x30] sm:$0xff]  ;;  %v1149_v8 = vld [vmem:[%s11081_s6 + $0x38] sm:$0xff] }
 0x1f0   : > { %7426 = vmatpush3.bf16.msra.mxu0 %v7423_v14  ;;  %v7483_v6 = vpack.c.bf16 %v1147_v5, %v1146_v4  ;;  %v7487_v9 = vpack.c.bf16 %v1149_v8, %v1148_v7  ;;  %v1150_v10 = vld [vmem:[%s11081_s6 + $0x40] sm:$0xff]  ;;  %v1151_v11 = vld [vmem:[%s11081_s6 + $0x48] sm:$0xff]  ;;  %v1152_v13 = vld [vmem:[%s11081_s6 + $0x50] sm:$0xff] }
 0x1f1   : > { %7428 = vmatprep.subr.bf16.mxu0 %v7427_v17  ;;  %v7491_v12 = vpack.c.bf16 %v1151_v11, %v1150_v10  ;;  %v1153_v14 = vld [vmem:[%s11081_s6 + $0x58] sm:$0xff]  ;;  %v1154_v16 = vld [vmem:[%s11081_s6 + $0x60] sm:$0xff]  ;;  %v1156_v19 = vld [vmem:[%s11081_s6 + $0x70] sm:$0xff] }
 0x1f2   : > { %v7495_v15 = vpack.c.bf16 %v1153_v14, %v1152_v13  ;;  %v1240_v22 = vld [vmem:[%s11082_s22] sm:$0xff]  ;;  %v1242_v25 = vld [vmem:[%s11082_s22 + $0x10] sm:$0xff]  ;;  %v1247_v33 = vld [vmem:[%s11082_s22 + $0x38] sm:$0xff] }
 0x1f3   : > { %v1244_v28 = vld [vmem:[%s11082_s22 + $0x20] sm:$0xff]  ;;  %v1250_v38 = vld [vmem:[%s11082_s22 + $0x50] sm:$0xff]  ;;  %v1251_v39 = vld [vmem:[%s11082_s22 + $0x58] sm:$0xff] }
 0x1f4   : > { %7430 = vmatpush3.bf16.msra.mxu0 %v7427_v17  ;;  %v1155_v17 = vld [vmem:[%s11081_s6 + $0x68] sm:$0xff]  ;;  %v1252_v41 = vld [vmem:[%s11082_s22 + $0x60] sm:$0xff]  ;;  %v1254_v44 = vld [vmem:[%s11082_s22 + $0x70] sm:$0xff] }
 0x1f5   : > { %7432 = vmatprep.subr.bf16.mxu0 %v7431_v20  ;;  %v7499_v18 = vpack.c.bf16 %v1155_v17, %v1154_v16  ;;  %v1253_v42 = vld [vmem:[%s11082_s22 + $0x68] sm:$0xff]  ;;  %v1255_v45 = vld [vmem:[%s11082_s22 + $0x78] sm:$0xff]  ;;  %v6234_v47 = vld [vmem:[#allocation9] ss:$0 sm:$0xff] }
 0x1f6   : > { %v6235_v51 = vld [vmem:[#allocation11] ss:$0 sm:$0xff]  ;;  %v6244_v56 = vld [vmem:[%s11080_s5 + $0x88] sm:$0xff]  ;;  %v6246_v62 = vld [vmem:[%s11080_s5 + $0x98] sm:$0xff] }
 0x1f7   : > { %v6248_v4 = vld [vmem:[%s11080_s5 + $0xa8] sm:$0xff]  ;;  %v6250_v7 = vld [vmem:[%s11080_s5 + $0xb8] sm:$0xff] }
 0x1f8   : > { %7434 = vmatpush3.bf16.msra.mxu0 %v7431_v20  ;;  %v1157_v20 = vld [vmem:[%s11081_s6 + $0x78] sm:$0xff]  ;;  %v6252_v10 = vld [vmem:[%s11080_s5 + $0xc8] sm:$0xff] }
 0x1f9   : > { %7436 = vmatprep.subr.bf16.mxu0 %v7435_v23  ;;  %v7503_v21 = vpack.c.bf16 %v1157_v20, %v1156_v19  ;;  %v6254_v13 = vld [vmem:[%s11080_s5 + $0xd8] sm:$0xff]  ;;  %v6256_v16 = vld [vmem:[%s11080_s5 + $0xe8] sm:$0xff] }
 0x1fa   : > { %v6236_v17 = vld [vmem:[#allocation12] ss:$0 sm:$0xff] }
 0x1fc   : > { %7438 = vmatpush3.bf16.msra.mxu0 %v7435_v23  ;;  %v1241_v23 = vld [vmem:[%s11082_s22 + $0x8] sm:$0xff] }
 0x1fd   : > { %7440 = vmatprep.subr.bf16.mxu0 %v7439_v26  ;;  %v7507_v24 = vpack.c.bf16 %v1241_v23, %v1240_v22  ;;  %v6257_v22 = vld [vmem:[%s11080_s5 + $0xf0] sm:$0xff]  ;;  %v6258_v23 = vld [vmem:[%s11080_s5 + $0xf8] sm:$0xff] }
 0x200   : > { %7442 = vmatpush3.bf16.msra.mxu0 %v7439_v26  ;;  %v1243_v26 = vld [vmem:[%s11082_s22 + $0x18] sm:$0xff] }
 0x201   : > { %7444 = vmatprep.subr.bf16.mxu0 %v7443_v29  ;;  %v7511_v27 = vpack.c.bf16 %v1243_v26, %v1242_v25  ;;  %v7577_v26 = vpack.c.bf16 %v6258_v23, %v6257_v22 }
 0x267   : > { %v933_v32 = vpop.permute.xlu0 %932 }
 0x268   : > { %vm937_vm0 = vcmp.eq.s32.totalorder %v933_v32, %v930_v31  ;;  %v1246_v32 = vld [vmem:[%s11082_s22 + $0x30] sm:$0xff] }
 0x269   : > { %6856 = vmatprep.mubr.msk.f32.mxu0 %vm937_vm0, %v9481_v35  ;;  %v7519_v34 = vpack.c.bf16 %v1247_v33, %v1246_v32  ;;  %v6263_v32 = vld [vmem:[%s11081_s6 + $0x98] sm:$0xff] }
 0x26b   : > { %v936_v36 = vpop.permute.xlu0 %935 }
 0x26c   : > { %vm938_vm1 = vcmp.eq.s32.totalorder %v936_v36, %v930_v31  ;;  %v1249_v36 = vld [vmem:[%s11082_s22 + $0x48] sm:$0xff] }
 0x26d   : > { %6857 = vmatmul.mubr.msk.f32.vlgmr.msra.gmra.mrb[0].mxu0 %vm938_vm1, %v9481_v35  ;;  %v1248_v35 = vld [vmem:[%s11082_s22 + $0x40] sm:$0xff] }
 0x26e   : > { %7446 = vmatpush3.bf16.msra.mxu0 %v7443_v29  ;;  %v1245_v29 = vld [vmem:[%s11082_s22 + $0x28] sm:$0xff] }
 0x26f   : > { %7448 = vmatprep.subr.bf16.mxu0 %v7447_v37  ;;  %v7515_v31 = vpack.c.bf16 %v1245_v29, %v1244_v28  ;;  %v6261_v28 = vld [vmem:[%s11081_s6 + $0x88] sm:$0xff] }
 0x272   : > { %7450 = vmatpush3.bf16.msra.mxu0 %v7447_v37  ;;  %v7523_v37 = vpack.c.bf16 %v1249_v36, %v1248_v35  ;;  %v6265_v35 = vld [vmem:[%s11081_s6 + $0xa8] sm:$0xff] }
 0x273   : > { %7452 = vmatprep.subr.bf16.mxu0 %v7451_v40 }
 0x276   : > { %7454 = vmatpush3.bf16.msra.mxu0 %v7451_v40  ;;  %v7527_v40 = vpack.c.bf16 %v1251_v39, %v1250_v38  ;;  %v6267_v38 = vld [vmem:[%s11081_s6 + $0xb8] sm:$0xff] }
 0x277   : > { %7456 = vmatprep.subr.bf16.mxu0 %v7455_v43 }
 0x27a   : > { %7458 = vmatpush3.bf16.msra.mxu0 %v7455_v43  ;;  %v7531_v43 = vpack.c.bf16 %v1253_v42, %v1252_v41  ;;  %v6269_v41 = vld [vmem:[%s11081_s6 + $0xc8] sm:$0xff] }
 0x27b   : > { %7460 = vmatprep.subr.bf16.mxu0 %v7459_v46 }
 0x27e   : > { %7462 = vmatpush3.bf16.msra.mxu0 %v7459_v46  ;;  %v7535_v46 = vpack.c.bf16 %v1255_v45, %v1254_v44  ;;  %v6271_v44 = vld [vmem:[%s11081_s6 + $0xd8] sm:$0xff] }
 0x27f   : > { %7464 = vmatprep.subr.bf16.mxu0 %v7463_v49 }
 0x282   : > { %7466 = vmatpush3.bf16.msra.mxu0 %v7463_v49 }
 0x283   : > { %7468 = vmatprep.subr.bf16.mxu0 %v7467_v52 }
 0x286   : > { %7470 = vmatpush3.bf16.msra.mxu0 %v7467_v52 }
 0x287   : > { %7472 = vmatprep.subr.bf16.mxu0 %v7471_v55 }
 0x28a   : > { %7474 = vmatpush3.bf16.msra.mxu0 %v7471_v55  ;;  %v6243_v55 = vld [vmem:[%s11080_s5 + $0x80] sm:$0xff] }
 0x28b   : > { %7476 = vmatprep.subr.bf16.mxu0 %v7475_v58 }
 0x340   : > { %v6858_v61 = vpop.f32.mrb[0].mxu0 }
 0x341   : > { %v1027_v0 = vpop.f32.mrb[1].mxu0  ;;  %v10180_v2 = vadd.f32 %v6858_v61, %v960_v60  ;;  %v7549_v60 = vpack.c.bf16 %v6244_v56, %v6243_v55  ;;  %v6245_v61 = vld [vmem:[%s11080_s5 + $0x90] sm:$0xff]  ;;  %v6280_v56 = vld [vmem:[%s11082_s22 + $0x98] sm:$0xff] }
 0x342   : > { %v10178_v1 = vadd.f32 %v1027_v0, %v959_v59  ;;  %v7553_v0 = vpack.c.bf16 %v6246_v62, %v6245_v61  ;;  %v6279_v55 = vld [vmem:[%s11082_s22 + $0x90] sm:$0xff] }
 0x343   : > { %v6283_v62 = vld [vmem:[%s11082_s22 + $0xb0] sm:$0xff] }
 0x344   : > { %6891 = vmatprep.mubr.f32.mxu0 %v10178_v1 }
 0x345   : > { %6892 = vmatmul.mubr.f32.vlgmr.msra.gmra.mrb[2].mxu0 %v10180_v2 }
 0x346   : > { %7478 = vmatpush3.bf16.msra.mxu0 %v7475_v58  ;;  %6926 = vmatprep.mubr.f32.mxu0 %v10178_v1 }
 0x347   : > { %7480 = vmatprep.subr.bf16.mxu0 %v7479_v3 }
 0x34a   : > { %7482 = vmatpush3.bf16.msra.mxu0 %v7479_v3  ;;  %v6247_v3 = vld [vmem:[%s11080_s5 + $0xa0] sm:$0xff] }
 0x34b   : > { %7484 = vmatprep.subr.bf16.mxu0 %v7483_v6  ;;  %v7557_v5 = vpack.c.bf16 %v6248_v4, %v6247_v3  ;;  %v6285_v3 = vld [vmem:[%s11082_s22 + $0xc0] sm:$0xff]  ;;  %v6286_v4 = vld [vmem:[%s11082_s22 + $0xc8] sm:$0xff] }
 0x34e   : > { %7486 = vmatpush3.bf16.msra.mxu0 %v7483_v6  ;;  %v6249_v6 = vld [vmem:[%s11080_s5 + $0xb0] sm:$0xff] }
 0x34f   : > { %7488 = vmatprep.subr.bf16.mxu0 %v7487_v9  ;;  %v7561_v8 = vpack.c.bf16 %v6250_v7, %v6249_v6  ;;  %v6287_v6 = vld [vmem:[%s11082_s22 + $0xd0] sm:$0xff]  ;;  %v6288_v7 = vld [vmem:[%s11082_s22 + $0xd8] sm:$0xff] }
 0x352   : > { %7490 = vmatpush3.bf16.msra.mxu0 %v7487_v9  ;;  %v6251_v9 = vld [vmem:[%s11080_s5 + $0xc0] sm:$0xff] }
 0x353   : > { %7492 = vmatprep.subr.bf16.mxu0 %v7491_v12  ;;  %v7565_v11 = vpack.c.bf16 %v6252_v10, %v6251_v9  ;;  %v6289_v9 = vld [vmem:[%s11082_s22 + $0xe0] sm:$0xff]  ;;  %v6290_v10 = vld [vmem:[%s11082_s22 + $0xe8] sm:$0xff] }
 0x356   : > { %7494 = vmatpush3.bf16.msra.mxu0 %v7491_v12  ;;  %v6253_v12 = vld [vmem:[%s11080_s5 + $0xd0] sm:$0xff] }
 0x357   : > { %7496 = vmatprep.subr.bf16.mxu0 %v7495_v15  ;;  %v7569_v14 = vpack.c.bf16 %v6254_v13, %v6253_v12  ;;  %v6291_v12 = vld [vmem:[%s11082_s22 + $0xf0] sm:$0xff]  ;;  %v6292_v13 = vld [vmem:[%s11082_s22 + $0xf8] sm:$0xff] }
 0x35a   : > { %7498 = vmatpush3.bf16.msra.mxu0 %v7495_v15  ;;  %v6255_v15 = vld [vmem:[%s11080_s5 + $0xe0] sm:$0xff] }
 0x35b   : > { %7500 = vmatprep.subr.bf16.mxu0 %v7499_v18  ;;  %v7573_v19 = vpack.c.bf16 %v6256_v16, %v6255_v15  ;;  %v10435_v15 = vshrl.u32 %v929_v30, 7  ;;  %v1036_v16 = vld [vmem:[%s789_s10] sm:$0x1]  ;;  %s11085_s10 = sshll.u32 %s10109_s2, 4 }
 0x35c   : > { %s926_s28 = scalar_lea.vmem %s11086_s9, %s11085_s10  ;;  %s5953_s10 = sshll.u32 %s916_s23, 4  ;;  %s10922_s10 = int_to_ptr.vmem [resolvable:$true] %s5953_s10 }
 0x35d   : > { %s11087_s9 = sld [smem:[#allocation56_spill]]  ;;  %s9357_s25 = scalar_lea.vmem %s10922_s10, 256 }
 0x35e   : > { %7502 = vmatpush3.bf16.msra.mxu0 %v7499_v18  ;;  %p9358_p8 = scmp.ne.s32.totalorder %s10922_s10, %s9357_s25  ;;  %p9364_p5 = scmp.lt.s32.totalorder %s10922_s10, %s9362_s3 }
 0x35f   : > { %7504 = vmatprep.subr.bf16.mxu0 %v7503_v21  ;;  %p9365_p10 = scmp.lt.s32.totalorder %s9363_s30, %s9357_s25 }
 0x360   : > { %p9359_p2 = pnand %p9358_p8, %p11088_p0 }
 0x361   : > { %p9366_p1 = por %p9365_p10, %p9364_p5 }
 0x362   : > { %7506 = vmatpush3.bf16.msra.mxu0 %v7503_v21  ;;  %p9360_p6 = pneg %p9359_p2 }
 0x363   : > { %7508 = vmatprep.subr.bf16.mxu0 %v7507_v24 }
 0x364   : > { %p9367_p11 = pnand %p9366_p1, %p9360_p6 }
 0x365   : > { %6927 = vmatmul.mubr.f32.vlgmr.msra.gmra.mrb[4].mxu0 %v10180_v2 }
 0x366   : > { %7510 = vmatpush3.bf16.msra.mxu0 %v7507_v24  ;;  %6961 = vmatprep.mubr.f32.mxu0 %v10178_v1 }
 0x367   : > { %7512 = vmatprep.subr.bf16.mxu0 %v7511_v27 }
 0x36a   : > { %7514 = vmatpush3.bf16.msra.mxu0 %v7511_v27  ;;  %v6260_v27 = vld [vmem:[%s11081_s6 + $0x80] sm:$0xff] }
 0x36b   : > { %7516 = vmatprep.subr.bf16.mxu0 %v7515_v31  ;;  %v7581_v29 = vpack.c.bf16 %v6261_v28, %v6260_v27  ;;  %v6259_v27 = vld [vmem:[#allocation9 + $0x1] ss:$0 sm:$0xff] }
 0x36e   : > { %7518 = vmatpush3.bf16.msra.mxu0 %v7515_v31  ;;  %v6262_v31 = vld [vmem:[%s11081_s6 + $0x90] sm:$0xff] }
 0x36f   : > { %7520 = vmatprep.subr.bf16.mxu0 %v7519_v34  ;;  %v7585_v33 = vpack.c.bf16 %v6263_v32, %v6262_v31  ;;  %v6276_v32 = vld [vmem:[#allocation11 + $0x1] ss:$0 sm:$0xff] }
 0x372   : > { %7522 = vmatpush3.bf16.msra.mxu0 %v7519_v34  ;;  %v6264_v34 = vld [vmem:[%s11081_s6 + $0xa0] sm:$0xff] }
 0x373   : > { %7524 = vmatprep.subr.bf16.mxu0 %v7523_v37  ;;  %v7589_v36 = vpack.c.bf16 %v6265_v35, %v6264_v34 }
 0x376   : > { %7526 = vmatpush3.bf16.msra.mxu0 %v7523_v37  ;;  %v6266_v37 = vld [vmem:[%s11081_s6 + $0xb0] sm:$0xff] }
 0x377   : > { %7528 = vmatprep.subr.bf16.mxu0 %v7527_v40  ;;  %v7593_v39 = vpack.c.bf16 %v6267_v38, %v6266_v37 }
 0x37a   : > { %7530 = vmatpush3.bf16.msra.mxu0 %v7527_v40  ;;  %v6268_v40 = vld [vmem:[%s11081_s6 + $0xc0] sm:$0xff] }
 0x37b   : > { %7532 = vmatprep.subr.bf16.mxu0 %v7531_v43  ;;  %v7597_v42 = vpack.c.bf16 %v6269_v41, %v6268_v40 }
 0x37e   : > { %7534 = vmatpush3.bf16.msra.mxu0 %v7531_v43  ;;  %v6270_v43 = vld [vmem:[%s11081_s6 + $0xd0] sm:$0xff] }
 0x37f   : > { %7536 = vmatprep.subr.bf16.mxu0 %v7535_v46  ;;  %v7601_v45 = vpack.c.bf16 %v6271_v44, %v6270_v43 }
 0x382   : > { %7538 = vmatpush3.bf16.msra.mxu0 %v7535_v46  ;;  %v6272_v46 = vld [vmem:[%s11081_s6 + $0xe0] sm:$0xff] }
 0x385   : > { %6962 = vmatmul.mubr.f32.vlgmr.msra.gmra.mrb[6].mxu0 %v10180_v2 }
 0x418   : > { %v6893_v48 = vpop.f32.mrb[2].mxu0 }
 0x419   : > { %v1133_v49 = vpop.f32.mrb[3].mxu0  ;;  %v1139_v63 = vadd.f32 %v6893_v48, %v6234_v47 }
 0x41a   : > { %v1134_v50 = vadd.f32 %v6234_v47, %v1133_v49  ;;  %v6273_v47 = vld [vmem:[%s11081_s6 + $0xe8] sm:$0xff]  ;;  %v6274_v49 = vld [vmem:[%s11081_s6 + $0xf0] sm:$0xff] }
 0x41b   : > { %v7605_v48 = vpack.c.bf16 %v6273_v47, %v6272_v46 }
 0x41c   : > { %6968 = vmatprep.mubr.msk.f32.mxu0 %vm1338_vm2, %v1134_v50  ;;  %v6275_v50 = vld [vmem:[%s11081_s6 + $0xf8] sm:$0xff] }
 0x438   : > { %v6928_v52 = vpop.f32.mrb[4].mxu0 }
 0x439   : > { %v1237_v53 = vadd.f32 %v6928_v52, %v6235_v51  ;;  %v1231_v54 = vpop.f32.mrb[5].mxu0  ;;  %v6277_v52 = vld [vmem:[%s11082_s22 + $0x80] sm:$0xff] }
 0x43a   : > { %v1232_v57 = vadd.f32 %v6235_v51, %v1231_v54  ;;  %v7609_v51 = vpack.c.bf16 %v6275_v50, %v6274_v49 }
 0x43c   : > { %v7539_v59 = vpack.c.bf16 %v1237_v53, %v1232_v57  ;;  %v6278_v53 = vld [vmem:[%s11082_s22 + $0x88] sm:$0xff]  ;;  %v7617_v57 = vpack.c.bf16 %v6280_v56, %v6279_v55 }
 0x43d   : > { %v7613_v54 = vpack.c.bf16 %v6278_v53, %v6277_v52 }
 0x43e   : > { %7541 = vmatprep.subr.msk.bf16.mxu0 %vm10281_vm3, %v7539_v59 }
 0x43f   : > { %7544 = vmatpush3.bf16.xpose.msk.msra.mxu0 %vm10281_vm3, %v7539_v59  ;;  %v6281_v59 = vld [vmem:[%s11082_s22 + $0xa0] sm:$0xff] }
 0x440   : > { %7550 = vmatprep.subr.bf16.mxu0 %v7549_v60 }
 0x446   : > { %6969 = vmatmul.mubr.msk.f32.vlgmr.msra.gmra.mrb[8].mxu0 %vm1338_vm2, %v1139_v63  ;;  %v6284_v63 = vld [vmem:[%s11082_s22 + $0xb8] sm:$0xff] }
 0x447   : > { %7552 = vmatpush3.bf16.msra.mxu0 %v7549_v60  ;;  %7010 = vmatprep.mubr.f32.mxu0 %v10178_v1  ;;  %v6282_v60 = vld [vmem:[%s11082_s22 + $0xa8] sm:$0xff] }
 0x448   : > { %7554 = vmatprep.subr.bf16.mxu0 %v7553_v0  ;;  %v7621_v61 = vpack.c.bf16 %v6282_v60, %v6281_v59 }
 0x44b   : > { %7556 = vmatpush3.bf16.msra.mxu0 %v7553_v0  ;;  %v7625_v0 = vpack.c.bf16 %v6284_v63, %v6283_v62 }
 0x44c   : > { %7558 = vmatprep.subr.bf16.mxu0 %v7557_v5 }
 0x44f   : > { %7560 = vmatpush3.bf16.msra.mxu0 %v7557_v5  ;;  %v7629_v5 = vpack.c.bf16 %v6286_v4, %v6285_v3 }
 0x450   : > { %7562 = vmatprep.subr.bf16.mxu0 %v7561_v8 }
 0x453   : > { %7564 = vmatpush3.bf16.msra.mxu0 %v7561_v8  ;;  %v7633_v8 = vpack.c.bf16 %v6288_v7, %v6287_v6 }
 0x454   : > { %7566 = vmatprep.subr.bf16.mxu0 %v7565_v11 }
 0x457   : > { %7568 = vmatpush3.bf16.msra.mxu0 %v7565_v11  ;;  %v7637_v11 = vpack.c.bf16 %v6290_v10, %v6289_v9 }
 0x458   : > { %v6963_v18 = vpop.f32.mrb[6].mxu0  ;;  %7570 = vmatprep.subr.bf16.mxu0 %v7569_v14 }
 0x459   : > { %v1335_v20 = vadd.f32 %v6963_v18, %v6236_v17  ;;  %v1329_v21 = vpop.f32.mrb[7].mxu0  ;;  %v10440_v18 = vsub.s32 0, %v10435_v15 }
 0x45a   : > { %v1330_v24 = vadd.f32 %v6236_v17, %v1329_v21  ;;  %v1037_v17 = vmul.f32 -1e+09, %v1036_v16 }
 0x45b   : > { %7572 = vmatpush3.bf16.msra.mxu0 %v7569_v14  ;;  %v7641_v14 = vpack.c.bf16 %v6292_v13, %v6291_v12 }
 0x45c   : > { %v7545_v25 = vpack.c.bf16 %v1335_v20, %v1330_v24  ;;  %7574 = vmatprep.subr.bf16.mxu0 %v7573_v19 }
 0x45e   : > { %7546 = vmatprep.subr.bf16.mxu1 %v7545_v25 }
 0x45f   : > { %7548 = vmatpush3.bf16.msra.mxu1 %v7545_v25  ;;  %7576 = vmatpush3.bf16.msra.mxu0 %v7573_v19  ;;  %v10443_v19 = vrot.slane %v1037_v17, %v10440_v18 }
 0x460   : > { %7578 = vmatprep.subr.bf16.mxu0 %v7577_v26 }
 0x463   : > { %7580 = vmatpush3.bf16.msra.mxu0 %v7577_v26 }
 0x464   : > { %7582 = vmatprep.subr.bf16.mxu0 %v7581_v29 }
 0x466   : > { %7011 = vmatmul.mubr.f32.vlgmr.msra.gmra.mrb[10].mxu0 %v10180_v2 }
 0x467   : > { %7584 = vmatpush3.bf16.msra.mxu0 %v7581_v29  ;;  %7045 = vmatprep.mubr.f32.mxu0 %v10178_v1 }
 0x468   : > { %7586 = vmatprep.subr.bf16.mxu0 %v7585_v33 }
 0x46b   : > { %7588 = vmatpush3.bf16.msra.mxu0 %v7585_v33 }
 0x46c   : > { %7590 = vmatprep.subr.bf16.mxu0 %v7589_v36 }
 0x46f   : > { %7592 = vmatpush3.bf16.msra.mxu0 %v7589_v36 }
 0x470   : > { %7594 = vmatprep.subr.bf16.mxu0 %v7593_v39 }
 0x473   : > { %7596 = vmatpush3.bf16.msra.mxu0 %v7593_v39  ;;  %v6293_v39 = vld [vmem:[#allocation12 + $0x1] ss:$0 sm:$0xff] }
 0x474   : > { %7598 = vmatprep.subr.bf16.mxu0 %v7597_v42 }
 0x477   : > { %7600 = vmatpush3.bf16.msra.mxu0 %v7597_v42 }
 0x478   : > { %7602 = vmatprep.subr.bf16.mxu0 %v7601_v45 }
 0x47b   : > { %7604 = vmatpush3.bf16.msra.mxu0 %v7601_v45 }
 0x47c   : > { %7606 = vmatprep.subr.bf16.mxu0 %v7605_v48 }
 0x47f   : > { %7608 = vmatpush3.bf16.msra.mxu0 %v7605_v48 }
 0x480   : > { %7610 = vmatprep.subr.bf16.mxu0 %v7609_v51 }
 0x483   : > { %7612 = vmatpush3.bf16.msra.mxu0 %v7609_v51 }
 0x484   : > { %7614 = vmatprep.subr.bf16.mxu0 %v7613_v54 }
 0x486   : > { %7046 = vmatmul.mubr.f32.vlgmr.msra.gmra.mrb[12].mxu0 %v10180_v2 }
 0x487   : > { %7616 = vmatpush3.bf16.msra.mxu0 %v7613_v54  ;;  %7080 = vmatprep.mubr.f32.mxu0 %v10178_v1 }
 0x488   : > { %7618 = vmatprep.subr.bf16.mxu0 %v7617_v57 }
 0x48b   : > { %7620 = vmatpush3.bf16.msra.mxu0 %v7617_v57 }
 0x48c   : > { %7622 = vmatprep.subr.bf16.mxu0 %v7621_v61 }
 0x48f   : > { %7624 = vmatpush3.bf16.msra.mxu0 %v7621_v61 }
 0x490   : > { %7626 = vmatprep.subr.bf16.mxu0 %v7625_v0 }
 0x493   : > { %7628 = vmatpush3.bf16.msra.mxu0 %v7625_v0 }
 0x494   : > { %7630 = vmatprep.subr.bf16.mxu0 %v7629_v5 }
 0x497   : > { %7632 = vmatpush3.bf16.msra.mxu0 %v7629_v5 }
 0x498   : > { %7634 = vmatprep.subr.bf16.mxu0 %v7633_v8 }
 0x49b   : > { %7636 = vmatpush3.bf16.msra.mxu0 %v7633_v8 }
 0x49c   : > { %7638 = vmatprep.subr.bf16.mxu0 %v7637_v11 }
 0x49f   : > { %7640 = vmatpush3.bf16.msra.mxu0 %v7637_v11 }
 0x4a0   : > { %7642 = vmatprep.subr.bf16.mxu0 %v7641_v14 }
 0x4a3   : > { %7644 = vmatpush3.bf16.msra.mxu0 %v7641_v14 }
 0x4a6   : > { %7081 = vmatmul.mubr.f32.vlgmr.msra.gmra.mrb[14].mxu0 %v10180_v2 }
 0x519   : > { %v6970_v20 = vpop.f32.mrb[8].mxu0 }
 0x51a   : > { %v1417_v21 = vpop.f32.mrb[9].mxu0  ;;  %v1427_v22 = vmul.f32 0.125, %v6970_v20 }
 0x51b   : > { %v1426_v23 = vmul.f32 0.125, %v1417_v21  ;;  %v2043_v21 = vld [vmem:[#allocation14 + $0x40] sm:$0xff] }
 0x51c   : > { %v1435_v30 = vadd.f32 %v10443_v19, %v1427_v22  ;;  %v2044_v22 = vld [vmem:[#allocation14 + $0x48] sm:$0xff] }
 0x51d   : > { %v1434_v24 = vadd.f32 %v10443_v19, %v1426_v23  ;;  %v2045_v23 = vld [vmem:[#allocation14 + $0x50] sm:$0xff] }
 0x51e   : > { %v1440_v26 = vsel %vm1436_vm4, %v1435_v30, -inf }
 0x51f   : > { %v1437_v25 = vsel %vm1436_vm4, %v1434_v24, -inf }
 0x520   : > { %1438 = vmax.xlane.f32.xlu1 %v1437_v25  ;;  %v2046_v25 = vld [vmem:[#allocation14 + $0x58] sm:$0xff] }
 0x524   : > { %1441 = vmax.xlane.f32.xlu1 %v1440_v26  ;;  %v2047_v26 = vld [vmem:[#allocation14 + $0x60] sm:$0xff] }
 0x539   : > { %v7012_v28 = vpop.f32.mrb[10].mxu0 }
 0x53a   : > { %v1639_v29 = vpop.f32.mrb[11].mxu0  ;;  %v1645_v38 = vadd.f32 %v7012_v28, %v6259_v27 }
 0x53b   : > { %v1640_v31 = vadd.f32 %v6259_v27, %v1639_v29  ;;  %v2048_v27 = vld [vmem:[#allocation14 + $0x68] sm:$0xff]  ;;  %v2049_v29 = vld [vmem:[#allocation14 + $0x70] sm:$0xff] }
 0x53c   : > { %v7663_v28 = vpack.c.bf16 %v2048_v27, %v2047_v26  ;;  %v2326_v26 = vld [vmem:[#allocation20 + $0x150] sm:$0xff] }
 0x53d   : > { %7087 = vmatprep.mubr.msk.f32.mxu0 %vm1338_vm2, %v1640_v31  ;;  %v2050_v31 = vld [vmem:[#allocation14 + $0x78] sm:$0xff] }
 0x559   : > { %v7047_v33 = vpop.f32.mrb[12].mxu0 }
 0x55a   : > { %v1745_v34 = vadd.f32 %v7047_v33, %v6276_v32  ;;  %v1739_v35 = vpop.f32.mrb[13].mxu0 }
 0x55b   : > { %v1740_v36 = vadd.f32 %v6276_v32, %v1739_v35  ;;  %v7667_v32 = vpack.c.bf16 %v2050_v31, %v2049_v29  ;;  %v2331_v29 = vld [vmem:[#allocation20 + $0x178] sm:$0xff]  ;;  %v2328_v31 = vld [vmem:[#allocation20 + $0x160] sm:$0xff] }
 0x55d   : > { %v7645_v37 = vpack.c.bf16 %v1745_v34, %v1740_v36 }
 0x55f   : > { %7647 = vmatprep.subr.msk.bf16.mxu0 %vm10281_vm3, %v7645_v37 }
 0x560   : > { %7650 = vmatpush3.bf16.xpose.msk.msra.mxu0 %vm10281_vm3, %v7645_v37 }
 0x567   : > { %7088 = vmatmul.mubr.msk.f32.vlgmr.msra.gmra.mrb[16].mxu0 %vm1338_vm2, %v1645_v38 }
 0x579   : > { %v7082_v40 = vpop.f32.mrb[14].mxu0 }
 0x57a   : > { %v1845_v41 = vadd.f32 %v7082_v40, %v6293_v39  ;;  %v1839_v42 = vpop.f32.mrb[15].mxu0 }
 0x57b   : > { %v1840_v43 = vadd.f32 %v6293_v39, %v1839_v42  ;;  %v1541_v42 = vld [vmem:[#allocation14 + $0x8] sm:$0xff] }
 0x57d   : > { %v7651_v44 = vpack.c.bf16 %v1845_v41, %v1840_v43  ;;  %v1540_v41 = vld [vmem:[#allocation14] sm:$0xff] }
 0x57e   : > { %v7671_v43 = vpack.c.bf16 %v1541_v42, %v1540_v41  ;;  %v2334_v41 = vld [vmem:[#allocation20 + $0x190] sm:$0xff] }
 0x57f   : > { %7652 = vmatprep.subr.bf16.mxu1 %v7651_v44 }
 0x5ad   : > { %v1439_v45 = vpop.xlane.xlu1 %1438 }
 0x5ae   : > { %v1443_v46 = vsub.f32 %v1434_v24, %v1439_v45  ;;  %v7655_v24 = vpack.c.bf16 %v2044_v22, %v2043_v21  ;;  %v1543_v45 = vld [vmem:[#allocation14 + $0x18] sm:$0xff] }
 0x5af   : > { %v2322_v21 = vld [vmem:[#allocation20 + $0x130] sm:$0xff] }
 0x5b0   : > { %v1445_v48 = vmul.f32 1.442695, %v1443_v46  ;;  %7656 = vmatprep.subr.bf16.mxu0 %v7655_v24 }
 0x5b1   : > { %v1442_v47 = vpop.xlane.xlu1 %1441  ;;  %7658 = vmatpush3.bf16.msra.mxu0 %v7655_v24  ;;  %v2327_v24 = vld [vmem:[#allocation20 + $0x158] sm:$0xff] }
 0x5b2   : > { %v1444_v49 = vsub.f32 %v1435_v30, %v1442_v47  ;;  %8850 = vpow2.f32 %v1445_v48  ;;  %v7659_v30 = vpack.c.bf16 %v2046_v25, %v2045_v23  ;;  %v2325_v23 = vld [vmem:[#allocation20 + $0x148] sm:$0xff] }
 0x5b3   : > { %v7695_v25 = vpack.c.bf16 %v2327_v24, %v2325_v23 }
 0x5b4   : > { %v1447_v50 = vmul.f32 1.442695, %v1444_v49  ;;  %7660 = vmatprep.subr.bf16.mxu0 %v7659_v30  ;;  %v1544_v49 = vld [vmem:[#allocation14 + $0x20] sm:$0xff] }
 0x5b5   : > { %7662 = vmatpush3.bf16.msra.mxu0 %v7659_v30  ;;  %v2324_v30 = vld [vmem:[#allocation20 + $0x140] sm:$0xff] }
 0x5b6   : > { %8852 = vpow2.f32 %v1447_v50  ;;  %7664 = vmatprep.subr.bf16.mxu0 %v7663_v28  ;;  %v1545_v50 = vld [vmem:[#allocation14 + $0x28] sm:$0xff]  ;;  %v7697_v27 = vpack.c.bf16 %v2326_v26, %v2324_v30  ;;  %v2283_v30 = vld [vmem:[#allocation20 + $0x10] sm:$0xff] }
 0x5b7   : > { %v2286_v26 = vld [vmem:[#allocation20 + $0x28] sm:$0xff] }
 0x5b9   : > { %7666 = vmatpush3.bf16.msra.mxu0 %v7663_v28  ;;  %v2329_v28 = vld [vmem:[#allocation20 + $0x168] sm:$0xff] }
 0x5ba   : > { %7668 = vmatprep.subr.bf16.mxu0 %v7667_v32 }
 0x5bc   : > { %v8851_v59 = vpop.eup %8850 }
 0x5bd   : > { %v1449_v61 = vsel %vm1436_vm4, %v8851_v59, 0.0  ;;  %7670 = vmatpush3.bf16.msra.mxu0 %v7667_v32  ;;  %v1039_v32 = vld [vmem:[%s926_s28 + $0x8] sm:$0xff] }
 0x5be   : > { %7672 = vmatprep.subr.bf16.mxu0 %v7671_v43 }
 0x5c0   : > { %v8853_v62 = vpop.eup %8852 }
 0x5c1   : > { %v1452_v63 = vsel %vm1436_vm4, %v8853_v62, 0.0 }
 0x63a   : > { %v7089_v51 = vpop.f32.mrb[16].mxu0 }
 0x63b   : > { %v1936_v52 = vmul.f32 0.125, %v7089_v51  ;;  %v1926_v53 = vpop.f32.mrb[17].mxu0  ;;  %v7679_v51 = vpack.c.bf16 %v1545_v50, %v1544_v49  ;;  %v2341_v49 = vld [vmem:[#allocation20 + $0x1c8] sm:$0xff]  ;;  %v2343_v50 = vld [vmem:[#allocation20 + $0x1d8] sm:$0xff] }
 0x63c   : > { %v1935_v54 = vmul.f32 0.125, %v1926_v53  ;;  %v1547_v53 = vld [vmem:[#allocation14 + $0x38] sm:$0xff] }
 0x63d   : > { %v1938_v55 = vadd.f32 %v1936_v52, %v10443_v19  ;;  %v1546_v52 = vld [vmem:[#allocation14 + $0x30] sm:$0xff] }
 0x63e   : > { %v1937_v56 = vadd.f32 %v1935_v54, %v10443_v19  ;;  %v7683_v54 = vpack.c.bf16 %v1547_v53, %v1546_v52  ;;  %v2340_v52 = vld [vmem:[#allocation20 + $0x1c0] sm:$0xff]  ;;  %v2342_v53 = vld [vmem:[#allocation20 + $0x1d0] sm:$0xff] }
 0x63f   : > { %v1942_v57 = vsel %vm1436_vm4, %v1938_v55, -inf }
 0x640   : > { %1943 = vmax.xlane.f32.xlu1 %v1942_v57  ;;  %v1939_v60 = vsel %vm1436_vm4, %v1937_v56, -inf }
 0x641   : > { %1940 = vmax.xlane.f32.xlu0 %v1939_v60 }
 0x644   : > { %1450 = vadd.xlane.f32.xlu1 %v1449_v61 }
 0x648   : > { %1453 = vadd.xlane.f32.xlu1 %v1452_v63  ;;  %v2317_v63 = vld [vmem:[#allocation20 + $0x108] sm:$0xff] }
 0x6cd   : > { %v1944_v0 = vpop.xlane.xlu1 %1943 }
 0x6ce   : > { %v1946_v3 = vsub.f32 %v1938_v55, %v1944_v0  ;;  %v1941_v4 = vpop.xlane.xlu0 %1940  ;;  %v6304_v55 = vld [vmem:[#allocation15] ss:$0 sm:$0xff] }
 0x6cf   : > { %v1945_v5 = vsub.f32 %v1937_v56, %v1941_v4  ;;  %v2319_v0 = vld [vmem:[#allocation20 + $0x118] sm:$0xff]  ;;  %v2316_v4 = vld [vmem:[#allocation20 + $0x100] sm:$0xff] }
 0x6d0   : > { %v1949_v6 = vmul.f32 1.442695, %v1946_v3  ;;  %v7687_v3 = vpack.c.bf16 %v2319_v0, %v2317_v63  ;;  %v2284_v63 = vld [vmem:[#allocation20 + $0x18] sm:$0xff] }
 0x6d1   : > { %v1947_v7 = vmul.f32 1.442695, %v1945_v5  ;;  %v1451_v8 = vpop.xlane.xlu1 %1450  ;;  %v2318_v5 = vld [vmem:[#allocation20 + $0x110] sm:$0xff] }
 0x6d3   : > { %8854 = vpow2.f32 %v1947_v7 }
 0x6d4   : > { %8856 = vrcp.f32 %v1451_v8 }
 0x6d5   : > { %8858 = vpow2.f32 %v1949_v6  ;;  %v1454_v9 = vpop.xlane.xlu1 %1453  ;;  %v7689_v6 = vpack.c.bf16 %v2318_v5, %v2316_v4 }
 0x6d6   : > { %8860 = vrcp.f32 %v1454_v9 }
 0x6dd   : > { %v8855_v10 = vpop.eup %8854 }
 0x6de   : > { %v8857_v11 = vpop.eup %8856  ;;  %v1951_v12 = vsel %vm1436_vm4, %v8855_v10, 0.0 }
 0x6df   : > { %v8859_v13 = vpop.eup %8858  ;;  %1952 = vadd.xlane.f32.xlu1 %v1951_v12  ;;  %v1456_v14 = vmul.f32 %v8857_v11, %v8851_v59 }
 0x6e0   : > { %v8861_v16 = vpop.eup %8860  ;;  %v1954_v20 = vsel %vm1436_vm4, %v8859_v13, 0.0 }
 0x6e1   : > { %6975 = vmatprep.mubr.msk.f32.mxu1 %vm1436_vm4, %v1456_v14  ;;  %v1458_v17 = vmul.f32 %v8861_v16, %v8853_v62  ;;  %v2321_v14 = vld [vmem:[#allocation20 + $0x128] sm:$0xff]  ;;  %v2323_v16 = vld [vmem:[#allocation20 + $0x138] sm:$0xff] }
 0x6e3   : > { %1955 = vadd.xlane.f32.xlu1 %v1954_v20  ;;  %6976 = vmatmul.mubr.msk.f32.vlgmr.msra.gmra.mrb[0].mxu1 %vm1436_vm4, %v1458_v17  ;;  %v7691_v17 = vpack.c.bf16 %v2323_v16, %v2321_v14  ;;  %v2320_v20 = vld [vmem:[#allocation20 + $0x120] sm:$0xff] }
 0x6e4   : > { %7654 = vmatpush3.bf16.msra.mxu1 %v7651_v44  ;;  %v1542_v44 = vld [vmem:[#allocation14 + $0x10] sm:$0xff]  ;;  %v7693_v22 = vpack.c.bf16 %v2322_v21, %v2320_v20 }
 0x6e5   : > { %v7675_v48 = vpack.c.bf16 %v1543_v45, %v1542_v44  ;;  %7688 = vmatprep.subr.bf16.mxu1 %v7687_v3  ;;  %v2339_v44 = vld [vmem:[#allocation20 + $0x1b8] sm:$0xff] }
 0x76c   : > { %v1953_v33 = vpop.xlane.xlu1 %1952 }
 0x76d   : > { %8862 = vrcp.f32 %v1953_v33  ;;  %v7699_v33 = vpack.c.bf16 %v2331_v29, %v2329_v28  ;;  %v2285_v29 = vld [vmem:[#allocation20 + $0x20] sm:$0xff] }
 0x770   : > { %v1956_v34 = vpop.xlane.xlu1 %1955 }
 0x771   : > { %8864 = vrcp.f32 %v1956_v34  ;;  %v2330_v34 = vld [vmem:[#allocation20 + $0x170] sm:$0xff] }
 0x777   : > { %v8863_v35 = vpop.eup %8862 }
 0x778   : > { %v1958_v36 = vmul.f32 %v8863_v35, %v8855_v10  ;;  %v9482_v35 = vmov 0.0  }
 0x779   : > { %1040 = vst [vmem:[#allocation2] sm:$0xff] %v9482_v35  ;;  %1043 = vst [vmem:[#allocation2 + $0x18] sm:$0xff] %v9482_v35 }
 0x77a   : > { %7094 = vmatprep.mubr.msk.f32.mxu1 %vm1436_vm4, %v1958_v36  ;;  %v7701_v36 = vpack.c.bf16 %v2330_v34, %v2328_v31  ;;  %v2287_v31 = vld [vmem:[#allocation20 + $0x30] sm:$0xff]  ;;  %v2292_v34 = vld [vmem:[#allocation20 + $0x58] sm:$0xff] }
 0x77b   : > { %v8865_v37 = vpop.eup %8864 }
 0x77c   : > { %v1960_v38 = vmul.f32 %v8865_v37, %v8859_v13  ;;  %v1038_v13 = vld [vmem:[%s926_s28] sm:$0xff]  ;;  %v2333_v37 = vld [vmem:[#allocation20 + $0x188] sm:$0xff]  ;;  %s10920_s28 = scalar_lea.hbm %s11087_s9, %s6441_s26 }
 0x77e   : > { %7095 = vmatmul.mubr.msk.f32.vlgmr.msra.gmra.mrb[2].mxu1 %vm1436_vm4, %v1960_v38  ;;  %v2335_v38 = vld [vmem:[#allocation20 + $0x198] sm:$0xff] }
 0x77f   : > { %7690 = vmatpush1.bf16.msra.mxu1 %v7689_v6  ;;  %2412 = vmatprep.mubr.f32.mxu1 %v9482_v35 }
 0x780   : > { %7692 = vmatprep.subr.bf16.mxu1 %v7691_v17 }
 0x783   : > { %7694 = vmatpush1.bf16.msra.mxu1 %v7693_v22 }
 0x784   : > { %7696 = vmatprep.subr.bf16.mxu1 %v7695_v25 }
 0x787   : > { %7698 = vmatpush1.bf16.msra.mxu1 %v7697_v27  ;;  %v2288_v27 = vld [vmem:[#allocation20 + $0x38] sm:$0xff] }
 0x788   : > { %7700 = vmatprep.subr.bf16.mxu1 %v7699_v33  ;;  %v7723_v28 = vpack.c.bf16 %v2288_v27, %v2286_v26  ;;  %v2290_v33 = vld [vmem:[#allocation20 + $0x48] sm:$0xff]  ;;  %v2511_v26 = vld [vmem:[#allocation20 + $0x230] sm:$0xff] }
 0x78b   : > { %7702 = vmatpush1.bf16.msra.mxu1 %v7701_v36  ;;  %v7725_v36 = vpack.c.bf16 %v2287_v31, %v2285_v29 }
 0x7b6   : > { %v6977_v39 = vpop.f32.mrb[0].mxu1 }
 0x7b7   : > { %v1531_v40 = vpop.f32.mrb[1].mxu1 }
 0x851   : > { %v7096_v46 = vpop.f32.mrb[2].mxu1 }
 0x852   : > { %v2033_v47 = vpop.f32.mrb[3].mxu1 }
 0x853   : > { %7113 = vmatprep.mubr.msk.f32.mxu0 %vm1338_vm2, %v2033_v47  ;;  %v2338_v47 = vld [vmem:[#allocation20 + $0x1b0] sm:$0xff] }
 0x854   : > { %7114 = vmatmul.mubr.msk.f32.vlgmr.msra.gmra.mrb[18].mxu0 %vm1338_vm2, %v7096_v46  ;;  %v2336_v46 = vld [vmem:[#allocation20 + $0x1a0] sm:$0xff] }
 0x855   : > { %7674 = vmatpush3.bf16.msra.mxu0 %v7671_v43  ;;  %7132 = vmatprep.mubr.msk.f32.mxu0 %vm1338_vm2, %v1531_v40  ;;  %v2332_v40 = vld [vmem:[#allocation20 + $0x180] sm:$0xff]  ;;  %v2337_v43 = vld [vmem:[#allocation20 + $0x1a8] sm:$0xff] }
 0x856   : > { %7676 = vmatprep.subr.bf16.mxu0 %v7675_v48  ;;  %v7705_v42 = vpack.c.bf16 %v2334_v41, %v2332_v40  ;;  %v7707_v45 = vpack.c.bf16 %v2339_v44, %v2337_v43  ;;  %v2294_v41 = vld [vmem:[#allocation20 + $0x68] sm:$0xff] }
 0x859   : > { %7678 = vmatpush3.bf16.msra.mxu0 %v7675_v48  ;;  %v7709_v48 = vpack.c.bf16 %v2338_v47, %v2336_v46  ;;  %v2295_v46 = vld [vmem:[#allocation20 + $0x70] sm:$0xff]  ;;  %v2298_v47 = vld [vmem:[#allocation20 + $0x88] sm:$0xff] }
 0x85a   : > { %7680 = vmatprep.subr.bf16.mxu0 %v7679_v51 }
 0x85d   : > { %7682 = vmatpush3.bf16.msra.mxu0 %v7679_v51  ;;  %v7711_v51 = vpack.c.bf16 %v2343_v50, %v2341_v49 }
 0x85e   : > { %7684 = vmatprep.subr.bf16.mxu0 %v7683_v54 }
 0x861   : > { %7686 = vmatpush3.bf16.msra.mxu0 %v7683_v54  ;;  %v7713_v54 = vpack.c.bf16 %v2342_v53, %v2340_v52  ;;  %v2299_v52 = vld [vmem:[#allocation20 + $0x90] sm:$0xff]  ;;  %v2302_v53 = vld [vmem:[#allocation20 + $0xa8] sm:$0xff] }
 0x864   : > { %7133 = vmatmul.mubr.msk.f32.vlgmr.msra.gmra.mrb[18].mxu0 %vm1338_vm2, %v6977_v39  ;;  %v7703_v39 = vpack.c.bf16 %v2335_v38, %v2333_v37  ;;  %v7727_v37 = vpack.c.bf16 %v2292_v34, %v2290_v33  ;;  %v2289_v38 = vld [vmem:[#allocation20 + $0x40] sm:$0xff]  ;;  %v2515_v33 = vld [vmem:[#allocation20 + $0x250] sm:$0xff] }
 0x866   : > { %7704 = vmatprep.subr.bf16.mxu1 %v7703_v39  ;;  %v2291_v39 = vld [vmem:[#allocation20 + $0x50] sm:$0xff] }
 0x867   : > { %7706 = vmatpush1.bf16.msra.mxu1 %v7705_v42  ;;  %v2296_v42 = vld [vmem:[#allocation20 + $0x78] sm:$0xff]  ;;  %v7729_v43 = vpack.c.bf16 %v2291_v39, %v2289_v38 }
 0x868   : > { %7708 = vmatprep.subr.bf16.mxu1 %v7707_v45  ;;  %v7731_v44 = vpack.c.bf16 %v2296_v42, %v2294_v41  ;;  %v2293_v45 = vld [vmem:[#allocation20 + $0x60] sm:$0xff]  ;;  %v2519_v41 = vld [vmem:[#allocation20 + $0x270] sm:$0xff]  ;;  %v2522_v42 = vld [vmem:[#allocation20 + $0x288] sm:$0xff] }
 0x869   : > { %v7733_v49 = vpack.c.bf16 %v2295_v46, %v2293_v45  ;;  %v2521_v46 = vld [vmem:[#allocation20 + $0x280] sm:$0xff] }
 0x86b   : > { %7710 = vmatpush1.bf16.msra.mxu1 %v7709_v48  ;;  %v2300_v48 = vld [vmem:[#allocation20 + $0x98] sm:$0xff] }
 0x86c   : > { %7712 = vmatprep.subr.bf16.mxu1 %v7711_v51  ;;  %v7735_v50 = vpack.c.bf16 %v2300_v48, %v2298_v47  ;;  %v2297_v51 = vld [vmem:[#allocation20 + $0x80] sm:$0xff]  ;;  %v2523_v47 = vld [vmem:[#allocation20 + $0x290] sm:$0xff]  ;;  %v2526_v48 = vld [vmem:[#allocation20 + $0x2a8] sm:$0xff] }
 0x86f   : > { %7714 = vmatpush1.bf16.msra.mxu1 %v7713_v54  ;;  %v2304_v54 = vld [vmem:[#allocation20 + $0xb8] sm:$0xff] }
 0x937   : > { %v7134_v56 = vpop.f32.mrb[18].mxu0 }
 0x938   : > { %v2204_v57 = vpop.f32.mrb[19].mxu0  ;;  %v2221_v60 = vadd.f32 %v7134_v56, %v6304_v55  ;;  %v2347_v56 = vld [vmem:[#allocation20 + $0x1f8] sm:$0xff] }
 0x939   : > { %v2220_v59 = vadd.f32 %v6304_v55, %v2204_v57  ;;  %v2345_v55 = vld [vmem:[#allocation20 + $0x1e8] sm:$0xff] }
 0x93a   : > { %v2223_v62 = vadd.f32 %v2221_v60, %v10180_v2  ;;  %v7715_v57 = vpack.c.bf16 %v2347_v56, %v2345_v55  ;;  %v2346_v60 = vld [vmem:[#allocation20 + $0x1f0] sm:$0xff]  ;;  %v7737_v55 = vpack.c.bf16 %v2299_v52, %v2297_v51  ;;  %v7739_v56 = vpack.c.bf16 %v2304_v54, %v2302_v53  ;;  %v2525_v52 = vld [vmem:[#allocation20 + $0x2a0] sm:$0xff]  ;;  %v2530_v54 = vld [vmem:[#allocation20 + $0x2c8] sm:$0xff] }
 0x93b   : > { %v2222_v61 = vadd.f32 %v2220_v59, %v10178_v1  ;;  %v2344_v59 = vld [vmem:[#allocation20 + $0x1e0] sm:$0xff]  ;;  %v2527_v53 = vld [vmem:[#allocation20 + $0x2b0] sm:$0xff] }
 0x93c   : > { %7716 = vmatprep.subr.bf16.mxu1 %v7715_v57  ;;  %v2301_v57 = vld [vmem:[#allocation20 + $0xa0] sm:$0xff] }
 0x93d   : > { %2226 = vadd.xlane.f32.xlu1 %v2222_v61 }
 0x941   : > { %2228 = vadd.xlane.f32.xlu1 %v2223_v62 }
 0x9ca   : > { %v2227_v7 = vpop.xlane.xlu1 %2226 }
 0x9cb   : > { %v2231_v8 = vmul.f32 0.0078125, %v2227_v7 }
 0x9cd   : > { %v10473_v9 = vsub.f32 %v2222_v61, %v2231_v8  ;;  %v7717_v61 = vpack.c.bf16 %v2346_v60, %v2344_v59  ;;  %v2303_v59 = vld [vmem:[#allocation20 + $0xb0] sm:$0xff]  ;;  %v2306_v60 = vld [vmem:[#allocation20 + $0xc8] sm:$0xff] }
 0x9ce   : > { %v2229_v10 = vpop.xlane.xlu1 %2228 }
 0x9cf   : > { %v2232_v11 = vmul.f32 0.0078125, %v2229_v10  ;;  %v2235_v1 = vmul.f32 %v10473_v9, %v10473_v9  ;;  %7718 = vmatpush1.bf16.msra.mxu1 %v7717_v61  ;;  %v2308_v61 = vld [vmem:[#allocation20 + $0xd8] sm:$0xff] }
 0x9d1   : > { %v10477_v2 = vsub.f32 %v2223_v62, %v2232_v11  ;;  %2237 = vadd.xlane.f32.xlu1 %v2235_v1  ;;  %v2282_v62 = vld [vmem:[#allocation20 + $0x8] sm:$0xff]  ;;  %v6305_v11 = vld [vmem:[#allocation17] ss:$0 sm:$0xff] }
 0x9d2   : > { %v7719_v0 = vpack.c.bf16 %v2284_v63, %v2282_v62  ;;  %v7741_v62 = vpack.c.bf16 %v2303_v59, %v2301_v57  ;;  %v7743_v63 = vpack.c.bf16 %v2308_v61, %v2306_v60  ;;  %v2529_v59 = vld [vmem:[#allocation20 + $0x2c0] sm:$0xff]  ;;  %v2531_v60 = vld [vmem:[#allocation20 + $0x2d0] sm:$0xff]  ;;  %v2534_v61 = vld [vmem:[#allocation20 + $0x2e8] sm:$0xff] }
 0x9d3   : > { %v2236_v12 = vmul.f32 %v10477_v2, %v10477_v2 }
 0x9d4   : > { %7720 = vmatprep.subr.bf16.mxu1 %v7719_v0  ;;  %v2305_v0 = vld [vmem:[#allocation20 + $0xc0] sm:$0xff] }
 0x9d5   : > { %2239 = vadd.xlane.f32.xlu0 %v2236_v12  ;;  %v6306_v12 = vld [vmem:[#allocation18] ss:$0 sm:$0xff] }
 0x9e2   : > { %2267 = vperm.xlu1 %8849, %v1038_v13  }
 0x9eb   : > { %2272 = vperm.xlu0 %8848, %v1039_v32  }
 0xa5e   : > { %v2238_v3 = vpop.xlane.xlu1 %2237 }
 0xa5f   : > { %v2241_v4 = vmul.f32 0.0078125, %v2238_v3  ;;  %v2307_v3 = vld [vmem:[#allocation20 + $0xd0] sm:$0xff] }
 0xa61   : > { %v2243_v5 = vadd.f32 1e-05, %v2241_v4  ;;  %v2310_v4 = vld [vmem:[#allocation20 + $0xe8] sm:$0xff] }
 0xa62   : > { %v2240_v6 = vpop.xlane.xlu0 %2239  ;;  %v10490_v16 = vpop.permute.xlu1 %2267 }
 0xa63   : > { %8866 = vrsqrt.f32 %v2243_v5  ;;  %v2242_v7 = vmul.f32 0.0078125, %v2240_v6  ;;  %v2312_v5 = vld [vmem:[#allocation20 + $0xf8] sm:$0xff]  ;;  %v7745_v6 = vpack.c.bf16 %v2307_v3, %v2305_v0  ;;  %v2533_v3 = vld [vmem:[#allocation20 + $0x2e0] sm:$0xff] }
 0xa65   : > { %v2244_v8 = vadd.f32 1e-05, %v2242_v7  ;;  %v7747_v7 = vpack.c.bf16 %v2312_v5, %v2310_v4  ;;  %v2535_v4 = vld [vmem:[#allocation20 + $0x2f0] sm:$0xff]  ;;  %v2622_v5 = vld [vmem:[#allocation20 + $0x308] sm:$0xff] }
 0xa67   : > { %8868 = vrsqrt.f32 %v2244_v8  ;;  %v2309_v8 = vld [vmem:[#allocation20 + $0xe0] sm:$0xff] }
 0xa6a   : > { %v10497_v24 = vpop.permute.xlu0 %2272 }
 0xa6d   : > { %v8867_v10 = vpop.eup %8866 }
 0xa6e   : > { %v2247_v1 = vmul.f32 %v8867_v10, %v10473_v9  ;;  %v2281_v9 = vld [vmem:[#allocation20] sm:$0xff]  ;;  %v2311_v10 = vld [vmem:[#allocation20 + $0xf0] sm:$0xff] }
 0xa70   : > { %v2255_v13 = vmul.f32 %v6305_v11, %v2247_v1  ;;  %v2508_v1 = vld [vmem:[#allocation20 + $0x218] sm:$0xff] }
 0xa71   : > { %v8869_v14 = vpop.eup %8868 }
 0xa72   : > { %v2248_v17 = vmul.f32 %v8869_v14, %v10477_v2  ;;  %v2263_v20 = vadd.f32 %v6306_v12, %v2255_v13  ;;  %v7721_v2 = vpack.c.bf16 %v2283_v30, %v2281_v9  ;;  %v2505_v14 = vld [vmem:[#allocation20 + $0x200] sm:$0xff] }
 0xa73   : > { %v2509_v30 = vld [vmem:[#allocation20 + $0x220] sm:$0xff] }
 0xa74   : > { %v2256_v21 = vmul.f32 %v6305_v11, %v2248_v17  ;;  %v10494_v22 = vmul.f32 %v10490_v16, %v2263_v20  ;;  %v2506_v11 = vld [vmem:[#allocation20 + $0x208] sm:$0xff]  ;;  %v2507_v17 = vld [vmem:[#allocation20 + $0x210] sm:$0xff]  ;;  %v7757_v29 = vpack.c.bf16 %v2511_v26, %v2509_v30 }
 0xa75   : > { %v7751_v13 = vpack.c.bf16 %v2508_v1, %v2506_v11  ;;  %v2510_v20 = vld [vmem:[#allocation20 + $0x228] sm:$0xff]  ;;  %v2623_v11 = vld [vmem:[#allocation20 + $0x310] sm:$0xff] }
 0xa76   : > { %v2264_v23 = vadd.f32 %v6306_v12, %v2256_v21  ;;  %2277 = vst [vmem:[#allocation2 + $0x8] sm:$0xff] %v10494_v22  ;;  %v7749_v12 = vpack.c.bf16 %v2311_v10, %v2309_v8  ;;  %v2512_v21 = vld [vmem:[#allocation20 + $0x238] sm:$0xff]  ;;  %v2621_v10 = vld [vmem:[#allocation20 + $0x300] sm:$0xff]  ;;  %v2626_v1 = vld [vmem:[#allocation20 + $0x328] sm:$0xff] }
 0xa77   : > { %v7755_v9 = vpack.c.bf16 %v2512_v21, %v2510_v20  ;;  %v2627_v20 = vld [vmem:[#allocation20 + $0x330] sm:$0xff] }
 0xa78   : > { %v10500_v25 = vmul.f32 %v10497_v24, %v2264_v23  ;;  %v7753_v23 = vpack.c.bf16 %v2507_v17, %v2505_v14  ;;  %v2625_v17 = vld [vmem:[#allocation20 + $0x320] sm:$0xff] }
 0xa79   : > { %v7789_v30 = vpack.c.bf16 %v2627_v20, %v2625_v17 }
 0xa7a   : > { %2278 = vst [vmem:[#allocation2 + $0x10] sm:$0xff] %v10500_v25 }
 0xa7d   : > { %v2313_v32 = vld [vmem:[#allocation2 + $0x5] sm:$0xff] }
 0xa7e   : > { %2413 = vmatmul.mubr.f32.vlgmr.msra.gmra.mrb[4].mxu1 %v2313_v32  ;;  %v2279_v27 = vld [vmem:[#allocation2 + $0x4] sm:$0xff] }
 0xa7f   : > { %7722 = vmatpush1.bf16.msra.mxu1 %v7721_v2  ;;  %2418 = vmatprep.mubr.f32.mxu1 %v9482_v35  ;;  %v2514_v2 = vld [vmem:[#allocation20 + $0x248] sm:$0xff]  ;;  %v2513_v32 = vld [vmem:[#allocation20 + $0x240] sm:$0xff] }
 0xa80   : > { %7724 = vmatprep.subr.bf16.mxu1 %v7723_v28  ;;  %v2516_v28 = vld [vmem:[#allocation20 + $0x258] sm:$0xff]  ;;  %v7761_v38 = vpack.c.bf16 %v2515_v33, %v2513_v32  ;;  %v2502_v21 = vld [vmem:[#allocation2 + $0x6] sm:$0xff] }
 0xa81   : > { %v2314_v40 = vld [vmem:[#allocation2 + $0xd] sm:$0xff]  ;;  %v7759_v31 = vpack.c.bf16 %v2516_v28, %v2514_v2 }
 0xa82   : > { %2419 = vmatmul.mubr.f32.gmra.mrb[6].mxu1 %v2314_v40  ;;  %v2280_v34 = vld [vmem:[#allocation2 + $0xc] sm:$0xff]  ;;  %v2517_v40 = vld [vmem:[#allocation20 + $0x260] sm:$0xff]  ;;  %v2631_v2 = vld [vmem:[#allocation20 + $0x350] sm:$0xff] }
 0xa83   : > { %7726 = vmatpush1.bf16.msra.mxu1 %v7725_v36  ;;  %2489 = vmatprep.mubr.f32.mxu1 %v9482_v35  ;;  %v2518_v36 = vld [vmem:[#allocation20 + $0x268] sm:$0xff] }
 0xa84   : > { %7728 = vmatprep.subr.bf16.mxu1 %v7727_v37  ;;  %v2520_v37 = vld [vmem:[#allocation20 + $0x278] sm:$0xff]  ;;  %v2503_v28 = vld [vmem:[#allocation2 + $0xe] sm:$0xff] }
 0xa85   : > { %v7763_v39 = vpack.c.bf16 %v2520_v37, %v2518_v36  ;;  %v2635_v36 = vld [vmem:[#allocation20 + $0x370] sm:$0xff]  ;;  %v2638_v37 = vld [vmem:[#allocation20 + $0x388] sm:$0xff] }
 0xa87   : > { %7730 = vmatpush1.bf16.msra.mxu1 %v7729_v43  ;;  %v2524_v43 = vld [vmem:[#allocation20 + $0x298] sm:$0xff] }
 0xa88   : > { %7732 = vmatprep.subr.bf16.mxu1 %v7731_v44  ;;  %v7765_v44 = vpack.c.bf16 %v2519_v41, %v2517_v40  ;;  %v7767_v45 = vpack.c.bf16 %v2524_v43, %v2522_v42  ;;  %v2637_v41 = vld [vmem:[#allocation20 + $0x380] sm:$0xff]  ;;  %v2639_v42 = vld [vmem:[#allocation20 + $0x390] sm:$0xff]  ;;  %v2642_v43 = vld [vmem:[#allocation20 + $0x3a8] sm:$0xff] }
 0xa8b   : > { %7734 = vmatpush1.bf16.msra.mxu1 %v7733_v49  ;;  %v2528_v49 = vld [vmem:[#allocation20 + $0x2b8] sm:$0xff] }
 0xa8c   : > { %7736 = vmatprep.subr.bf16.mxu1 %v7735_v50  ;;  %v7769_v50 = vpack.c.bf16 %v2523_v47, %v2521_v46  ;;  %v7771_v51 = vpack.c.bf16 %v2528_v49, %v2526_v48  ;;  %v2641_v47 = vld [vmem:[#allocation20 + $0x3a0] sm:$0xff]  ;;  %v2643_v48 = vld [vmem:[#allocation20 + $0x3b0] sm:$0xff]  ;;  %v2646_v49 = vld [vmem:[#allocation20 + $0x3c8] sm:$0xff] }
 0xa8f   : > { %7738 = vmatpush1.bf16.msra.mxu1 %v7737_v55  ;;  %v2532_v55 = vld [vmem:[#allocation20 + $0x2d8] sm:$0xff] }
 0xa90   : > { %7740 = vmatprep.subr.bf16.mxu1 %v7739_v56  ;;  %v7773_v56 = vpack.c.bf16 %v2527_v53, %v2525_v52  ;;  %v7775_v57 = vpack.c.bf16 %v2532_v55, %v2530_v54  ;;  %v2645_v53 = vld [vmem:[#allocation20 + $0x3c0] sm:$0xff]  ;;  %v2647_v54 = vld [vmem:[#allocation20 + $0x3d0] sm:$0xff]  ;;  %v2650_v55 = vld [vmem:[#allocation20 + $0x3e8] sm:$0xff] }
 0xa93   : > { %7742 = vmatpush1.bf16.msra.mxu1 %v7741_v62  ;;  %v2536_v62 = vld [vmem:[#allocation20 + $0x2f8] sm:$0xff] }
 0xa94   : > { %7744 = vmatprep.subr.bf16.mxu1 %v7743_v63  ;;  %v7777_v63 = vpack.c.bf16 %v2531_v60, %v2529_v59  ;;  %v7779_v0 = vpack.c.bf16 %v2536_v62, %v2534_v61  ;;  %v2649_v60 = vld [vmem:[#allocation20 + $0x3e0] sm:$0xff]  ;;  %v2651_v61 = vld [vmem:[#allocation20 + $0x3f0] sm:$0xff]  ;;  %v2738_v62 = vld [vmem:[#allocation20 + $0x408] sm:$0xff] }
 0xa97   : > { %7746 = vmatpush1.bf16.msra.mxu1 %v7745_v6  ;;  %v2624_v6 = vld [vmem:[#allocation20 + $0x318] sm:$0xff] }
 0xa98   : > { %7748 = vmatprep.subr.bf16.mxu1 %v7747_v7  ;;  %v7781_v7 = vpack.c.bf16 %v2535_v4, %v2533_v3  ;;  %v7783_v8 = vpack.c.bf16 %v2624_v6, %v2622_v5  ;;  %v2737_v4 = vld [vmem:[#allocation20 + $0x400] sm:$0xff]  ;;  %v2739_v5 = vld [vmem:[#allocation20 + $0x410] sm:$0xff]  ;;  %v2742_v6 = vld [vmem:[#allocation20 + $0x428] sm:$0xff] }
 0xa9b   : > { %7750 = vmatpush1.bf16.msra.mxu1 %v7749_v12  ;;  %v2628_v12 = vld [vmem:[#allocation20 + $0x338] sm:$0xff] }
 0xa9c   : > { %7752 = vmatprep.subr.bf16.mxu1 %v7751_v13  ;;  %v7785_v13 = vpack.c.bf16 %v2623_v11, %v2621_v10  ;;  %v7787_v14 = vpack.c.bf16 %v2628_v12, %v2626_v1  ;;  %v2741_v11 = vld [vmem:[#allocation20 + $0x420] sm:$0xff]  ;;  %v2743_v1 = vld [vmem:[#allocation20 + $0x430] sm:$0xff] }
 0xa9d   : > { %v2618_v12 = vld [vmem:[#allocation2 + $0x7] sm:$0xff]  ;;  %v7821_v17 = vpack.c.bf16 %v2743_v1, %v2741_v11 }
 0xa9e   : > { %2490 = vmatmul.mubr.f32.vlgmr.msra.gmra.mrb[4].mxu1 %v2279_v27  ;;  %v2629_v27 = vld [vmem:[#allocation20 + $0x340] sm:$0xff] }
 0xa9f   : > { %7754 = vmatpush1.bf16.msra.mxu1 %v7753_v23  ;;  %2495 = vmatprep.mubr.f32.mxu1 %v9482_v35  ;;  %v2630_v23 = vld [vmem:[#allocation20 + $0x348] sm:$0xff]  ;;  %v7793_v32 = vpack.c.bf16 %v2631_v2, %v2629_v27  ;;  %v2861_v1 = vld [vmem:[#allocation20 + $0x540] sm:$0xff] }
 0xaa0   : > { %7756 = vmatprep.subr.bf16.mxu1 %v7755_v9  ;;  %v2632_v9 = vld [vmem:[#allocation20 + $0x358] sm:$0xff] }
 0xaa1   : > { %v7791_v26 = vpack.c.bf16 %v2632_v9, %v2630_v23  ;;  %v2747_v23 = vld [vmem:[#allocation20 + $0x450] sm:$0xff] }
 0xaa2   : > { %2496 = vmatmul.mubr.f32.gmra.mrb[6].mxu1 %v2280_v34  ;;  %v2633_v34 = vld [vmem:[#allocation20 + $0x360] sm:$0xff]  ;;  %v2619_v9 = vld [vmem:[#allocation2 + $0xf] sm:$0xff] }
 0xaa3   : > { %7758 = vmatpush1.bf16.msra.mxu1 %v7757_v29  ;;  %2601 = vmatprep.mubr.f32.mxu1 %v9482_v35  ;;  %v2634_v29 = vld [vmem:[#allocation20 + $0x368] sm:$0xff] }
 0xaa4   : > { %7760 = vmatprep.subr.bf16.mxu1 %v7759_v31  ;;  %v2636_v31 = vld [vmem:[#allocation20 + $0x378] sm:$0xff] }
 0xaa5   : > { %v7795_v33 = vpack.c.bf16 %v2636_v31, %v2634_v29  ;;  %v2751_v29 = vld [vmem:[#allocation20 + $0x470] sm:$0xff]  ;;  %v2754_v31 = vld [vmem:[#allocation20 + $0x488] sm:$0xff] }
 0xaa7   : > { %7762 = vmatpush1.bf16.msra.mxu1 %v7761_v38  ;;  %v2640_v38 = vld [vmem:[#allocation20 + $0x398] sm:$0xff] }
 0xaa8   : > { %7764 = vmatprep.subr.bf16.mxu1 %v7763_v39  ;;  %v7797_v39 = vpack.c.bf16 %v2635_v36, %v2633_v34  ;;  %v7799_v40 = vpack.c.bf16 %v2640_v38, %v2638_v37  ;;  %v2753_v36 = vld [vmem:[#allocation20 + $0x480] sm:$0xff]  ;;  %v2755_v37 = vld [vmem:[#allocation20 + $0x490] sm:$0xff]  ;;  %v2758_v38 = vld [vmem:[#allocation20 + $0x4a8] sm:$0xff] }
 0xaab   : > { %7766 = vmatpush1.bf16.msra.mxu1 %v7765_v44  ;;  %v2644_v44 = vld [vmem:[#allocation20 + $0x3b8] sm:$0xff] }
 0xaac   : > { %7768 = vmatprep.subr.bf16.mxu1 %v7767_v45  ;;  %v7801_v45 = vpack.c.bf16 %v2639_v42, %v2637_v41  ;;  %v7803_v46 = vpack.c.bf16 %v2644_v44, %v2642_v43  ;;  %v2757_v42 = vld [vmem:[#allocation20 + $0x4a0] sm:$0xff]  ;;  %v2759_v43 = vld [vmem:[#allocation20 + $0x4b0] sm:$0xff]  ;;  %v2762_v44 = vld [vmem:[#allocation20 + $0x4c8] sm:$0xff] }
 0xaaf   : > { %7770 = vmatpush1.bf16.msra.mxu1 %v7769_v50  ;;  %v2648_v50 = vld [vmem:[#allocation20 + $0x3d8] sm:$0xff] }
 0xab0   : > { %7772 = vmatprep.subr.bf16.mxu1 %v7771_v51  ;;  %v7805_v51 = vpack.c.bf16 %v2643_v48, %v2641_v47  ;;  %v7807_v52 = vpack.c.bf16 %v2648_v50, %v2646_v49  ;;  %v2761_v48 = vld [vmem:[#allocation20 + $0x4c0] sm:$0xff]  ;;  %v2763_v49 = vld [vmem:[#allocation20 + $0x4d0] sm:$0xff]  ;;  %v2766_v50 = vld [vmem:[#allocation20 + $0x4e8] sm:$0xff] }
 0xab3   : > { %7774 = vmatpush1.bf16.msra.mxu1 %v7773_v56  ;;  %v2652_v56 = vld [vmem:[#allocation20 + $0x3f8] sm:$0xff] }
 0xab4   : > { %7776 = vmatprep.subr.bf16.mxu1 %v7775_v57  ;;  %v7809_v57 = vpack.c.bf16 %v2647_v54, %v2645_v53  ;;  %v7811_v59 = vpack.c.bf16 %v2652_v56, %v2650_v55  ;;  %v2765_v54 = vld [vmem:[#allocation20 + $0x4e0] sm:$0xff]  ;;  %v2767_v55 = vld [vmem:[#allocation20 + $0x4f0] sm:$0xff]  ;;  %v2854_v56 = vld [vmem:[#allocation20 + $0x508] sm:$0xff] }
 0xab7   : > { %7778 = vmatpush1.bf16.msra.mxu1 %v7777_v63  ;;  %v2740_v63 = vld [vmem:[#allocation20 + $0x418] sm:$0xff] }
 0xab8   : > { %7780 = vmatprep.subr.bf16.mxu1 %v7779_v0  ;;  %v7813_v0 = vpack.c.bf16 %v2651_v61, %v2649_v60  ;;  %v7815_v3 = vpack.c.bf16 %v2740_v63, %v2738_v62  ;;  %v2853_v61 = vld [vmem:[#allocation20 + $0x500] sm:$0xff]  ;;  %v2855_v62 = vld [vmem:[#allocation20 + $0x510] sm:$0xff]  ;;  %v2858_v63 = vld [vmem:[#allocation20 + $0x528] sm:$0xff] }
 0xabb   : > { %7782 = vmatpush1.bf16.msra.mxu1 %v7781_v7  ;;  %v2744_v7 = vld [vmem:[#allocation20 + $0x438] sm:$0xff] }
 0xabc   : > { %7784 = vmatprep.subr.bf16.mxu1 %v7783_v8  ;;  %v7817_v8 = vpack.c.bf16 %v2739_v5, %v2737_v4  ;;  %v7819_v10 = vpack.c.bf16 %v2744_v7, %v2742_v6  ;;  %v2857_v5 = vld [vmem:[#allocation20 + $0x520] sm:$0xff]  ;;  %v2859_v6 = vld [vmem:[#allocation20 + $0x530] sm:$0xff]  ;;  %v2862_v7 = vld [vmem:[#allocation20 + $0x548] sm:$0xff] }
 0xabe   : > { %2602 = vmatmul.mubr.f32.vlgmr.msra.gmra.mrb[4].mxu1 %v2502_v21  ;;  %v2745_v21 = vld [vmem:[#allocation20 + $0x440] sm:$0xff] }
 0xabf   : > { %7786 = vmatpush1.bf16.msra.mxu1 %v7785_v13  ;;  %2607 = vmatprep.mubr.f32.mxu1 %v9482_v35  ;;  %v2746_v13 = vld [vmem:[#allocation20 + $0x448] sm:$0xff]  ;;  %v7825_v27 = vpack.c.bf16 %v2747_v23, %v2745_v21 }
 0xac0   : > { %7788 = vmatprep.subr.bf16.mxu1 %v7787_v14  ;;  %v2748_v14 = vld [vmem:[#allocation20 + $0x458] sm:$0xff]  ;;  %v3350_v21 = vld [vmem:[#allocation23 + $0x80] sm:$0xff]  ;;  %v3351_v23 = vld [vmem:[#allocation23 + $0x88] sm:$0xff] }
 0xac1   : > { %v7823_v20 = vpack.c.bf16 %v2748_v14, %v2746_v13  ;;  %v2866_v13 = vld [vmem:[#allocation20 + $0x568] sm:$0xff]  ;;  %v2868_v14 = vld [vmem:[#allocation20 + $0x578] sm:$0xff] }
 0xac2   : > { %2608 = vmatmul.mubr.f32.gmra.mrb[6].mxu1 %v2503_v28  ;;  %v2749_v28 = vld [vmem:[#allocation20 + $0x460] sm:$0xff] }
 0xac3   : > { %7790 = vmatpush1.bf16.msra.mxu1 %v7789_v30  ;;  %2717 = vmatprep.mubr.f32.mxu1 %v9482_v35  ;;  %v2750_v30 = vld [vmem:[#allocation20 + $0x468] sm:$0xff] }
 0xac4   : > { %7792 = vmatprep.subr.bf16.mxu1 %v7791_v26  ;;  %v2752_v26 = vld [vmem:[#allocation20 + $0x478] sm:$0xff] }
 0xac5   : > { %v7827_v2 = vpack.c.bf16 %v2752_v26, %v2750_v30  ;;  %v3335_v26 = vld [vmem:[#allocation23 + $0x8] sm:$0xff] }
 0xac7   : > { %7794 = vmatpush1.bf16.msra.mxu1 %v7793_v32  ;;  %v2756_v32 = vld [vmem:[#allocation20 + $0x498] sm:$0xff] }
 0xac8   : > { %7796 = vmatprep.subr.bf16.mxu1 %v7795_v33  ;;  %v7829_v33 = vpack.c.bf16 %v2751_v29, %v2749_v28  ;;  %v7831_v34 = vpack.c.bf16 %v2756_v32, %v2754_v31  ;;  %v7859_v28 = vpack.c.bf16 %v2868_v14, %v2866_v13  ;;  %v3336_v32 = vld [vmem:[#allocation23 + $0x10] sm:$0xff] }
 0xacb   : > { %7798 = vmatpush1.bf16.msra.mxu1 %v7797_v39  ;;  %v2760_v39 = vld [vmem:[#allocation20 + $0x4b8] sm:$0xff] }
 0xacc   : > { %7800 = vmatprep.subr.bf16.mxu1 %v7799_v40  ;;  %v7833_v40 = vpack.c.bf16 %v2755_v37, %v2753_v36  ;;  %v7835_v41 = vpack.c.bf16 %v2760_v39, %v2758_v38  ;;  %v2872_v36 = vld [vmem:[#allocation20 + $0x598] sm:$0xff]  ;;  %v3355_v37 = vld [vmem:[#allocation23 + $0xa8] sm:$0xff] }
 0xacf   : > { %7802 = vmatpush1.bf16.msra.mxu1 %v7801_v45  ;;  %v2764_v45 = vld [vmem:[#allocation20 + $0x4d8] sm:$0xff] }
 0xad0   : > { %7804 = vmatprep.subr.bf16.mxu1 %v7803_v46  ;;  %v7837_v46 = vpack.c.bf16 %v2759_v43, %v2757_v42  ;;  %v7839_v47 = vpack.c.bf16 %v2764_v45, %v2762_v44  ;;  %v3338_v42 = vld [vmem:[#allocation23 + $0x20] sm:$0xff]  ;;  %v3339_v43 = vld [vmem:[#allocation23 + $0x28] sm:$0xff] }
 0xad1   : > { %v2871_v45 = vld [vmem:[#allocation20 + $0x590] sm:$0xff] }
 0xad3   : > { %7806 = vmatpush1.bf16.msra.mxu1 %v7805_v51  ;;  %v2768_v51 = vld [vmem:[#allocation20 + $0x4f8] sm:$0xff] }
 0xad4   : > { %7808 = vmatprep.subr.bf16.mxu1 %v7807_v52  ;;  %v7841_v52 = vpack.c.bf16 %v2763_v49, %v2761_v48  ;;  %v7843_v53 = vpack.c.bf16 %v2768_v51, %v2766_v50  ;;  %v2874_v48 = vld [vmem:[#allocation20 + $0x5a8] sm:$0xff]  ;;  %v2876_v49 = vld [vmem:[#allocation20 + $0x5b8] sm:$0xff]  ;;  %v7985_v50 = vpack.c.bf16 %v3339_v43, %v3338_v42 }
 0xad5   : > { %v2978_v42 = vld [vmem:[#allocation20 + $0x648] sm:$0xff]  ;;  %v2980_v43 = vld [vmem:[#allocation20 + $0x658] sm:$0xff] }
 0xad7   : > { %7810 = vmatpush1.bf16.msra.mxu1 %v7809_v57  ;;  %v2856_v57 = vld [vmem:[#allocation20 + $0x518] sm:$0xff] }
 0xad8   : > { %7812 = vmatprep.subr.bf16.mxu1 %v7811_v59  ;;  %v7845_v59 = vpack.c.bf16 %v2767_v55, %v2765_v54  ;;  %v7847_v60 = vpack.c.bf16 %v2856_v57, %v2854_v56  ;;  %v3340_v54 = vld [vmem:[#allocation23 + $0x30] sm:$0xff]  ;;  %v3341_v55 = vld [vmem:[#allocation23 + $0x38] sm:$0xff]  ;;  %v7867_v56 = vpack.c.bf16 %v2876_v49, %v2874_v48  ;;  %v2982_v49 = vld [vmem:[#allocation20 + $0x668] sm:$0xff] }
 0xad9   : > { %v2875_v57 = vld [vmem:[#allocation20 + $0x5b0] sm:$0xff] }
 0xada   : > { %v2851_v48 = vld [vmem:[#allocation2 + $0x11] sm:$0xff] }
 0xadb   : > { %7814 = vmatpush1.bf16.msra.mxu1 %v7813_v0  ;;  %v2860_v0 = vld [vmem:[#allocation20 + $0x538] sm:$0xff] }
 0xadc   : > { %7816 = vmatprep.subr.bf16.mxu1 %v7815_v3  ;;  %v7849_v3 = vpack.c.bf16 %v2855_v62, %v2853_v61  ;;  %v7851_v4 = vpack.c.bf16 %v2860_v0, %v2858_v63  ;;  %v2878_v61 = vld [vmem:[#allocation20 + $0x5c8] sm:$0xff]  ;;  %v2880_v62 = vld [vmem:[#allocation20 + $0x5d8] sm:$0xff]  ;;  %v7989_v63 = vpack.c.bf16 %v3341_v55, %v3340_v54  ;;  %v2983_v54 = vld [vmem:[#allocation20 + $0x670] sm:$0xff] }
 0xadd   : > { %v2986_v55 = vld [vmem:[#allocation20 + $0x688] sm:$0xff] }
 0xade   : > { %2718 = vmatmul.mubr.f32.vlgmr.msra.gmra.mrb[4].mxu1 %v2618_v12  ;;  %v2863_v12 = vld [vmem:[#allocation20 + $0x550] sm:$0xff] }
 0xadf   : > { %7818 = vmatpush1.bf16.msra.mxu1 %v7817_v8  ;;  %2723 = vmatprep.mubr.f32.mxu1 %v9482_v35  ;;  %v2864_v8 = vld [vmem:[#allocation20 + $0x558] sm:$0xff]  ;;  %v7857_v30 = vpack.c.bf16 %v2863_v12, %v2861_v1  ;;  %v2882_v1 = vld [vmem:[#allocation20 + $0x5e8] sm:$0xff] }
 0xae0   : > { %7820 = vmatprep.subr.bf16.mxu1 %v7819_v10  ;;  %v7853_v10 = vpack.c.bf16 %v2859_v6, %v2857_v5  ;;  %v7855_v11 = vpack.c.bf16 %v2864_v8, %v2862_v7  ;;  %v3342_v5 = vld [vmem:[#allocation23 + $0x40] sm:$0xff]  ;;  %v3343_v6 = vld [vmem:[#allocation23 + $0x48] sm:$0xff]  ;;  %v7871_v7 = vpack.c.bf16 %v2880_v62, %v2878_v61  ;;  %v2884_v12 = vld [vmem:[#allocation20 + $0x5f8] sm:$0xff] }
 0xae1   : > { %v2879_v8 = vld [vmem:[#allocation20 + $0x5d0] sm:$0xff]  ;;  %v7993_v13 = vpack.c.bf16 %v3343_v6, %v3342_v5  ;;  %v2990_v62 = vld [vmem:[#allocation20 + $0x6a8] sm:$0xff]  ;;  %v2996_v6 = vld [vmem:[#allocation20 + $0x6d8] sm:$0xff] }
 0xae2   : > { %2724 = vmatmul.mubr.f32.gmra.mrb[6].mxu1 %v2619_v9  ;;  %v3334_v9 = vld [vmem:[#allocation23] sm:$0xff]  ;;  %v2987_v61 = vld [vmem:[#allocation20 + $0x690] sm:$0xff] }
 0xae3   : > { %7822 = vmatpush1.bf16.msra.mxu1 %v7821_v17  ;;  %2833 = vmatprep.mubr.f32.mxu1 %v9482_v35  ;;  %v2865_v17 = vld [vmem:[#allocation20 + $0x560] sm:$0xff]  ;;  %v7977_v29 = vpack.c.bf16 %v3335_v26, %v3334_v9  ;;  %v7875_v9 = vpack.c.bf16 %v2884_v12, %v2882_v1  ;;  %v3363_v26 = vld [vmem:[#allocation23 + $0xe8] sm:$0xff]  ;;  %v3000_v12 = vld [vmem:[#allocation20 + $0x6f8] sm:$0xff] }
 0xae4   : > { %7824 = vmatprep.subr.bf16.mxu1 %v7823_v20  ;;  %v2867_v20 = vld [vmem:[#allocation20 + $0x570] sm:$0xff]  ;;  %v2994_v5 = vld [vmem:[#allocation20 + $0x6c8] sm:$0xff] }
 0xae5   : > { %v7861_v39 = vpack.c.bf16 %v2867_v20, %v2865_v17  ;;  %v2881_v17 = vld [vmem:[#allocation20 + $0x5e0] sm:$0xff]  ;;  %v2998_v1 = vld [vmem:[#allocation20 + $0x6e8] sm:$0xff] }
 0xae7   : > { %7826 = vmatpush1.bf16.msra.mxu1 %v7825_v27  ;;  %v3352_v27 = vld [vmem:[#allocation23 + $0x90] sm:$0xff] }
 0xae8   : > { %7828 = vmatprep.subr.bf16.mxu1 %v7827_v2  ;;  %v3353_v2 = vld [vmem:[#allocation23 + $0x98] sm:$0xff] }
 0xae9   : > { %v7979_v31 = vpack.c.bf16 %v3353_v2, %v3352_v27  ;;  %v2970_v27 = vld [vmem:[#allocation20 + $0x608] sm:$0xff]  ;;  %v2972_v2 = vld [vmem:[#allocation20 + $0x618] sm:$0xff] }
 0xaeb   : > { %7830 = vmatpush1.bf16.msra.mxu1 %v7829_v33  ;;  %v3337_v33 = vld [vmem:[#allocation23 + $0x18] sm:$0xff] }
 0xaec   : > { %7832 = vmatprep.subr.bf16.mxu1 %v7831_v34  ;;  %v2870_v34 = vld [vmem:[#allocation20 + $0x588] sm:$0xff]  ;;  %v7981_v38 = vpack.c.bf16 %v3337_v33, %v3336_v32  ;;  %v7879_v32 = vpack.c.bf16 %v2972_v2, %v2970_v27  ;;  %v2969_v33 = vld [vmem:[#allocation20 + $0x600] sm:$0xff]  ;;  %v3092_v2 = vld [vmem:[#allocation20 + $0x738] sm:$0xff] }
 0xaed   : > { %v7863_v44 = vpack.c.bf16 %v2872_v36, %v2870_v34  ;;  %v2974_v34 = vld [vmem:[#allocation20 + $0x628] sm:$0xff]  ;;  %v2976_v36 = vld [vmem:[#allocation20 + $0x638] sm:$0xff] }
 0xaee   : > { %v3090_v27 = vld [vmem:[#allocation20 + $0x728] sm:$0xff] }
 0xaef   : > { %7834 = vmatpush1.bf16.msra.mxu1 %v7833_v40  ;;  %v2869_v40 = vld [vmem:[#allocation20 + $0x580] sm:$0xff] }
 0xaf0   : > { %7836 = vmatprep.subr.bf16.mxu1 %v7835_v41  ;;  %v7865_v51 = vpack.c.bf16 %v2871_v45, %v2869_v40  ;;  %v2975_v40 = vld [vmem:[#allocation20 + $0x630] sm:$0xff]  ;;  %v7887_v45 = vpack.c.bf16 %v2980_v43, %v2978_v42  ;;  %v3098_v42 = vld [vmem:[#allocation20 + $0x768] sm:$0xff]  ;;  %v3100_v43 = vld [vmem:[#allocation20 + $0x778] sm:$0xff] }
 0xaf3   : > { %7838 = vmatpush1.bf16.msra.mxu1 %v7837_v46  ;;  %v3356_v46 = vld [vmem:[#allocation23 + $0xb0] sm:$0xff] }
 0xaf4   : > { %7840 = vmatprep.subr.bf16.mxu1 %v7839_v47  ;;  %v3357_v47 = vld [vmem:[#allocation23 + $0xb8] sm:$0xff] }
 0xaf7   : > { %7842 = vmatpush1.bf16.msra.mxu1 %v7841_v52  ;;  %v2873_v52 = vld [vmem:[#allocation20 + $0x5a0] sm:$0xff] }
 0xaf8   : > { %7844 = vmatprep.subr.bf16.mxu1 %v7843_v53  ;;  %v7987_v53 = vpack.c.bf16 %v3357_v47, %v3356_v46  ;;  %v7869_v0 = vpack.c.bf16 %v2875_v57, %v2873_v52  ;;  %v2977_v46 = vld [vmem:[#allocation20 + $0x640] sm:$0xff]  ;;  %v2979_v47 = vld [vmem:[#allocation20 + $0x650] sm:$0xff] }
 0xafb   : > { %7846 = vmatpush1.bf16.msra.mxu1 %v7845_v59  ;;  %v3358_v59 = vld [vmem:[#allocation23 + $0xc0] sm:$0xff] }
 0xafc   : > { %7848 = vmatprep.subr.bf16.mxu1 %v7847_v60  ;;  %v3359_v60 = vld [vmem:[#allocation23 + $0xc8] sm:$0xff] }
 0xafe   : > { %2834 = vmatmul.mubr.f32.vlgmr.msra.gmra.mrb[4].mxu1 %v10494_v22  ;;  %v7975_v22 = vpack.c.bf16 %v3351_v23, %v3350_v21  ;;  %v3344_v21 = vld [vmem:[#allocation23 + $0x50] sm:$0xff]  ;;  %v3345_v23 = vld [vmem:[#allocation23 + $0x58] sm:$0xff] }
 0xaff   : > { %7850 = vmatpush1.bf16.msra.mxu1 %v7849_v3  ;;  %2839 = vmatprep.mubr.f32.mxu1 %v9482_v35  ;;  %v2877_v3 = vld [vmem:[#allocation20 + $0x5c0] sm:$0xff] }
 0xb00   : > { %7852 = vmatprep.subr.bf16.mxu1 %v7851_v4  ;;  %7976 = vmatprep.subr.bf16.mxu0 %v7975_v22  ;;  %v7991_v4 = vpack.c.bf16 %v3359_v60, %v3358_v59  ;;  %v7873_v14 = vpack.c.bf16 %v2879_v8, %v2877_v3  ;;  %v3362_v22 = vld [vmem:[#allocation23 + $0xe0] sm:$0xff]  ;;  %v7903_v8 = vpack.c.bf16 %v2996_v6, %v2994_v5  ;;  %v3116_v5 = vld [vmem:[#allocation20 + $0x7f8] sm:$0xff] }
 0xb01   : > { %7978 = vmatpush3.bf16.msra.mxu0 %v7977_v29  ;;  %v2985_v60 = vld [vmem:[#allocation20 + $0x680] sm:$0xff] }
 0xb02   : > { %2840 = vmatmul.mubr.f32.gmra.mrb[6].mxu1 %v10500_v25  ;;  %v3354_v25 = vld [vmem:[#allocation23 + $0xa0] sm:$0xff]  ;;  %7980 = vmatprep.subr.bf16.mxu0 %v7979_v31  ;;  %v7999_v31 = vpack.c.bf16 %v3363_v26, %v3362_v22  ;;  %v3087_v26 = vld [vmem:[#allocation20 + $0x710] sm:$0xff] }
 0xb03   : > { %7854 = vmatpush1.bf16.msra.mxu1 %v7853_v10  ;;  %2949 = vmatprep.mubr.f32.mxu1 %v9482_v35  ;;  %v7983_v41 = vpack.c.bf16 %v3355_v37, %v3354_v25  ;;  %v3360_v10 = vld [vmem:[#allocation23 + $0xd0] sm:$0xff]  ;;  %v3085_v22 = vld [vmem:[#allocation20 + $0x700] sm:$0xff] }
 0xb04   : > { %7856 = vmatprep.subr.bf16.mxu1 %v7855_v11  ;;  %v3361_v11 = vld [vmem:[#allocation23 + $0xd8] sm:$0xff]  ;;  %v2971_v25 = vld [vmem:[#allocation20 + $0x610] sm:$0xff] }
 0xb05   : > { %7982 = vmatpush3.bf16.msra.mxu0 %v7981_v38  ;;  %v7995_v20 = vpack.c.bf16 %v3361_v11, %v3360_v10  ;;  %v7881_v37 = vpack.c.bf16 %v2971_v25, %v2969_v33  ;;  %v7883_v38 = vpack.c.bf16 %v2976_v36, %v2974_v34  ;;  %v2993_v10 = vld [vmem:[#allocation20 + $0x6c0] sm:$0xff]  ;;  %v2995_v11 = vld [vmem:[#allocation20 + $0x6d0] sm:$0xff]  ;;  %v3094_v25 = vld [vmem:[#allocation20 + $0x748] sm:$0xff] }
 0xb06   : > { %7984 = vmatprep.subr.bf16.mxu0 %v7983_v41  ;;  %v2850_v41 = vld [vmem:[#allocation2 + $0x9] sm:$0xff]  ;;  %v3096_v34 = vld [vmem:[#allocation20 + $0x758] sm:$0xff] }
 0xb07   : > { %7858 = vmatpush1.bf16.msra.mxu1 %v7857_v30  ;;  %v2883_v30 = vld [vmem:[#allocation20 + $0x5f0] sm:$0xff]  ;;  %v2966_v33 = vld [vmem:[#allocation2 + $0xa] sm:$0xff]  ;;  %v10517_v36 = vld [vmem:[#allocation2] sm:$0xff] }
 0xb08   : > { %7860 = vmatprep.subr.bf16.mxu1 %v7859_v28  ;;  %v7997_v28 = vpack.c.bf16 %v3345_v23, %v3344_v21  ;;  %v7877_v29 = vpack.c.bf16 %v2883_v30, %v2881_v17  ;;  %v2997_v17 = vld [vmem:[#allocation20 + $0x6e0] sm:$0xff]  ;;  %v3086_v21 = vld [vmem:[#allocation20 + $0x708] sm:$0xff]  ;;  %v3088_v23 = vld [vmem:[#allocation20 + $0x718] sm:$0xff] }
 0xb09   : > { %7986 = vmatpush3.bf16.msra.mxu0 %v7985_v50  ;;  %v2984_v50 = vld [vmem:[#allocation20 + $0x678] sm:$0xff]  ;;  %v7911_v30 = vpack.c.bf16 %v3088_v23, %v3086_v21 }
 0xb0a   : > { %7988 = vmatprep.subr.bf16.mxu0 %v7987_v53  ;;  %v7891_v52 = vpack.c.bf16 %v2984_v50, %v2982_v49  ;;  %v2981_v53 = vld [vmem:[#allocation20 + $0x660] sm:$0xff]  ;;  %v3104_v49 = vld [vmem:[#allocation20 + $0x798] sm:$0xff] }
 0xb0b   : > { %7862 = vmatpush1.bf16.msra.mxu1 %v7861_v39  ;;  %v2973_v39 = vld [vmem:[#allocation20 + $0x620] sm:$0xff]  ;;  %v7893_v57 = vpack.c.bf16 %v2983_v54, %v2981_v53  ;;  %v3103_v53 = vld [vmem:[#allocation20 + $0x790] sm:$0xff]  ;;  %v3106_v54 = vld [vmem:[#allocation20 + $0x7a8] sm:$0xff] }
 0xb0c   : > { %7864 = vmatprep.subr.bf16.mxu1 %v7863_v44  ;;  %v7885_v44 = vpack.c.bf16 %v2975_v40, %v2973_v39  ;;  %v3093_v39 = vld [vmem:[#allocation20 + $0x740] sm:$0xff]  ;;  %v3095_v40 = vld [vmem:[#allocation20 + $0x750] sm:$0xff]  ;;  %v3208_v21 = vld [vmem:[#allocation20 + $0x838] sm:$0xff] }
 0xb0d   : > { %7990 = vmatpush3.bf16.msra.mxu0 %v7989_v63  ;;  %v2992_v63 = vld [vmem:[#allocation20 + $0x6b8] sm:$0xff] }
 0xb0e   : > { %7992 = vmatprep.subr.bf16.mxu0 %v7991_v4  ;;  %v7899_v3 = vpack.c.bf16 %v2992_v63, %v2990_v62  ;;  %v2989_v4 = vld [vmem:[#allocation20 + $0x6a0] sm:$0xff]  ;;  %v3112_v62 = vld [vmem:[#allocation20 + $0x7d8] sm:$0xff] }
 0xb0f   : > { %7866 = vmatpush1.bf16.msra.mxu1 %v7865_v51  ;;  %v7889_v51 = vpack.c.bf16 %v2979_v47, %v2977_v46  ;;  %v3097_v46 = vld [vmem:[#allocation20 + $0x760] sm:$0xff]  ;;  %v3099_v47 = vld [vmem:[#allocation20 + $0x770] sm:$0xff] }
 0xb10   : > { %7868 = vmatprep.subr.bf16.mxu1 %v7867_v56  ;;  %v2988_v56 = vld [vmem:[#allocation20 + $0x698] sm:$0xff]  ;;  %v7925_v50 = vpack.c.bf16 %v3099_v47, %v3097_v46  ;;  %v3219_v46 = vld [vmem:[#allocation20 + $0x890] sm:$0xff]  ;;  %v3222_v47 = vld [vmem:[#allocation20 + $0x8a8] sm:$0xff] }
 0xb11   : > { %7994 = vmatpush3.bf16.msra.mxu0 %v7993_v13  ;;  %v7895_v59 = vpack.c.bf16 %v2988_v56, %v2986_v55  ;;  %v7905_v13 = vpack.c.bf16 %v2995_v11, %v2993_v10  ;;  %v3108_v55 = vld [vmem:[#allocation20 + $0x7b8] sm:$0xff]  ;;  %v3115_v10 = vld [vmem:[#allocation20 + $0x7f0] sm:$0xff]  ;;  %v3202_v11 = vld [vmem:[#allocation20 + $0x808] sm:$0xff] }
 0xb12   : > { %7996 = vmatprep.subr.bf16.mxu0 %v7995_v20  ;;  %v2999_v20 = vld [vmem:[#allocation20 + $0x6f0] sm:$0xff] }
 0xb13   : > { %7870 = vmatpush1.bf16.msra.mxu1 %v7869_v0  ;;  %v7897_v0 = vpack.c.bf16 %v2987_v61, %v2985_v60  ;;  %v3107_v60 = vld [vmem:[#allocation20 + $0x7b0] sm:$0xff]  ;;  %v3110_v61 = vld [vmem:[#allocation20 + $0x7c8] sm:$0xff] }
 0xb14   : > { %7872 = vmatprep.subr.bf16.mxu1 %v7871_v7 }
 0xb15   : > { %7998 = vmatpush3.bf16.msra.mxu0 %v7997_v28  ;;  %v7913_v28 = vpack.c.bf16 %v3087_v26, %v3085_v22  ;;  %v3207_v22 = vld [vmem:[#allocation20 + $0x830] sm:$0xff]  ;;  %v3082_v26 = vld [vmem:[#allocation2 + $0xb] sm:$0xff] }
 0xb16   : > { %8000 = vmatprep.subr.bf16.mxu0 %v7999_v31  ;;  %v3089_v31 = vld [vmem:[#allocation20 + $0x720] sm:$0xff] }
 0xb17   : > { %7874 = vmatpush1.bf16.msra.mxu1 %v7873_v14  ;;  %v7907_v14 = vpack.c.bf16 %v3000_v12, %v2998_v1  ;;  %v3204_v1 = vld [vmem:[#allocation20 + $0x818] sm:$0xff] }
 0xb18   : > { %7876 = vmatprep.subr.bf16.mxu1 %v7875_v9  ;;  %v7909_v9 = vpack.c.bf16 %v2999_v20, %v2997_v17  ;;  %v3203_v17 = vld [vmem:[#allocation20 + $0x810] sm:$0xff]  ;;  %v3206_v20 = vld [vmem:[#allocation20 + $0x828] sm:$0xff] }
 0xb1b   : > { %7878 = vmatpush1.bf16.msra.mxu1 %v7877_v29  ;;  %v7915_v29 = vpack.c.bf16 %v3092_v2, %v3090_v27  ;;  %v3210_v27 = vld [vmem:[#allocation20 + $0x848] sm:$0xff]  ;;  %v3212_v2 = vld [vmem:[#allocation20 + $0x858] sm:$0xff] }
 0xb1c   : > { %7880 = vmatprep.subr.bf16.mxu1 %v7879_v32  ;;  %v3091_v32 = vld [vmem:[#allocation20 + $0x730] sm:$0xff] }
 0xb1e   : > { %2950 = vmatmul.mubr.f32.vlgmr.msra.gmra.mrb[4].mxu1 %v2850_v41  ;;  %v2967_v41 = vld [vmem:[#allocation2 + $0x12] sm:$0xff] }
 0xb1f   : > { %7882 = vmatpush1.bf16.msra.mxu1 %v7881_v37  ;;  %2955 = vmatprep.mubr.f32.mxu1 %v9482_v35  ;;  %v7917_v37 = vpack.c.bf16 %v3091_v32, %v3089_v31  ;;  %v3209_v31 = vld [vmem:[#allocation20 + $0x840] sm:$0xff]  ;;  %v3211_v32 = vld [vmem:[#allocation20 + $0x850] sm:$0xff] }
 0xb20   : > { %7884 = vmatprep.subr.bf16.mxu1 %v7883_v38  ;;  %v7919_v38 = vpack.c.bf16 %v3096_v34, %v3094_v25  ;;  %v3214_v25 = vld [vmem:[#allocation20 + $0x868] sm:$0xff]  ;;  %v3216_v34 = vld [vmem:[#allocation20 + $0x878] sm:$0xff] }
 0xb22   : > { %2956 = vmatmul.mubr.f32.gmra.mrb[6].mxu1 %v2851_v48  ;;  %v3102_v48 = vld [vmem:[#allocation20 + $0x788] sm:$0xff] }
 0xb23   : > { %7886 = vmatpush1.bf16.msra.mxu1 %v7885_v44  ;;  %3065 = vmatprep.mubr.f32.mxu1 %v9482_v35  ;;  %v2991_v35 = vld [vmem:[#allocation20 + $0x6b0] sm:$0xff]  ;;  %v7921_v44 = vpack.c.bf16 %v3095_v40, %v3093_v39  ;;  %v3213_v39 = vld [vmem:[#allocation20 + $0x860] sm:$0xff] }
 0xb24   : > { %7888 = vmatprep.subr.bf16.mxu1 %v7887_v45  ;;  %v7901_v7 = vpack.c.bf16 %v2991_v35, %v2989_v4  ;;  %v7923_v45 = vpack.c.bf16 %v3100_v43, %v3098_v42  ;;  %v3111_v4 = vld [vmem:[#allocation20 + $0x7d0] sm:$0xff]  ;;  %v3114_v35 = vld [vmem:[#allocation20 + $0x7e8] sm:$0xff]  ;;  %v3220_v42 = vld [vmem:[#allocation20 + $0x898] sm:$0xff] }
 0xb25   : > { %v3215_v40 = vld [vmem:[#allocation20 + $0x870] sm:$0xff] }
 0xb26   : > { %v7957_v43 = vpack.c.bf16 %v3215_v40, %v3213_v39 }
 0xb27   : > { %7890 = vmatpush1.bf16.msra.mxu1 %v7889_v51  ;;  %v7927_v51 = vpack.c.bf16 %v3104_v49, %v3102_v48  ;;  %v3224_v48 = vld [vmem:[#allocation20 + $0x8b8] sm:$0xff] }
 0xb28   : > { %7892 = vmatprep.subr.bf16.mxu1 %v7891_v52  ;;  %v3101_v52 = vld [vmem:[#allocation20 + $0x780] sm:$0xff] }
 0xb29   : > { %v7929_v56 = vpack.c.bf16 %v3103_v53, %v3101_v52  ;;  %v3223_v52 = vld [vmem:[#allocation20 + $0x8b0] sm:$0xff]  ;;  %v3226_v53 = vld [vmem:[#allocation20 + $0x8c8] sm:$0xff] }
 0xb2b   : > { %7894 = vmatpush1.bf16.msra.mxu1 %v7893_v57  ;;  %v7931_v57 = vpack.c.bf16 %v3108_v55, %v3106_v54  ;;  %v3228_v54 = vld [vmem:[#allocation20 + $0x8d8] sm:$0xff] }
 0xb2c   : > { %7896 = vmatprep.subr.bf16.mxu1 %v7895_v59  ;;  %v3105_v59 = vld [vmem:[#allocation20 + $0x7a0] sm:$0xff] }
 0xb2d   : > { %v7933_v63 = vpack.c.bf16 %v3107_v60, %v3105_v59  ;;  %v3227_v59 = vld [vmem:[#allocation20 + $0x8d0] sm:$0xff]  ;;  %v3230_v60 = vld [vmem:[#allocation20 + $0x8e8] sm:$0xff] }
 0xb2f   : > { %7898 = vmatpush1.bf16.msra.mxu1 %v7897_v0  ;;  %v7935_v0 = vpack.c.bf16 %v3112_v62, %v3110_v61  ;;  %v3232_v61 = vld [vmem:[#allocation20 + $0x8f8] sm:$0xff] }
 0xb30   : > { %7900 = vmatprep.subr.bf16.mxu1 %v7899_v3  ;;  %v3109_v3 = vld [vmem:[#allocation20 + $0x7c0] sm:$0xff] }
 0xb31   : > { %v7937_v6 = vpack.c.bf16 %v3111_v4, %v3109_v3  ;;  %v3231_v3 = vld [vmem:[#allocation20 + $0x8f0] sm:$0xff] }
 0xb33   : > { %7902 = vmatpush1.bf16.msra.mxu1 %v7901_v7  ;;  %v7939_v7 = vpack.c.bf16 %v3116_v5, %v3114_v35  ;;  %v8899_v35 = vld [vmem:[#allocation2 + $0xc] sm:$0xff]  ;;  %v3199_v5 = vld [vmem:[#allocation2 + $0x14] sm:$0xff] }
 0xb34   : > { %7904 = vmatprep.subr.bf16.mxu1 %v7903_v8  ;;  %v3113_v8 = vld [vmem:[#allocation20 + $0x7e0] sm:$0xff] }
 0xb35   : > { %v7941_v12 = vpack.c.bf16 %v3115_v10, %v3113_v8  ;;  %v3364_v10 = vld [vmem:[#allocation23 + $0xf0] sm:$0xff] }
 0xb37   : > { %7906 = vmatpush1.bf16.msra.mxu1 %v7905_v13  ;;  %v7943_v13 = vpack.c.bf16 %v3204_v1, %v3202_v11  ;;  %v3365_v11 = vld [vmem:[#allocation23 + $0xf8] sm:$0xff] }
 0xb38   : > { %7908 = vmatprep.subr.bf16.mxu1 %v7907_v14  ;;  %v3201_v14 = vld [vmem:[#allocation20 + $0x800] sm:$0xff]  ;;  %v8003_v1 = vpack.c.bf16 %v3365_v11, %v3364_v10  ;;  %v6320_v10 = vld [vmem:[%s11080_s5 + $0x150] sm:$0xff]  ;;  %v6321_v11 = vld [vmem:[%s11080_s5 + $0x158] sm:$0xff] }
 0xb39   : > { %v7945_v23 = vpack.c.bf16 %v3203_v17, %v3201_v14  ;;  %v3314_v17 = vld [vmem:[#allocation21] sm:$0x3] }
 0xb3b   : > { %7910 = vmatpush1.bf16.msra.mxu1 %v7909_v9  ;;  %v7947_v9 = vpack.c.bf16 %v3208_v21, %v3206_v20  ;;  %v3322_v20 = vsub.s32 1, %v10435_v15  ;;  %v3319_v21 = vrot.slane %v3314_v17, %v10440_v18 }
 0xb3c   : > { %7912 = vmatprep.subr.bf16.mxu1 %v7911_v30  ;;  %v3205_v30 = vld [vmem:[#allocation20 + $0x820] sm:$0xff] }
 0xb3e   : > { %3066 = vmatmul.mubr.f32.vlgmr.msra.gmra.mrb[4].mxu1 %v2966_v33  ;;  %v3083_v33 = vld [vmem:[#allocation2 + $0x13] sm:$0xff] }
 0xb3f   : > { %7914 = vmatpush1.bf16.msra.mxu1 %v7913_v28  ;;  %3071 = vmatprep.mubr.f32.mxu1 %v10517_v36  ;;  %v7949_v28 = vpack.c.bf16 %v3207_v22, %v3205_v30 }
 0xb40   : > { %7916 = vmatprep.subr.bf16.mxu1 %v7915_v29  ;;  %v7951_v29 = vpack.c.bf16 %v3212_v2, %v3210_v27 }
 0xb42   : > { %3072 = vmatmul.mubr.f32.gmra.mrb[6].mxu1 %v2967_v41  ;;  %v3218_v41 = vld [vmem:[#allocation20 + $0x888] sm:$0xff] }
 0xb43   : > { %7918 = vmatpush1.bf16.msra.mxu1 %v7917_v37  ;;  %3181 = vmatprep.mubr.f32.mxu1 %v10517_v36  ;;  %v7953_v37 = vpack.c.bf16 %v3211_v32, %v3209_v31 }
 0xb44   : > { %7920 = vmatprep.subr.bf16.mxu1 %v7919_v38  ;;  %v7955_v38 = vpack.c.bf16 %v3216_v34, %v3214_v25  ;;  %v6307_v34 = vld [vmem:[#allocation24] ss:$0 sm:$0xff] }
 0xb47   : > { %7922 = vmatpush1.bf16.msra.mxu1 %v7921_v44  ;;  %v7959_v44 = vpack.c.bf16 %v3220_v42, %v3218_v41 }
 0xb48   : > { %7924 = vmatprep.subr.bf16.mxu1 %v7923_v45  ;;  %v3217_v45 = vld [vmem:[#allocation20 + $0x880] sm:$0xff] }
 0xb49   : > { %v7961_v49 = vpack.c.bf16 %v3219_v46, %v3217_v45  ;;  %v8901_v46 = vld [vmem:[#allocation2 + $0x10] sm:$0xff] }
 0xb4b   : > { %7926 = vmatpush1.bf16.msra.mxu1 %v7925_v50  ;;  %v7963_v50 = vpack.c.bf16 %v3224_v48, %v3222_v47  ;;  %v6310_v48 = vld [vmem:[%s11080_s5 + $0x100] sm:$0xff] }
 0xb4c   : > { %7928 = vmatprep.subr.bf16.mxu1 %v7927_v51  ;;  %v3221_v51 = vld [vmem:[#allocation20 + $0x8a0] sm:$0xff] }
 0xb4d   : > { %v7965_v55 = vpack.c.bf16 %v3223_v52, %v3221_v51  ;;  %v6313_v52 = vld [vmem:[%s11080_s5 + $0x118] sm:$0xff] }
 0xb4f   : > { %7930 = vmatpush1.bf16.msra.mxu1 %v7929_v56  ;;  %v7967_v56 = vpack.c.bf16 %v3228_v54, %v3226_v53 }
 0xb50   : > { %7932 = vmatprep.subr.bf16.mxu1 %v7931_v57  ;;  %v3225_v57 = vld [vmem:[#allocation20 + $0x8c0] sm:$0xff] }
 0xb51   : > { %v7969_v62 = vpack.c.bf16 %v3227_v59, %v3225_v57 }
 0xb53   : > { %7934 = vmatpush1.bf16.msra.mxu1 %v7933_v63  ;;  %v7971_v63 = vpack.c.bf16 %v3232_v61, %v3230_v60 }
 0xb54   : > { %7936 = vmatprep.subr.bf16.mxu1 %v7935_v0  ;;  %v3229_v0 = vld [vmem:[#allocation20 + $0x8e0] sm:$0xff] }
 0xb55   : > { %v7973_v4 = vpack.c.bf16 %v3231_v3, %v3229_v0  ;;  %v6315_v0 = vld [vmem:[%s11080_s5 + $0x128] sm:$0xff] }
 0xb57   : > { %7938 = vmatpush1.bf16.msra.mxu1 %v7937_v6  ;;  %v3346_v6 = vld [vmem:[#allocation23 + $0x60] sm:$0xff] }
 0xb58   : > { %7940 = vmatprep.subr.bf16.mxu1 %v7939_v7  ;;  %v3347_v7 = vld [vmem:[#allocation23 + $0x68] sm:$0xff] }
 0xb59   : > { %v8001_v8 = vpack.c.bf16 %v3347_v7, %v3346_v6  ;;  %v6318_v6 = vld [vmem:[%s11080_s5 + $0x140] sm:$0xff]  ;;  %v6319_v7 = vld [vmem:[%s11080_s5 + $0x148] sm:$0xff] }
 0xb5b   : > { %7942 = vmatpush1.bf16.msra.mxu1 %v7941_v12  ;;  %8002 = vmatpush3.bf16.msra.mxu0 %v8001_v8  ;;  %v3348_v12 = vld [vmem:[#allocation23 + $0x70] sm:$0xff]  ;;  %v8023_v8 = vpack.c.bf16 %v6319_v7, %v6318_v6  ;;  %v6346_v6 = vld [vmem:[%s11082_s22 + $0x110] sm:$0xff] }
 0xb5c   : > { %7944 = vmatprep.subr.bf16.mxu1 %v7943_v13  ;;  %v3349_v13 = vld [vmem:[#allocation23 + $0x78] sm:$0xff]  ;;  %8004 = vmatprep.subr.bf16.mxu0 %v8003_v1  ;;  %v8027_v1 = vpack.c.bf16 %v6321_v11, %v6320_v10  ;;  %v6347_v7 = vld [vmem:[%s11082_s22 + $0x118] sm:$0xff]  ;;  %v6349_v11 = vld [vmem:[%s11082_s22 + $0x128] sm:$0xff] }
 0xb5d   : > { %v8005_v14 = vpack.c.bf16 %v3349_v13, %v3348_v12  ;;  %v6322_v12 = vld [vmem:[%s11080_s5 + $0x160] sm:$0xff]  ;;  %v6323_v13 = vld [vmem:[%s11080_s5 + $0x168] sm:$0xff] }
 0xb5e   : > { %3182 = vmatmul.mubr.f32.vlgmr.msra.gmra.mrb[4].mxu1 %v3082_v26  ;;  %v6348_v10 = vld [vmem:[%s11082_s22 + $0x120] sm:$0xff] }
 0xb5f   : > { %7946 = vmatpush1.bf16.msra.mxu1 %v7945_v23  ;;  %3187 = vmatprep.mubr.f32.mxu1 %v10517_v36 }
 0xb60   : > { %7948 = vmatprep.subr.bf16.mxu1 %v7947_v9  ;;  %8006 = vmatpush3.bf16.msra.mxu0 %v8005_v14  ;;  %v8031_v14 = vpack.c.bf16 %v6323_v13, %v6322_v12  ;;  %v6350_v12 = vld [vmem:[%s11082_s22 + $0x130] sm:$0xff]  ;;  %v6351_v13 = vld [vmem:[%s11082_s22 + $0x138] sm:$0xff] }
 0xb62   : > { %3188 = vmatmul.mubr.f32.gmra.mrb[6].mxu1 %v3083_v33 }
 0xb63   : > { %7950 = vmatpush1.bf16.msra.mxu1 %v7949_v28  ;;  %3297 = vmatprep.mubr.f32.mxu1 %v10517_v36 }
 0xb64   : > { %7952 = vmatprep.subr.bf16.mxu1 %v7951_v29 }
 0xb67   : > { %7954 = vmatpush1.bf16.msra.mxu1 %v7953_v37 }
 0xb68   : > { %7956 = vmatprep.subr.bf16.mxu1 %v7955_v38 }
 0xb6b   : > { %7958 = vmatpush1.bf16.msra.mxu1 %v7957_v43  ;;  %v8900_v43 = vld [vmem:[#allocation2 + $0x8] sm:$0xff] }
 0xb6c   : > { %7960 = vmatprep.subr.bf16.mxu1 %v7959_v44 }
 0xb6f   : > { %7962 = vmatpush1.bf16.msra.mxu1 %v7961_v49  ;;  %v6311_v49 = vld [vmem:[%s11080_s5 + $0x108] sm:$0xff] }
 0xb70   : > { %7964 = vmatprep.subr.bf16.mxu1 %v7963_v50  ;;  %v6312_v50 = vld [vmem:[%s11080_s5 + $0x110] sm:$0xff]  ;;  %v8007_v51 = vpack.c.bf16 %v6311_v49, %v6310_v48  ;;  %v6332_v48 = vld [vmem:[%s11081_s6 + $0x128] sm:$0xff] }
 0xb71   : > { %v8011_v53 = vpack.c.bf16 %v6313_v52, %v6312_v50  ;;  %v6333_v50 = vld [vmem:[%s11081_s6 + $0x130] sm:$0xff] }
 0xb72   : > { %8008 = vmatprep.subr.bf16.mxu0 %v8007_v51 }
 0xb73   : > { %7966 = vmatpush1.bf16.msra.mxu1 %v7965_v55 }
 0xb74   : > { %7968 = vmatprep.subr.bf16.mxu1 %v7967_v56 }
 0xb77   : > { %7970 = vmatpush1.bf16.msra.mxu1 %v7969_v62 }
 0xb78   : > { %7972 = vmatprep.subr.bf16.mxu1 %v7971_v63  ;;  %v6314_v63 = vld [vmem:[%s11080_s5 + $0x120] sm:$0xff] }
 0xb79   : > { %v8015_v3 = vpack.c.bf16 %v6315_v0, %v6314_v63  ;;  %v6341_v63 = vld [vmem:[%s11081_s6 + $0x170] sm:$0xff]  ;;  %v6342_v0 = vld [vmem:[%s11081_s6 + $0x178] sm:$0xff] }
 0xb7b   : > { %7974 = vmatpush1.bf16.msra.mxu1 %v7973_v4  ;;  %v6316_v4 = vld [vmem:[%s11080_s5 + $0x130] sm:$0xff] }
 0xb7e   : > { %3298 = vmatmul.mubr.f32.vlgmr.msra.gmra.mrb[4].mxu1 %v8899_v35  ;;  %v6317_v35 = vld [vmem:[%s11080_s5 + $0x138] sm:$0xff] }
 0xb7f   : > { %3303 = vmatprep.mubr.f32.mxu1 %v10517_v36 }
 0xb82   : > { %3304 = vmatmul.mubr.f32.gmra.mrb[6].mxu1 %v3199_v5  ;;  %v8019_v5 = vpack.c.bf16 %v6317_v35, %v6316_v4  ;;  %v6344_v4 = vld [vmem:[%s11082_s22 + $0x100] sm:$0xff]  ;;  %v6345_v35 = vld [vmem:[%s11082_s22 + $0x108] sm:$0xff] }
 0xb83   : > { %4852 = vmatprep.mubr.f32.mxu1 %v10517_v36  ;;  %v3323_v36 = vrot.slane %v3314_v17, %v3322_v20  ;;  %v6324_v17 = vld [vmem:[%s11080_s5 + $0x170] sm:$0xff] }
 0xc51   : > { %v3299_v23 = vpop.f32.mrb[4].mxu1 }
 0xc52   : > { %v3326_v9 = vadd.f32 %v3319_v21, %v3299_v23  ;;  %v3301_v30 = vpop.f32.mrb[5].mxu1  ;;  %v6327_v23 = vld [vmem:[%s11081_s6 + $0x100] sm:$0xff] }
 0xc53   : > { %v3327_v22 = vadd.f32 %v3323_v36, %v3301_v30 }
 0xc54   : > { %v3330_v2 = vmax.f32 %v3326_v9, 0.0  ;;  %v6328_v9 = vld [vmem:[%s11081_s6 + $0x108] sm:$0xff] }
 0xc55   : > { %v3331_v26 = vmax.f32 %v3327_v22, 0.0  ;;  %v3305_v27 = vpop.f32.mrb[6].mxu1  ;;  %v8039_v30 = vpack.c.bf16 %v6328_v9, %v6327_v23  ;;  %v6354_v23 = vld [vmem:[%s11082_s22 + $0x150] sm:$0xff]  ;;  %v6355_v9 = vld [vmem:[%s11082_s22 + $0x158] sm:$0xff] }
 0xc56   : > { %v3328_v28 = vadd.f32 %v3319_v21, %v3305_v27  ;;  %v3307_v29 = vpop.f32.mrb[7].mxu1  ;;  %v6325_v21 = vld [vmem:[%s11080_s5 + $0x178] sm:$0xff] }
 0xc57   : > { %v3329_v31 = vadd.f32 %v3323_v36, %v3307_v29  ;;  %3437 = vmatprep.mubr.f32.mxu0 %v3331_v26  ;;  %v8035_v36 = vpack.c.bf16 %v6325_v21, %v6324_v17  ;;  %v6352_v17 = vld [vmem:[%s11082_s22 + $0x140] sm:$0xff]  ;;  %v6353_v21 = vld [vmem:[%s11082_s22 + $0x148] sm:$0xff] }
 0xc58   : > { %3438 = vmatmul.mubr.f32.vlgmr.msra.gmra.mrb[20].mxu0 %v3330_v2  ;;  %v3332_v33 = vmax.f32 %v3328_v28, 0.0 }
 0xc59   : > { %v3333_v32 = vmax.f32 %v3329_v31, 0.0  ;;  %8010 = vmatpush3.bf16.msra.mxu0 %v8007_v51  ;;  %v6334_v51 = vld [vmem:[%s11081_s6 + $0x138] sm:$0xff] }
 0xc5a   : > { %8012 = vmatprep.subr.bf16.mxu0 %v8011_v53  ;;  %v8051_v52 = vpack.c.bf16 %v6334_v51, %v6333_v50 }
 0xc5b   : > { %3442 = vmatprep.mubr.f32.mxu0 %v3333_v32  ;;  %v6308_v32 = vld [vmem:[#allocation26] ss:$0 sm:$0xff] }
 0xc5c   : > { %3443 = vmatmul.mubr.f32.gmra.mrb[22].mxu0 %v3332_v33 }
 0xc5d   : > { %8014 = vmatpush3.bf16.msra.mxu0 %v8011_v53  ;;  %v6335_v53 = vld [vmem:[%s11081_s6 + $0x140] sm:$0xff] }
 0xc5e   : > { %8016 = vmatprep.subr.bf16.mxu0 %v8015_v3 }
 0xc61   : > { %8018 = vmatpush3.bf16.msra.mxu0 %v8015_v3  ;;  %v8067_v3 = vpack.c.bf16 %v6342_v0, %v6341_v63 }
 0xc62   : > { %8020 = vmatprep.subr.bf16.mxu0 %v8019_v5 }
 0xc65   : > { %8022 = vmatpush3.bf16.msra.mxu0 %v8019_v5  ;;  %v8071_v5 = vpack.c.bf16 %v6345_v35, %v6344_v4 }
 0xc66   : > { %8024 = vmatprep.subr.bf16.mxu0 %v8023_v8 }
 0xc69   : > { %8026 = vmatpush3.bf16.msra.mxu0 %v8023_v8  ;;  %v8075_v8 = vpack.c.bf16 %v6347_v7, %v6346_v6  ;;  %v6367_v7 = vld [vmem:[%s11080_s5 + $0x180] sm:$0xff] }
 0xc6a   : > { %8028 = vmatprep.subr.bf16.mxu0 %v8027_v1 }
 0xc6d   : > { %8030 = vmatpush3.bf16.msra.mxu0 %v8027_v1  ;;  %v8079_v1 = vpack.c.bf16 %v6349_v11, %v6348_v10 }
 0xc6e   : > { %8032 = vmatprep.subr.bf16.mxu0 %v8031_v14 }
 0xc71   : > { %8034 = vmatpush3.bf16.msra.mxu0 %v8031_v14  ;;  %v8083_v14 = vpack.c.bf16 %v6351_v13, %v6350_v12  ;;  %v6369_v13 = vld [vmem:[%s11080_s5 + $0x190] sm:$0xff] }
 0xc72   : > { %8036 = vmatprep.subr.bf16.mxu0 %v8035_v36 }
 0xc75   : > { %8038 = vmatpush3.bf16.msra.mxu0 %v8035_v36  ;;  %v8087_v36 = vpack.c.bf16 %v6353_v21, %v6352_v17 }
 0xc76   : > { %8040 = vmatprep.subr.bf16.mxu0 %v8039_v30 }
 0xd2b   : > { %v6636_v25 = vpop.f32.mrb[20].mxu0 }
 0xd2c   : > { %v6637_v37 = vpop.f32.mrb[21].mxu0 }
 0xd2d   : > { %v6638_v38 = vadd.f32 %v6637_v37, %v6636_v25  ;;  %v6309_v25 = vld [vmem:[#allocation27] ss:$0 sm:$0xff] }
 0xd2f   : > { %v3440_v39 = vadd.f32 %v6638_v38, %v6307_v34  ;;  %v6639_v40 = vpop.f32.mrb[22].mxu0 }
 0xd30   : > { %v6640_v41 = vpop.f32.mrb[23].mxu0 }
 0xd31   : > { %v6641_v42 = vadd.f32 %v6640_v41, %v6639_v40  ;;  %v3448_v44 = vadd.f32 %v8900_v43, %v3440_v39  ;;  %v6330_v43 = vld [vmem:[%s11081_s6 + $0x118] sm:$0xff] }
 0xd33   : > { %v3445_v45 = vadd.f32 %v6641_v42, %v6307_v34  ;;  %3452 = vadd.xlane.f32.xlu1 %v3448_v44  ;;  %v6329_v42 = vld [vmem:[%s11081_s6 + $0x110] sm:$0xff] }
 0xd35   : > { %v3449_v47 = vadd.f32 %v8901_v46, %v3445_v45  ;;  %v8043_v46 = vpack.c.bf16 %v6330_v43, %v6329_v42 }
 0xd37   : > { %3454 = vadd.xlane.f32.xlu0 %v3449_v47 }
 0xdc0   : > { %v3453_v54 = vpop.xlane.xlu1 %3452 }
 0xdc1   : > { %v3456_v55 = vmul.f32 0.0078125, %v3453_v54  ;;  %v6336_v54 = vld [vmem:[%s11081_s6 + $0x148] sm:$0xff] }
 0xdc3   : > { %v3458_v56 = vsub.f32 %v3448_v44, %v3456_v55  ;;  %v8055_v55 = vpack.c.bf16 %v6336_v54, %v6335_v53 }
 0xdc4   : > { %v3455_v57 = vpop.xlane.xlu0 %3454 }
 0xdc5   : > { %v3457_v59 = vmul.f32 0.0078125, %v3455_v57  ;;  %v3460_v60 = vmul.f32 %v3458_v56, %v3458_v56  ;;  %v6338_v57 = vld [vmem:[%s11081_s6 + $0x158] sm:$0xff] }
 0xdc7   : > { %v3459_v61 = vsub.f32 %v3449_v47, %v3457_v59  ;;  %3462 = vadd.xlane.f32.xlu1 %v3460_v60  ;;  %v6331_v47 = vld [vmem:[%s11081_s6 + $0x120] sm:$0xff] }
 0xdc8   : > { %v8047_v49 = vpack.c.bf16 %v6332_v48, %v6331_v47  ;;  %v6339_v60 = vld [vmem:[%s11081_s6 + $0x160] sm:$0xff] }
 0xdc9   : > { %v3461_v62 = vmul.f32 %v3459_v61, %v3459_v61 }
 0xdcb   : > { %3464 = vadd.xlane.f32.xlu0 %v3461_v62 }
 0xe54   : > { %v3463_v22 = vpop.xlane.xlu1 %3462 }
 0xe55   : > { %v3466_v26 = vmul.f32 0.0078125, %v3463_v22  ;;  %v6356_v22 = vld [vmem:[%s11082_s22 + $0x160] sm:$0xff] }
 0xe57   : > { %v3468_v27 = vadd.f32 1e-05, %v3466_v26  ;;  %v6357_v26 = vld [vmem:[%s11082_s22 + $0x168] sm:$0xff] }
 0xe58   : > { %v3465_v2 = vpop.xlane.xlu0 %3464 }
 0xe59   : > { %8870 = vrsqrt.f32 %v3468_v27  ;;  %v3467_v28 = vmul.f32 0.0078125, %v3465_v2  ;;  %v8095_v27 = vpack.c.bf16 %v6357_v26, %v6356_v22  ;;  %v6358_v2 = vld [vmem:[%s11082_s22 + $0x170] sm:$0xff] }
 0xe5a   : > { %v6373_v26 = vld [vmem:[%s11080_s5 + $0x1b0] sm:$0xff] }
 0xe5b   : > { %v3469_v29 = vadd.f32 1e-05, %v3467_v28  ;;  %v6359_v28 = vld [vmem:[%s11082_s22 + $0x178] sm:$0xff] }
 0xe5d   : > { %8872 = vrsqrt.f32 %v3469_v29  ;;  %v8099_v29 = vpack.c.bf16 %v6359_v28, %v6358_v2  ;;  %v6375_v28 = vld [vmem:[%s11080_s5 + $0x1c0] sm:$0xff] }
 0xe63   : > { %v8871_v31 = vpop.eup %8870 }
 0xe64   : > { %v3472_v33 = vmul.f32 %v8871_v31, %v3458_v56  ;;  %v6337_v56 = vld [vmem:[%s11081_s6 + $0x150] sm:$0xff] }
 0xe65   : > { %v8059_v59 = vpack.c.bf16 %v6338_v57, %v6337_v56  ;;  %v6326_v31 = vld [vmem:[#allocation9 + $0x2] ss:$0 sm:$0xff] }
 0xe66   : > { %v3480_v34 = vmul.f32 %v6308_v32, %v3472_v33 }
 0xe67   : > { %v8873_v37 = vpop.eup %8872 }
 0xe68   : > { %v3488_v38 = vadd.f32 %v6309_v25, %v3480_v34  ;;  %v3473_v39 = vmul.f32 %v8873_v37, %v3459_v61  ;;  %v6340_v61 = vld [vmem:[%s11081_s6 + $0x168] sm:$0xff]  ;;  %v6343_v34 = vld [vmem:[#allocation11 + $0x2] ss:$0 sm:$0xff] }
 0xe69   : > { %v8063_v62 = vpack.c.bf16 %v6340_v61, %v6339_v60 }
 0xe6a   : > { %v10584_v40 = vmul.f32 %v3488_v38, %v10490_v16  ;;  %v3481_v41 = vmul.f32 %v6308_v32, %v3473_v39 }
 0xe6c   : > { %v3489_v44 = vadd.f32 %v6309_v25, %v3481_v41  ;;  %7167 = vmatprep.mubr.f32.mxu0 %v10584_v40 }
 0xe6e   : > { %v10594_v45 = vmul.f32 %v3489_v44, %v10497_v24  ;;  %v6360_v44 = vld [vmem:[#allocation12 + $0x2] ss:$0 sm:$0xff] }
 0xe70   : > { %7168 = vmatmul.mubr.f32.vlgmr.msra.gmra.mrb[24].mxu0 %v10594_v45 }
 0xe71   : > { %8042 = vmatpush3.bf16.msra.mxu0 %v8039_v30  ;;  %7202 = vmatprep.mubr.f32.mxu0 %v10584_v40  ;;  %v8091_v30 = vpack.c.bf16 %v6355_v9, %v6354_v23  ;;  %v6371_v9 = vld [vmem:[%s11080_s5 + $0x1a0] sm:$0xff] }
 0xe72   : > { %8044 = vmatprep.subr.bf16.mxu0 %v8043_v46 }
 0xe75   : > { %8046 = vmatpush3.bf16.msra.mxu0 %v8043_v46 }
 0xe76   : > { %8048 = vmatprep.subr.bf16.mxu0 %v8047_v49 }
 0xe79   : > { %8050 = vmatpush3.bf16.msra.mxu0 %v8047_v49 }
 0xe7a   : > { %8052 = vmatprep.subr.bf16.mxu0 %v8051_v52 }
 0xe7d   : > { %8054 = vmatpush3.bf16.msra.mxu0 %v8051_v52 }
 0xe7e   : > { %8056 = vmatprep.subr.bf16.mxu0 %v8055_v55 }
 0xe81   : > { %8058 = vmatpush3.bf16.msra.mxu0 %v8055_v55 }
 0xe82   : > { %8060 = vmatprep.subr.bf16.mxu0 %v8059_v59 }
 0xe85   : > { %8062 = vmatpush3.bf16.msra.mxu0 %v8059_v59 }
 0xe86   : > { %8064 = vmatprep.subr.bf16.mxu0 %v8063_v62 }
 0xe89   : > { %8066 = vmatpush3.bf16.msra.mxu0 %v8063_v62 }
 0xe8a   : > { %8068 = vmatprep.subr.bf16.mxu0 %v8067_v3 }
 0xe8d   : > { %8070 = vmatpush3.bf16.msra.mxu0 %v8067_v3 }
 0xe8e   : > { %8072 = vmatprep.subr.bf16.mxu0 %v8071_v5 }
 0xe90   : > { %7203 = vmatmul.mubr.f32.vlgmr.msra.gmra.mrb[26].mxu0 %v10594_v45 }
 0xe91   : > { %8074 = vmatpush3.bf16.msra.mxu0 %v8071_v5  ;;  %7237 = vmatprep.mubr.f32.mxu0 %v10584_v40 }
 0xe92   : > { %8076 = vmatprep.subr.bf16.mxu0 %v8075_v8 }
 0xe95   : > { %8078 = vmatpush3.bf16.msra.mxu0 %v8075_v8  ;;  %v6368_v8 = vld [vmem:[%s11080_s5 + $0x188] sm:$0xff] }
 0xe96   : > { %8080 = vmatprep.subr.bf16.mxu0 %v8079_v1  ;;  %v8113_v10 = vpack.c.bf16 %v6368_v8, %v6367_v7  ;;  %v6402_v7 = vld [vmem:[%s11082_s22 + $0x188] sm:$0xff] }
 0xe99   : > { %8082 = vmatpush3.bf16.msra.mxu0 %v8079_v1 }
 0xe9a   : > { %8084 = vmatprep.subr.bf16.mxu0 %v8083_v14 }
 0xe9d   : > { %8086 = vmatpush3.bf16.msra.mxu0 %v8083_v14  ;;  %v6370_v14 = vld [vmem:[%s11080_s5 + $0x198] sm:$0xff] }
 0xe9e   : > { %8088 = vmatprep.subr.bf16.mxu0 %v8087_v36  ;;  %v8117_v23 = vpack.c.bf16 %v6370_v14, %v6369_v13  ;;  %v6406_v13 = vld [vmem:[%s11082_s22 + $0x1a8] sm:$0xff] }
 0xea1   : > { %8090 = vmatpush3.bf16.msra.mxu0 %v8087_v36 }
 0xea2   : > { %8092 = vmatprep.subr.bf16.mxu0 %v8091_v30 }
 0xea5   : > { %8094 = vmatpush3.bf16.msra.mxu0 %v8091_v30  ;;  %v6372_v30 = vld [vmem:[%s11080_s5 + $0x1a8] sm:$0xff] }
 0xea6   : > { %8096 = vmatprep.subr.bf16.mxu0 %v8095_v27  ;;  %v8121_v22 = vpack.c.bf16 %v6372_v30, %v6371_v9  ;;  %v6410_v9 = vld [vmem:[%s11082_s22 + $0x1c8] sm:$0xff] }
 0xea9   : > { %8098 = vmatpush3.bf16.msra.mxu0 %v8095_v27  ;;  %v6374_v27 = vld [vmem:[%s11080_s5 + $0x1b8] sm:$0xff] }
 0xeaa   : > { %8100 = vmatprep.subr.bf16.mxu0 %v8099_v29  ;;  %v8125_v2 = vpack.c.bf16 %v6374_v27, %v6373_v26  ;;  %v6412_v26 = vld [vmem:[%s11082_s22 + $0x1d8] sm:$0xff] }
 0xead   : > { %8102 = vmatpush3.bf16.msra.mxu0 %v8099_v29  ;;  %v6376_v29 = vld [vmem:[%s11080_s5 + $0x1c8] sm:$0xff] }
 0xeb0   : > { %7238 = vmatmul.mubr.f32.vlgmr.msra.gmra.mrb[28].mxu0 %v10594_v45 }
 0xf43   : > { %v7169_v32 = vpop.f32.mrb[24].mxu0 }
 0xf44   : > { %v3583_v33 = vpop.f32.mrb[25].mxu0  ;;  %v3589_v43 = vadd.f32 %v7169_v32, %v6326_v31  ;;  %v6377_v32 = vld [vmem:[%s11080_s5 + $0x1d0] sm:$0xff] }
 0xf45   : > { %v3584_v25 = vadd.f32 %v6326_v31, %v3583_v33  ;;  %v8129_v31 = vpack.c.bf16 %v6376_v29, %v6375_v28  ;;  %v6378_v33 = vld [vmem:[%s11080_s5 + $0x1d8] sm:$0xff]  ;;  %v6414_v28 = vld [vmem:[%s11082_s22 + $0x1e8] sm:$0xff] }
 0xf47   : > { %7244 = vmatprep.mubr.msk.f32.mxu0 %vm1338_vm2, %v3584_v25  ;;  %v8133_v25 = vpack.c.bf16 %v6378_v33, %v6377_v32  ;;  %v6416_v32 = vld [vmem:[%s11082_s22 + $0x1f8] sm:$0xff] }
 0xf63   : > { %v7204_v37 = vpop.f32.mrb[26].mxu0 }
 0xf64   : > { %v3689_v38 = vadd.f32 %v7204_v37, %v6343_v34  ;;  %v3683_v39 = vpop.f32.mrb[27].mxu0  ;;  %v6380_v37 = vld [vmem:[%s11080_s5 + $0x1e8] sm:$0xff] }
 0xf65   : > { %v3684_v41 = vadd.f32 %v6343_v34, %v3683_v39  ;;  %v6379_v34 = vld [vmem:[%s11080_s5 + $0x1e0] sm:$0xff]  ;;  %v6381_v39 = vld [vmem:[%s11080_s5 + $0x1f0] sm:$0xff] }
 0xf67   : > { %v8103_v42 = vpack.c.bf16 %v3689_v38, %v3684_v41  ;;  %v8137_v38 = vpack.c.bf16 %v6380_v37, %v6379_v34  ;;  %v6382_v41 = vld [vmem:[%s11080_s5 + $0x1f8] sm:$0xff]  ;;  %v6383_v37 = vld [vmem:[#allocation9 + $0x3] ss:$0 sm:$0xff] }
 0xf69   : > { %8105 = vmatprep.subr.msk.bf16.mxu0 %vm10281_vm3, %v8103_v42 }
 0xf6a   : > { %8108 = vmatpush3.bf16.xpose.msk.msra.mxu0 %vm10281_vm3, %v8103_v42  ;;  %v8141_v42 = vpack.c.bf16 %v6382_v41, %v6381_v39 }
 0xf71   : > { %7245 = vmatmul.mubr.msk.f32.vlgmr.msra.gmra.mrb[30].mxu0 %vm1338_vm2, %v3589_v43  ;;  %v6384_v43 = vld [vmem:[%s11081_s6 + $0x180] sm:$0xff] }
 0xf83   : > { %v7239_v46 = vpop.f32.mrb[28].mxu0 }
 0xf84   : > { %v3789_v47 = vadd.f32 %v7239_v46, %v6360_v44  ;;  %v3783_v48 = vpop.f32.mrb[29].mxu0 }
 0xf85   : > { %v3784_v49 = vadd.f32 %v6360_v44, %v3783_v48  ;;  %v6385_v44 = vld [vmem:[%s11081_s6 + $0x188] sm:$0xff]  ;;  %v6387_v48 = vld [vmem:[%s11081_s6 + $0x198] sm:$0xff] }
 0xf86   : > { %v8145_v46 = vpack.c.bf16 %v6385_v44, %v6384_v43 }
 0xf87   : > { %v8109_v50 = vpack.c.bf16 %v3789_v47, %v3784_v49  ;;  %v6386_v47 = vld [vmem:[%s11081_s6 + $0x190] sm:$0xff] }
 0xf88   : > { %v8149_v49 = vpack.c.bf16 %v6387_v48, %v6386_v47 }
 0xf89   : > { %8110 = vmatprep.subr.bf16.mxu0 %v8109_v50 }
 0xf8a   : > { %8112 = vmatpush3.bf16.msra.mxu0 %v8109_v50  ;;  %v6388_v50 = vld [vmem:[%s11081_s6 + $0x1a0] sm:$0xff] }
 0xf8b   : > { %8114 = vmatprep.subr.bf16.mxu0 %v8113_v10 }
0x1044   : > { %v7246_v51 = vpop.f32.mrb[30].mxu0 }
0x1045   : > { %v3880_v52 = vmul.f32 0.125, %v7246_v51  ;;  %v3870_v53 = vpop.f32.mrb[31].mxu0  ;;  %v6389_v51 = vld [vmem:[%s11081_s6 + $0x1a8] sm:$0xff] }
0x1046   : > { %v3879_v54 = vmul.f32 0.125, %v3870_v53  ;;  %v6390_v53 = vld [vmem:[%s11081_s6 + $0x1b0] sm:$0xff] }
0x1047   : > { %v3882_v55 = vadd.f32 %v3880_v52, %v10443_v19  ;;  %v8153_v52 = vpack.c.bf16 %v6389_v51, %v6388_v50  ;;  %v6417_v50 = vld [vmem:[#allocation12 + $0x3] ss:$0 sm:$0xff] }
0x1048   : > { %v3881_v56 = vadd.f32 %v3879_v54, %v10443_v19  ;;  %v6391_v54 = vld [vmem:[%s11081_s6 + $0x1b8] sm:$0xff] }
0x1049   : > { %v3886_v57 = vsel %vm1436_vm4, %v3882_v55, -inf }
0x104a   : > { %3887 = vmax.xlane.f32.xlu0 %v3886_v57  ;;  %v3883_v59 = vsel %vm1436_vm4, %v3881_v56, -inf  ;;  %v6393_v57 = vld [vmem:[%s11081_s6 + $0x1c8] sm:$0xff] }
0x104b   : > { %3884 = vmax.xlane.f32.xlu1 %v3883_v59 }
0x10d7   : > { %v3888_v60 = vpop.xlane.xlu0 %3887 }
0x10d8   : > { %v3890_v61 = vsub.f32 %v3882_v55, %v3888_v60  ;;  %v3885_v62 = vpop.xlane.xlu1 %3884  ;;  %v8157_v55 = vpack.c.bf16 %v6391_v54, %v6390_v53  ;;  %v6394_v60 = vld [vmem:[%s11081_s6 + $0x1d0] sm:$0xff] }
0x10d9   : > { %v3889_v63 = vsub.f32 %v3881_v56, %v3885_v62  ;;  %v6392_v56 = vld [vmem:[%s11081_s6 + $0x1c0] sm:$0xff] }
0x10da   : > { %v3893_v0 = vmul.f32 1.442695, %v3890_v61  ;;  %v8161_v59 = vpack.c.bf16 %v6393_v57, %v6392_v56  ;;  %v6395_v61 = vld [vmem:[%s11081_s6 + $0x1d8] sm:$0xff] }
0x10db   : > { %v3891_v3 = vmul.f32 1.442695, %v3889_v63  ;;  %v8165_v62 = vpack.c.bf16 %v6395_v61, %v6394_v60  ;;  %v6396_v63 = vld [vmem:[%s11081_s6 + $0x1e0] sm:$0xff] }
0x10dc   : > { %8874 = vpow2.f32 %v3893_v0  ;;  %v6397_v0 = vld [vmem:[%s11081_s6 + $0x1e8] sm:$0xff] }
0x10dd   : > { %8876 = vpow2.f32 %v3891_v3  ;;  %v8169_v3 = vpack.c.bf16 %v6397_v0, %v6396_v63 }
0x10e6   : > { %v8875_v4 = vpop.eup %8874 }
0x10e7   : > { %v8877_v35 = vpop.eup %8876  ;;  %v3898_v5 = vsel %vm1436_vm4, %v8875_v4, 0.0 }
0x10e8   : > { %3899 = vadd.xlane.f32.xlu0 %v3898_v5  ;;  %v3895_v6 = vsel %vm1436_vm4, %v8877_v35, 0.0 }
0x10e9   : > { %3896 = vadd.xlane.f32.xlu1 %v3895_v6  ;;  %v6401_v6 = vld [vmem:[%s11082_s22 + $0x180] sm:$0xff] }
0x10ea   : > { %v8177_v8 = vpack.c.bf16 %v6402_v7, %v6401_v6 }
0x1175   : > { %v3900_v11 = vpop.xlane.xlu0 %3899 }
0x1176   : > { %8878 = vrcp.f32 %v3900_v11  ;;  %v3897_v1 = vpop.xlane.xlu1 %3896  ;;  %v6404_v11 = vld [vmem:[%s11082_s22 + $0x198] sm:$0xff] }
0x1177   : > { %8880 = vrcp.f32 %v3897_v1 }
0x1180   : > { %v8879_v12 = vpop.eup %8878 }
0x1181   : > { %v8881_v17 = vpop.eup %8880  ;;  %v3904_v36 = vmul.f32 %v8879_v12, %v8875_v4  ;;  %v6398_v4 = vld [vmem:[%s11081_s6 + $0x1f0] sm:$0xff]  ;;  %v6405_v12 = vld [vmem:[%s11082_s22 + $0x1a0] sm:$0xff] }
0x1182   : > { %v3902_v21 = vmul.f32 %v8881_v17, %v8877_v35  ;;  %v6399_v35 = vld [vmem:[%s11081_s6 + $0x1f8] sm:$0xff]  ;;  %v8185_v14 = vpack.c.bf16 %v6406_v13, %v6405_v12  ;;  %v6407_v17 = vld [vmem:[%s11082_s22 + $0x1b0] sm:$0xff] }
0x1183   : > { %v8173_v5 = vpack.c.bf16 %v6399_v35, %v6398_v4 }
0x1184   : > { %7251 = vmatprep.mubr.msk.f32.mxu0 %vm1436_vm4, %v3902_v21  ;;  %v6408_v21 = vld [vmem:[%s11082_s22 + $0x1b8] sm:$0xff] }
0x1185   : > { %7252 = vmatmul.mubr.msk.f32.vlgmr.msra.gmra.mrb[32].mxu0 %vm1436_vm4, %v3904_v36  ;;  %v8189_v36 = vpack.c.bf16 %v6408_v21, %v6407_v17  ;;  %v4492_v21 = vld [vmem:[#allocation14 + $0xd0] sm:$0xff] }
0x1186   : > { %8116 = vmatpush3.bf16.msra.mxu0 %v8113_v10  ;;  %7286 = vmatprep.mubr.f32.mxu0 %v10584_v40  ;;  %v6403_v10 = vld [vmem:[%s11082_s22 + $0x190] sm:$0xff] }
0x1187   : > { %8118 = vmatprep.subr.bf16.mxu0 %v8117_v23  ;;  %v8181_v1 = vpack.c.bf16 %v6404_v11, %v6403_v10  ;;  %v4490_v11 = vld [vmem:[#allocation14 + $0xc0] sm:$0xff] }
0x118a   : > { %8120 = vmatpush3.bf16.msra.mxu0 %v8117_v23  ;;  %v6409_v23 = vld [vmem:[%s11082_s22 + $0x1c0] sm:$0xff] }
0x118b   : > { %8122 = vmatprep.subr.bf16.mxu0 %v8121_v22  ;;  %v8193_v30 = vpack.c.bf16 %v6410_v9, %v6409_v23 }
0x118e   : > { %8124 = vmatpush3.bf16.msra.mxu0 %v8121_v22  ;;  %v6411_v22 = vld [vmem:[%s11082_s22 + $0x1d0] sm:$0xff] }
0x118f   : > { %8126 = vmatprep.subr.bf16.mxu0 %v8125_v2  ;;  %v8197_v27 = vpack.c.bf16 %v6412_v26, %v6411_v22  ;;  %v4494_v26 = vld [vmem:[#allocation14 + $0xe0] sm:$0xff] }
0x1192   : > { %8128 = vmatpush3.bf16.msra.mxu0 %v8125_v2  ;;  %v6413_v2 = vld [vmem:[%s11082_s22 + $0x1e0] sm:$0xff] }
0x1193   : > { %8130 = vmatprep.subr.bf16.mxu0 %v8129_v31  ;;  %v8201_v29 = vpack.c.bf16 %v6414_v28, %v6413_v2  ;;  %v4496_v28 = vld [vmem:[#allocation14 + $0xf0] sm:$0xff] }
0x1196   : > { %8132 = vmatpush3.bf16.msra.mxu0 %v8129_v31  ;;  %v6415_v31 = vld [vmem:[%s11082_s22 + $0x1f0] sm:$0xff] }
0x1197   : > { %8134 = vmatprep.subr.bf16.mxu0 %v8133_v25  ;;  %v8205_v33 = vpack.c.bf16 %v6416_v32, %v6415_v31  ;;  %v3987_v32 = vld [vmem:[#allocation14 + $0x80] sm:$0xff] }
0x119a   : > { %8136 = vmatpush3.bf16.msra.mxu0 %v8133_v25 }
0x119b   : > { %8138 = vmatprep.subr.bf16.mxu0 %v8137_v38 }
0x119e   : > { %8140 = vmatpush3.bf16.msra.mxu0 %v8137_v38 }
0x119f   : > { %8142 = vmatprep.subr.bf16.mxu0 %v8141_v42 }
0x11a2   : > { %8144 = vmatpush3.bf16.msra.mxu0 %v8141_v42  ;;  %v6400_v42 = vld [vmem:[#allocation11 + $0x3] ss:$0 sm:$0xff] }
0x11a3   : > { %8146 = vmatprep.subr.bf16.mxu0 %v8145_v46 }
0x11a5   : > { %7287 = vmatmul.mubr.f32.vlgmr.msra.gmra.mrb[34].mxu0 %v10594_v45 }
0x11a6   : > { %8148 = vmatpush3.bf16.msra.mxu0 %v8145_v46  ;;  %7321 = vmatprep.mubr.f32.mxu0 %v10584_v40 }
0x11a7   : > { %8150 = vmatprep.subr.bf16.mxu0 %v8149_v49 }
0x11aa   : > { %8152 = vmatpush3.bf16.msra.mxu0 %v8149_v49 }
0x11ab   : > { %8154 = vmatprep.subr.bf16.mxu0 %v8153_v52 }
0x11ae   : > { %8156 = vmatpush3.bf16.msra.mxu0 %v8153_v52 }
0x11af   : > { %8158 = vmatprep.subr.bf16.mxu0 %v8157_v55 }
0x11b2   : > { %8160 = vmatpush3.bf16.msra.mxu0 %v8157_v55 }
0x11b3   : > { %8162 = vmatprep.subr.bf16.mxu0 %v8161_v59 }
0x11b6   : > { %8164 = vmatpush3.bf16.msra.mxu0 %v8161_v59 }
0x11b7   : > { %8166 = vmatprep.subr.bf16.mxu0 %v8165_v62 }
0x11ba   : > { %8168 = vmatpush3.bf16.msra.mxu0 %v8165_v62 }
0x11bb   : > { %8170 = vmatprep.subr.bf16.mxu0 %v8169_v3 }
0x11be   : > { %8172 = vmatpush3.bf16.msra.mxu0 %v8169_v3 }
0x11bf   : > { %8174 = vmatprep.subr.bf16.mxu0 %v8173_v5 }
0x11c2   : > { %8176 = vmatpush3.bf16.msra.mxu0 %v8173_v5 }
0x11c3   : > { %8178 = vmatprep.subr.bf16.mxu0 %v8177_v8 }
0x11c5   : > { %7322 = vmatmul.mubr.f32.vlgmr.msra.gmra.mrb[36].mxu0 %v10594_v45 }
0x11c6   : > { %8180 = vmatpush3.bf16.msra.mxu0 %v8177_v8  ;;  %7356 = vmatprep.mubr.f32.mxu0 %v10584_v40 }
0x11c7   : > { %8182 = vmatprep.subr.bf16.mxu0 %v8181_v1 }
0x11ca   : > { %8184 = vmatpush3.bf16.msra.mxu0 %v8181_v1  ;;  %v4491_v1 = vld [vmem:[#allocation14 + $0xc8] sm:$0xff] }
0x11cb   : > { %8186 = vmatprep.subr.bf16.mxu0 %v8185_v14  ;;  %v8219_v12 = vpack.c.bf16 %v4491_v1, %v4490_v11  ;;  %v4765_v11 = vld [vmem:[#allocation20 + $0xa48] sm:$0xff]  ;;  %v4767_v1 = vld [vmem:[#allocation20 + $0xa58] sm:$0xff] }
0x11ce   : > { %8188 = vmatpush3.bf16.msra.mxu0 %v8185_v14 }
0x11cf   : > { %8190 = vmatprep.subr.bf16.mxu0 %v8189_v36 }
0x11d2   : > { %8192 = vmatpush3.bf16.msra.mxu0 %v8189_v36  ;;  %v4493_v36 = vld [vmem:[#allocation14 + $0xd8] sm:$0xff] }
0x11d3   : > { %8194 = vmatprep.subr.bf16.mxu0 %v8193_v30  ;;  %v8223_v22 = vpack.c.bf16 %v4493_v36, %v4492_v21  ;;  %v4769_v21 = vld [vmem:[#allocation20 + $0xa68] sm:$0xff]  ;;  %v4771_v36 = vld [vmem:[#allocation20 + $0xa78] sm:$0xff] }
0x11d6   : > { %8196 = vmatpush3.bf16.msra.mxu0 %v8193_v30 }
0x11d7   : > { %8198 = vmatprep.subr.bf16.mxu0 %v8197_v27 }
0x11da   : > { %8200 = vmatpush3.bf16.msra.mxu0 %v8197_v27  ;;  %v4495_v27 = vld [vmem:[#allocation14 + $0xe8] sm:$0xff] }
0x11db   : > { %8202 = vmatprep.subr.bf16.mxu0 %v8201_v29  ;;  %v8227_v2 = vpack.c.bf16 %v4495_v27, %v4494_v26  ;;  %v4773_v26 = vld [vmem:[#allocation20 + $0xa88] sm:$0xff]  ;;  %v4775_v27 = vld [vmem:[#allocation20 + $0xa98] sm:$0xff] }
0x11de   : > { %8204 = vmatpush3.bf16.msra.mxu0 %v8201_v29  ;;  %v4497_v29 = vld [vmem:[#allocation14 + $0xf8] sm:$0xff] }
0x11df   : > { %8206 = vmatprep.subr.bf16.mxu0 %v8205_v33  ;;  %v8231_v31 = vpack.c.bf16 %v4497_v29, %v4496_v28  ;;  %v4772_v28 = vld [vmem:[#allocation20 + $0xa80] sm:$0xff]  ;;  %v4774_v29 = vld [vmem:[#allocation20 + $0xa90] sm:$0xff] }
0x11e2   : > { %8208 = vmatpush3.bf16.msra.mxu0 %v8205_v33  ;;  %v3988_v33 = vld [vmem:[#allocation14 + $0x88] sm:$0xff] }
0x11e5   : > { %7357 = vmatmul.mubr.f32.vlgmr.msra.gmra.mrb[38].mxu0 %v10594_v45 }
0x1258   : > { %v10849_v25 = vpop.f32.mrb[32].mxu0 }
0x1259   : > { %v10851_v34 = vpop.f32.mrb[33].mxu0 }
0x1278   : > { %v7288_v38 = vpop.f32.mrb[34].mxu0 }
0x1279   : > { %v4086_v39 = vpop.f32.mrb[35].mxu0  ;;  %v4092_v49 = vadd.f32 %v7288_v38, %v6383_v37  ;;  %v3989_v38 = vld [vmem:[#allocation14 + $0x90] sm:$0xff] }
0x127a   : > { %v4087_v41 = vadd.f32 %v6383_v37, %v4086_v39  ;;  %v8235_v37 = vpack.c.bf16 %v3988_v33, %v3987_v32  ;;  %v3990_v39 = vld [vmem:[#allocation14 + $0x98] sm:$0xff]  ;;  %v4777_v32 = vld [vmem:[#allocation20 + $0xaa8] sm:$0xff] }
0x127b   : > { %v4779_v33 = vld [vmem:[#allocation20 + $0xab8] sm:$0xff] }
0x127c   : > { %7363 = vmatprep.mubr.msk.f32.mxu0 %vm1338_vm2, %v4087_v41 }
0x1298   : > { %v7323_v43 = vpop.f32.mrb[36].mxu0 }
0x1299   : > { %v4192_v44 = vadd.f32 %v7323_v43, %v6400_v42  ;;  %v4186_v46 = vpop.f32.mrb[37].mxu0  ;;  %v8239_v43 = vpack.c.bf16 %v3990_v39, %v3989_v38  ;;  %v4776_v38 = vld [vmem:[#allocation20 + $0xaa0] sm:$0xff]  ;;  %v4778_v39 = vld [vmem:[#allocation20 + $0xab0] sm:$0xff] }
0x129a   : > { %v4187_v47 = vadd.f32 %v6400_v42, %v4186_v46  ;;  %v3992_v46 = vld [vmem:[#allocation14 + $0xa8] sm:$0xff] }
0x129c   : > { %v8209_v48 = vpack.c.bf16 %v4192_v44, %v4187_v47  ;;  %v3991_v44 = vld [vmem:[#allocation14 + $0xa0] sm:$0xff] }
0x129d   : > { %v8243_v47 = vpack.c.bf16 %v3992_v46, %v3991_v44  ;;  %v4780_v46 = vld [vmem:[#allocation20 + $0xac0] sm:$0xff] }
0x129e   : > { %8211 = vmatprep.subr.msk.bf16.mxu0 %vm10281_vm3, %v8209_v48 }
0x129f   : > { %8214 = vmatpush3.bf16.xpose.msk.msra.mxu0 %vm10281_vm3, %v8209_v48  ;;  %v3993_v48 = vld [vmem:[#allocation14 + $0xb0] sm:$0xff] }
0x12a6   : > { %7364 = vmatmul.mubr.msk.f32.vlgmr.msra.gmra.mrb[40].mxu0 %vm1338_vm2, %v4092_v49  ;;  %v3994_v49 = vld [vmem:[#allocation14 + $0xb8] sm:$0xff] }
0x12b8   : > { %v7358_v51 = vpop.f32.mrb[38].mxu0 }
0x12b9   : > { %v4292_v52 = vadd.f32 %v7358_v51, %v6417_v50  ;;  %v4286_v53 = vpop.f32.mrb[39].mxu0  ;;  %v6428_v51 = vld [vmem:[#allocation15 + $0x1] ss:$0 sm:$0xff] }
0x12ba   : > { %v4287_v54 = vadd.f32 %v6417_v50, %v4286_v53  ;;  %v8247_v50 = vpack.c.bf16 %v3994_v49, %v3993_v48  ;;  %v4785_v49 = vld [vmem:[#allocation20 + $0xae8] sm:$0xff] }
0x12bc   : > { %v8215_v55 = vpack.c.bf16 %v4292_v52, %v4287_v54 }
0x12be   : > { %8216 = vmatprep.subr.bf16.mxu0 %v8215_v55 }
0x12bf   : > { %8218 = vmatpush3.bf16.msra.mxu0 %v8215_v55 }
0x12c0   : > { %8220 = vmatprep.subr.bf16.mxu0 %v8219_v12 }
0x1379   : > { %v7365_v56 = vpop.f32.mrb[40].mxu0 }
0x137a   : > { %v4383_v57 = vmul.f32 0.125, %v7365_v56  ;;  %v4373_v59 = vpop.f32.mrb[41].mxu0 }
0x137b   : > { %v4382_v60 = vmul.f32 0.125, %v4373_v59  ;;  %v4759_v59 = vld [vmem:[#allocation20 + $0xa18] sm:$0xff] }
0x137c   : > { %v4385_v61 = vadd.f32 %v4383_v57, %v10443_v19  ;;  %v4757_v57 = vld [vmem:[#allocation20 + $0xa08] sm:$0xff] }
0x137d   : > { %v4384_v58 = vadd.f32 %v4382_v60, %v10443_v19  ;;  %v8251_v60 = vpack.c.bf16 %v4759_v59, %v4757_v57 }
0x137e   : > { %v4389_v62 = vsel %vm1436_vm4, %v4385_v61, -inf }
0x137f   : > { %4390 = vmax.xlane.f32.xlu0 %v4389_v62  ;;  %v4386_v63 = vsel %vm1436_vm4, %v4384_v58, -inf  ;;  %8252 = vmatprep.subr.bf16.mxu1 %v8251_v60 }
0x1380   : > { %4387 = vmax.xlane.f32.xlu1 %v4386_v63 }
0x140c   : > { %v4391_v0 = vpop.xlane.xlu0 %4390 }
0x140d   : > { %v4393_v3 = vsub.f32 %v4385_v61, %v4391_v0  ;;  %v4388_v4 = vpop.xlane.xlu1 %4387 }
0x140e   : > { %v4392_v35 = vsub.f32 %v4384_v58, %v4388_v4  ;;  %v4758_v4 = vld [vmem:[#allocation20 + $0xa10] sm:$0xff] }
0x140f   : > { %v4396_v5 = vmul.f32 1.442695, %v4393_v3 }
0x1410   : > { %v4394_v6 = vmul.f32 1.442695, %v4392_v35 }
0x1411   : > { %8882 = vpow2.f32 %v4396_v5  ;;  %v4761_v5 = vld [vmem:[#allocation20 + $0xa28] sm:$0xff] }
0x1412   : > { %8884 = vpow2.f32 %v4394_v6  ;;  %v4763_v6 = vld [vmem:[#allocation20 + $0xa38] sm:$0xff] }
0x141b   : > { %v8883_v7 = vpop.eup %8882 }
0x141c   : > { %v8885_v8 = vpop.eup %8884  ;;  %v4401_v10 = vsel %vm1436_vm4, %v8883_v7, 0.0 }
0x141d   : > { %4402 = vadd.xlane.f32.xlu0 %v4401_v10  ;;  %v4398_v19 = vsel %vm1436_vm4, %v8885_v8, 0.0  ;;  %v4762_v10 = vld [vmem:[#allocation20 + $0xa30] sm:$0xff] }
0x141e   : > { %4399 = vadd.xlane.f32.xlu1 %v4398_v19 }
0x14aa   : > { %v4403_v13 = vpop.xlane.xlu0 %4402 }
0x14ab   : > { %8886 = vrcp.f32 %v4403_v13  ;;  %v4400_v14 = vpop.xlane.xlu1 %4399  ;;  %v4764_v13 = vld [vmem:[#allocation20 + $0xa40] sm:$0xff] }
0x14ac   : > { %8888 = vrcp.f32 %v4400_v14  ;;  %v4766_v14 = vld [vmem:[#allocation20 + $0xa50] sm:$0xff] }
0x14b5   : > { %v8887_v17 = vpop.eup %8886 }
0x14b6   : > { %v8889_v23 = vpop.eup %8888  ;;  %v4407_v30 = vmul.f32 %v8887_v17, %v8883_v7  ;;  %v8255_v7 = vpack.c.bf16 %v4763_v6, %v4761_v5  ;;  %v8261_v17 = vpack.c.bf16 %v4766_v14, %v4764_v13  ;;  %v4725_v14 = vld [vmem:[#allocation20 + $0x920] sm:$0xff] }
0x14b7   : > { %v4405_v9 = vmul.f32 %v8889_v23, %v8885_v8  ;;  %v4760_v8 = vld [vmem:[#allocation20 + $0xa20] sm:$0xff]  ;;  %v8263_v23 = vpack.c.bf16 %v4771_v36, %v4769_v21  ;;  %v4730_v36 = vld [vmem:[#allocation20 + $0x948] sm:$0xff] }
0x14b8   : > { %v8257_v19 = vpack.c.bf16 %v4762_v10, %v4760_v8 }
0x14b9   : > { %7370 = vmatprep.mubr.msk.f32.mxu0 %vm1436_vm4, %v4405_v9  ;;  %v4768_v9 = vld [vmem:[#allocation20 + $0xa60] sm:$0xff] }
0x14ba   : > { %7371 = vmatmul.mubr.msk.f32.vlgmr.msra.gmra.mrb[42].mxu0 %vm1436_vm4, %v4407_v30  ;;  %v4770_v30 = vld [vmem:[#allocation20 + $0xa70] sm:$0xff] }
0x14bb   : > { %8222 = vmatpush3.bf16.msra.mxu0 %v8219_v12  ;;  %v8259_v12 = vpack.c.bf16 %v4767_v1, %v4765_v11  ;;  %v4721_v11 = vld [vmem:[#allocation20 + $0x900] sm:$0xff]  ;;  %v4723_v1 = vld [vmem:[#allocation20 + $0x910] sm:$0xff] }
0x14bc   : > { %8224 = vmatprep.subr.bf16.mxu0 %v8223_v22  ;;  %v8285_v13 = vpack.c.bf16 %v4723_v1, %v4721_v11  ;;  %v4949_v11 = vld [vmem:[#allocation20 + $0xb20] sm:$0xff]  ;;  %v4951_v1 = vld [vmem:[#allocation20 + $0xb30] sm:$0xff] }
0x14bf   : > { %8226 = vmatpush3.bf16.msra.mxu0 %v8223_v22  ;;  %v8265_v22 = vpack.c.bf16 %v4770_v30, %v4768_v9  ;;  %v10893_v9 = vld [vmem:[#allocation2] sm:$0xff] }
0x14c0   : > { %8228 = vmatprep.subr.bf16.mxu0 %v8227_v2 }
0x14c3   : > { %8230 = vmatpush3.bf16.msra.mxu0 %v8227_v2  ;;  %v8267_v2 = vpack.c.bf16 %v4775_v27, %v4773_v26  ;;  %v4729_v26 = vld [vmem:[#allocation20 + $0x940] sm:$0xff]  ;;  %v4731_v27 = vld [vmem:[#allocation20 + $0x950] sm:$0xff] }
0x14c4   : > { %8232 = vmatprep.subr.bf16.mxu0 %v8231_v31 }
0x14c7   : > { %8234 = vmatpush3.bf16.msra.mxu0 %v8231_v31  ;;  %v8269_v31 = vpack.c.bf16 %v4774_v29, %v4772_v28  ;;  %v4734_v28 = vld [vmem:[#allocation20 + $0x968] sm:$0xff]  ;;  %v4736_v29 = vld [vmem:[#allocation20 + $0x978] sm:$0xff] }
0x14c8   : > { %8236 = vmatprep.subr.bf16.mxu0 %v8235_v37 }
0x158d   : > { %v7372_v41 = vpop.f32.mrb[42].mxu0 }
0x158e   : > { %v4480_v42 = vpop.f32.mrb[43].mxu0 }
0x158f   : > { %7389 = vmatprep.mubr.msk.f32.mxu0 %vm1338_vm2, %v4480_v42  ;;  %v4781_v42 = vld [vmem:[#allocation20 + $0xac8] sm:$0xff] }
0x1590   : > { %7390 = vmatmul.mubr.msk.f32.vlgmr.msra.gmra.mrb[44].mxu0 %vm1338_vm2, %v7372_v41  ;;  %v8273_v41 = vpack.c.bf16 %v4778_v39, %v4776_v38  ;;  %v4738_v38 = vld [vmem:[#allocation20 + $0x988] sm:$0xff]  ;;  %v4740_v39 = vld [vmem:[#allocation20 + $0x998] sm:$0xff] }
0x1591   : > { %8238 = vmatpush3.bf16.msra.mxu0 %v8235_v37  ;;  %7408 = vmatprep.mubr.msk.f32.mxu0 %vm1338_vm2, %v10851_v34  ;;  %v8271_v37 = vpack.c.bf16 %v4779_v33, %v4777_v32  ;;  %v8295_v32 = vpack.c.bf16 %v4736_v29, %v4734_v28  ;;  %v4733_v33 = vld [vmem:[#allocation20 + $0x960] sm:$0xff]  ;;  %v4962_v28 = vld [vmem:[#allocation20 + $0xb88] sm:$0xff]  ;;  %v4964_v29 = vld [vmem:[#allocation20 + $0xb98] sm:$0xff] }
0x1592   : > { %8240 = vmatprep.subr.bf16.mxu0 %v8239_v43 }
0x1595   : > { %8242 = vmatpush3.bf16.msra.mxu0 %v8239_v43  ;;  %v4783_v43 = vld [vmem:[#allocation20 + $0xad8] sm:$0xff] }
0x1596   : > { %8244 = vmatprep.subr.bf16.mxu0 %v8243_v47  ;;  %v8275_v44 = vpack.c.bf16 %v4783_v43, %v4781_v42  ;;  %v8299_v42 = vpack.c.bf16 %v4740_v39, %v4738_v38  ;;  %v4737_v43 = vld [vmem:[#allocation20 + $0x980] sm:$0xff]  ;;  %v4966_v38 = vld [vmem:[#allocation20 + $0xba8] sm:$0xff]  ;;  %v4968_v39 = vld [vmem:[#allocation20 + $0xbb8] sm:$0xff] }
0x1599   : > { %8246 = vmatpush3.bf16.msra.mxu0 %v8243_v47  ;;  %v4782_v47 = vld [vmem:[#allocation20 + $0xad0] sm:$0xff] }
0x159a   : > { %8248 = vmatprep.subr.bf16.mxu0 %v8247_v50  ;;  %v8277_v48 = vpack.c.bf16 %v4782_v47, %v4780_v46  ;;  %v4742_v46 = vld [vmem:[#allocation20 + $0x9a8] sm:$0xff]  ;;  %v4744_v47 = vld [vmem:[#allocation20 + $0x9b8] sm:$0xff] }
0x159d   : > { %8250 = vmatpush3.bf16.msra.mxu0 %v8247_v50  ;;  %v4787_v50 = vld [vmem:[#allocation20 + $0xaf8] sm:$0xff] }
0x15a0   : > { %7409 = vmatmul.mubr.msk.f32.vlgmr.msra.gmra.mrb[44].mxu0 %vm1338_vm2, %v10849_v25 }
0x1673   : > { %v7410_v52 = vpop.f32.mrb[44].mxu0 }
0x1674   : > { %v4669_v53 = vadd.f32 %v7410_v52, %v6428_v51  ;;  %v4651_v54 = vpop.f32.mrb[45].mxu0  ;;  %v8279_v52 = vpack.c.bf16 %v4787_v50, %v4785_v49  ;;  %v8303_v49 = vpack.c.bf16 %v4744_v47, %v4742_v46  ;;  %v4741_v50 = vld [vmem:[#allocation20 + $0x9a0] sm:$0xff]  ;;  %v4970_v46 = vld [vmem:[#allocation20 + $0xbc8] sm:$0xff]  ;;  %v4972_v47 = vld [vmem:[#allocation20 + $0xbd8] sm:$0xff] }
0x1675   : > { %v4668_v55 = vadd.f32 %v6428_v51, %v4651_v54  ;;  %v4784_v51 = vld [vmem:[#allocation20 + $0xae0] sm:$0xff]  ;;  %v4722_v54 = vld [vmem:[#allocation20 + $0x908] sm:$0xff] }
0x1676   : > { %v4671_v34 = vadd.f32 %v4669_v53, %v10594_v45  ;;  %v4756_v45 = vld [vmem:[#allocation20 + $0xa00] sm:$0xff]  ;;  %v4786_v53 = vld [vmem:[#allocation20 + $0xaf0] sm:$0xff] }
0x1677   : > { %v4670_v56 = vadd.f32 %v4668_v55, %v10584_v40  ;;  %v8253_v35 = vpack.c.bf16 %v4758_v4, %v4756_v45  ;;  %v4724_v55 = vld [vmem:[#allocation20 + $0x918] sm:$0xff] }
0x1678   : > { %4678 = vadd.xlane.f32.xlu0 %v4671_v34  ;;  %v6430_v4 = vld [vmem:[#allocation18 + $0x1] ss:$0 sm:$0xff] }
0x1679   : > { %4676 = vadd.xlane.f32.xlu1 %v4670_v56  ;;  %8254 = vmatpush1.bf16.msra.mxu1 %v8253_v35 }
0x167a   : > { %8256 = vmatprep.subr.bf16.mxu1 %v8255_v7 }
0x167d   : > { %8258 = vmatpush1.bf16.msra.mxu1 %v8257_v19 }
0x167e   : > { %8260 = vmatprep.subr.bf16.mxu1 %v8259_v12  ;;  %v4728_v12 = vld [vmem:[#allocation20 + $0x938] sm:$0xff] }
0x1681   : > { %8262 = vmatpush1.bf16.msra.mxu1 %v8261_v17  ;;  %v4727_v17 = vld [vmem:[#allocation20 + $0x930] sm:$0xff] }
0x1682   : > { %8264 = vmatprep.subr.bf16.mxu1 %v8263_v23  ;;  %v4732_v23 = vld [vmem:[#allocation20 + $0x958] sm:$0xff]  ;;  %v8289_v30 = vpack.c.bf16 %v4727_v17, %v4725_v14  ;;  %v4953_v17 = vld [vmem:[#allocation20 + $0xb40] sm:$0xff] }
0x1685   : > { %8266 = vmatpush1.bf16.msra.mxu1 %v8265_v22  ;;  %v8291_v22 = vpack.c.bf16 %v4732_v23, %v4730_v36  ;;  %v4958_v23 = vld [vmem:[#allocation20 + $0xb68] sm:$0xff] }
0x1686   : > { %8268 = vmatprep.subr.bf16.mxu1 %v8267_v2 }
0x1689   : > { %8270 = vmatpush1.bf16.msra.mxu1 %v8269_v31  ;;  %v8293_v31 = vpack.c.bf16 %v4731_v27, %v4729_v26  ;;  %v4957_v27 = vld [vmem:[#allocation20 + $0xb60] sm:$0xff] }
0x168a   : > { %8272 = vmatprep.subr.bf16.mxu1 %v8271_v37  ;;  %v4735_v37 = vld [vmem:[#allocation20 + $0x970] sm:$0xff] }
0x168d   : > { %8274 = vmatpush1.bf16.msra.mxu1 %v8273_v41  ;;  %v8297_v41 = vpack.c.bf16 %v4735_v37, %v4733_v33  ;;  %v4961_v33 = vld [vmem:[#allocation20 + $0xb80] sm:$0xff]  ;;  %v4963_v37 = vld [vmem:[#allocation20 + $0xb90] sm:$0xff] }
0x168e   : > { %8276 = vmatprep.subr.bf16.mxu1 %v8275_v44  ;;  %v4739_v44 = vld [vmem:[#allocation20 + $0x990] sm:$0xff] }
0x1691   : > { %8278 = vmatpush1.bf16.msra.mxu1 %v8277_v48  ;;  %v8301_v48 = vpack.c.bf16 %v4739_v44, %v4737_v43  ;;  %v4965_v43 = vld [vmem:[#allocation20 + $0xba0] sm:$0xff]  ;;  %v4967_v44 = vld [vmem:[#allocation20 + $0xbb0] sm:$0xff] }
0x1692   : > { %8280 = vmatprep.subr.bf16.mxu1 %v8279_v52  ;;  %v4746_v52 = vld [vmem:[#allocation20 + $0x9c8] sm:$0xff] }
0x1705   : > { %v4679_v61 = vpop.xlane.xlu0 %4678 }
0x1706   : > { %v4681_v58 = vmul.f32 0.0078125, %v4679_v61  ;;  %v4677_v62 = vpop.xlane.xlu1 %4676 }
0x1707   : > { %v4680_v63 = vmul.f32 0.0078125, %v4677_v62 }
0x1708   : > { %v10875_v25 = vsub.f32 %v4671_v34, %v4681_v58  ;;  %v8281_v34 = vpack.c.bf16 %v4786_v53, %v4784_v51  ;;  %v4743_v51 = vld [vmem:[#allocation20 + $0x9b0] sm:$0xff]  ;;  %v4748_v53 = vld [vmem:[#allocation20 + $0x9d8] sm:$0xff] }
0x1709   : > { %v10877_v0 = vsub.f32 %v4670_v56, %v4680_v63  ;;  %v8283_v56 = vpack.c.bf16 %v4724_v55, %v4722_v54  ;;  %v8305_v54 = vpack.c.bf16 %v4743_v51, %v4741_v50  ;;  %v8307_v55 = vpack.c.bf16 %v4748_v53, %v4746_v52  ;;  %v4969_v50 = vld [vmem:[#allocation20 + $0xbc0] sm:$0xff]  ;;  %v4971_v51 = vld [vmem:[#allocation20 + $0xbd0] sm:$0xff]  ;;  %v4974_v52 = vld [vmem:[#allocation20 + $0xbe8] sm:$0xff] }
0x170a   : > { %v4685_v3 = vmul.f32 %v10875_v25, %v10875_v25  ;;  %8282 = vmatpush1.bf16.msra.mxu1 %v8281_v34  ;;  %v4745_v34 = vld [vmem:[#allocation20 + $0x9c0] sm:$0xff]  ;;  %v4976_v53 = vld [vmem:[#allocation20 + $0xbf8] sm:$0xff] }
0x170b   : > { %v4684_v40 = vmul.f32 %v10877_v0, %v10877_v0  ;;  %8284 = vmatprep.subr.bf16.mxu1 %v8283_v56  ;;  %v4747_v56 = vld [vmem:[#allocation20 + $0x9d0] sm:$0xff] }
0x170c   : > { %4688 = vadd.xlane.f32.xlu0 %v4685_v3  ;;  %v6429_v3 = vld [vmem:[#allocation17 + $0x1] ss:$0 sm:$0xff] }
0x170d   : > { %4686 = vadd.xlane.f32.xlu1 %v4684_v40 }
0x1799   : > { %v4689_v57 = vpop.xlane.xlu0 %4688 }
0x179a   : > { %v4691_v59 = vmul.f32 0.0078125, %v4689_v57  ;;  %v4687_v60 = vpop.xlane.xlu1 %4686  ;;  %v4750_v57 = vld [vmem:[#allocation20 + $0x9e8] sm:$0xff] }
0x179b   : > { %v4690_v61 = vmul.f32 0.0078125, %v4687_v60  ;;  %v8309_v60 = vpack.c.bf16 %v4747_v56, %v4745_v34  ;;  %v4973_v34 = vld [vmem:[#allocation20 + $0xbe0] sm:$0xff]  ;;  %v4975_v56 = vld [vmem:[#allocation20 + $0xbf0] sm:$0xff] }
0x179c   : > { %v4693_v58 = vadd.f32 1e-05, %v4691_v59  ;;  %v4752_v59 = vld [vmem:[#allocation20 + $0x9f8] sm:$0xff] }
0x179d   : > { %v4692_v62 = vadd.f32 1e-05, %v4690_v61  ;;  %v8311_v61 = vpack.c.bf16 %v4752_v59, %v4750_v57  ;;  %v5062_v57 = vld [vmem:[#allocation20 + $0xc08] sm:$0xff]  ;;  %v5064_v59 = vld [vmem:[#allocation20 + $0xc18] sm:$0xff] }
0x179e   : > { %8890 = vrsqrt.f32 %v4693_v58  ;;  %v4749_v58 = vld [vmem:[#allocation20 + $0x9e0] sm:$0xff] }
0x179f   : > { %8892 = vrsqrt.f32 %v4692_v62  ;;  %v4751_v62 = vld [vmem:[#allocation20 + $0x9f0] sm:$0xff] }
0x17a8   : > { %v8891_v63 = vpop.eup %8890 }
0x17a9   : > { %v8893_v40 = vpop.eup %8892  ;;  %v4697_v45 = vmul.f32 %v8891_v63, %v10875_v25  ;;  %v4726_v25 = vld [vmem:[#allocation20 + $0x928] sm:$0xff] }
0x17aa   : > { %v4696_v35 = vmul.f32 %v8893_v40, %v10877_v0  ;;  %v8287_v0 = vpack.c.bf16 %v4728_v12, %v4726_v25  ;;  %v4946_v63 = vld [vmem:[#allocation20 + $0xb08] sm:$0xff]  ;;  %v8313_v40 = vpack.c.bf16 %v4751_v62, %v4749_v58  ;;  %v5061_v58 = vld [vmem:[#allocation20 + $0xc00] sm:$0xff]  ;;  %v5063_v62 = vld [vmem:[#allocation20 + $0xc10] sm:$0xff] }
0x17ab   : > { %v4705_v5 = vmul.f32 %v6429_v3, %v4697_v45  ;;  %v4954_v12 = vld [vmem:[#allocation20 + $0xb48] sm:$0xff] }
0x17ac   : > { %v4704_v6 = vmul.f32 %v6429_v3, %v4696_v35  ;;  %v4948_v3 = vld [vmem:[#allocation20 + $0xb18] sm:$0xff]  ;;  %v4947_v35 = vld [vmem:[#allocation20 + $0xb10] sm:$0xff] }
0x17ad   : > { %v4713_v7 = vadd.f32 %v6430_v4, %v4705_v5  ;;  %v8315_v45 = vpack.c.bf16 %v4948_v3, %v4946_v63  ;;  %v4950_v5 = vld [vmem:[#allocation20 + $0xb28] sm:$0xff]  ;;  %v5068_v3 = vld [vmem:[#allocation20 + $0xc38] sm:$0xff] }
0x17ae   : > { %v4712_v8 = vadd.f32 %v6430_v4, %v4704_v6  ;;  %v4945_v4 = vld [vmem:[#allocation20 + $0xb00] sm:$0xff]  ;;  %v4952_v6 = vld [vmem:[#allocation20 + $0xb38] sm:$0xff]  ;;  %v5066_v63 = vld [vmem:[#allocation20 + $0xc28] sm:$0xff] }
0x17af   : > { %v10886_v10 = vmul.f32 %v4713_v7, %v10497_v24  ;;  %v8317_v7 = vpack.c.bf16 %v4947_v35, %v4945_v4  ;;  %v5065_v4 = vld [vmem:[#allocation20 + $0xc20] sm:$0xff]  ;;  %v5067_v35 = vld [vmem:[#allocation20 + $0xc30] sm:$0xff] }
0x17b0   : > { %v10889_v19 = vmul.f32 %v4712_v8, %v10490_v16  ;;  %v8319_v8 = vpack.c.bf16 %v4952_v6, %v4950_v5  ;;  %v5070_v6 = vld [vmem:[#allocation20 + $0xc48] sm:$0xff] }
0x17b1   : > { %4717 = vst [vmem:[#allocation2 + $0x10] sm:$0xff] %v10886_v10 }
0x17b2   : > { %4716 = vst [vmem:[#allocation2 + $0x8] sm:$0xff] %v10889_v19 }
0x17b9   : > { %v4753_v21 = vld [vmem:[#allocation2 + $0x5] sm:$0xff]  ;;  %v4754_v2 = vld [vmem:[#allocation2 + $0xd] sm:$0xff] }
0x17ba   : > { %4853 = vmatmul.mubr.f32.vlgmr.msra.gmra.mrb[8].mxu1 %v4753_v21  ;;  %v4718_v25 = vld [vmem:[#allocation2 + $0x4] sm:$0xff]  ;;  %v4955_v21 = vld [vmem:[#allocation20 + $0xb50] sm:$0xff]  ;;  %v4719_v36 = vld [vmem:[#allocation2 + $0xc] sm:$0xff] }
0x17bb   : > { %8286 = vmatpush1.bf16.msra.mxu1 %v8285_v13  ;;  %4858 = vmatprep.mubr.f32.mxu1 %v10893_v9  ;;  %v4956_v13 = vld [vmem:[#allocation20 + $0xb58] sm:$0xff]  ;;  %v4942_v5 = vld [vmem:[#allocation2 + $0x6] sm:$0xff] }
0x17bc   : > { %8288 = vmatprep.subr.bf16.mxu1 %v8287_v0  ;;  %v8321_v0 = vpack.c.bf16 %v4951_v1, %v4949_v11  ;;  %v8323_v14 = vpack.c.bf16 %v4956_v13, %v4954_v12  ;;  %v5069_v1 = vld [vmem:[#allocation20 + $0xc40] sm:$0xff]  ;;  %v4943_v12 = vld [vmem:[#allocation2 + $0xe] sm:$0xff] }
0x17bd   : > { %v5074_v13 = vld [vmem:[#allocation20 + $0xc68] sm:$0xff] }
0x17be   : > { %4859 = vmatmul.mubr.f32.gmra.mrb[10].mxu1 %v4754_v2  ;;  %v4959_v2 = vld [vmem:[#allocation20 + $0xb70] sm:$0xff] }
0x17bf   : > { %8290 = vmatpush1.bf16.msra.mxu1 %v8289_v30  ;;  %4929 = vmatprep.mubr.f32.mxu1 %v10893_v9  ;;  %v4960_v30 = vld [vmem:[#allocation20 + $0xb78] sm:$0xff] }
0x17c0   : > { %8292 = vmatprep.subr.bf16.mxu1 %v8291_v22  ;;  %v8325_v22 = vpack.c.bf16 %v4955_v21, %v4953_v17  ;;  %v8327_v26 = vpack.c.bf16 %v4960_v30, %v4958_v23  ;;  %v5073_v21 = vld [vmem:[#allocation20 + $0xc60] sm:$0xff]  ;;  %v5078_v23 = vld [vmem:[#allocation20 + $0xc88] sm:$0xff]  ;;  %v5080_v30 = vld [vmem:[#allocation20 + $0xc98] sm:$0xff] }
0x17c3   : > { %8294 = vmatpush1.bf16.msra.mxu1 %v8293_v31  ;;  %v8329_v31 = vpack.c.bf16 %v4959_v2, %v4957_v27  ;;  %v5077_v27 = vld [vmem:[#allocation20 + $0xc80] sm:$0xff]  ;;  %v5079_v2 = vld [vmem:[#allocation20 + $0xc90] sm:$0xff] }
0x17c4   : > { %8296 = vmatprep.subr.bf16.mxu1 %v8295_v32  ;;  %v8331_v32 = vpack.c.bf16 %v4964_v29, %v4962_v28  ;;  %v5082_v28 = vld [vmem:[#allocation20 + $0xca8] sm:$0xff]  ;;  %v5084_v29 = vld [vmem:[#allocation20 + $0xcb8] sm:$0xff] }
0x17c7   : > { %8298 = vmatpush1.bf16.msra.mxu1 %v8297_v41  ;;  %v8333_v41 = vpack.c.bf16 %v4963_v37, %v4961_v33  ;;  %v5081_v33 = vld [vmem:[#allocation20 + $0xca0] sm:$0xff]  ;;  %v5083_v37 = vld [vmem:[#allocation20 + $0xcb0] sm:$0xff] }
0x17c8   : > { %8300 = vmatprep.subr.bf16.mxu1 %v8299_v42  ;;  %v8335_v42 = vpack.c.bf16 %v4968_v39, %v4966_v38  ;;  %v5086_v38 = vld [vmem:[#allocation20 + $0xcc8] sm:$0xff]  ;;  %v5088_v39 = vld [vmem:[#allocation20 + $0xcd8] sm:$0xff] }
0x17cb   : > { %8302 = vmatpush1.bf16.msra.mxu1 %v8301_v48  ;;  %v8337_v48 = vpack.c.bf16 %v4967_v44, %v4965_v43  ;;  %v5085_v43 = vld [vmem:[#allocation20 + $0xcc0] sm:$0xff]  ;;  %v5087_v44 = vld [vmem:[#allocation20 + $0xcd0] sm:$0xff] }
0x17cc   : > { %8304 = vmatprep.subr.bf16.mxu1 %v8303_v49  ;;  %v8339_v49 = vpack.c.bf16 %v4972_v47, %v4970_v46  ;;  %v5090_v46 = vld [vmem:[#allocation20 + $0xce8] sm:$0xff]  ;;  %v5092_v47 = vld [vmem:[#allocation20 + $0xcf8] sm:$0xff] }
0x17cf   : > { %8306 = vmatpush1.bf16.msra.mxu1 %v8305_v54  ;;  %v8341_v54 = vpack.c.bf16 %v4971_v51, %v4969_v50  ;;  %v5089_v50 = vld [vmem:[#allocation20 + $0xce0] sm:$0xff]  ;;  %v5091_v51 = vld [vmem:[#allocation20 + $0xcf0] sm:$0xff] }
0x17d0   : > { %8308 = vmatprep.subr.bf16.mxu1 %v8307_v55  ;;  %v8343_v55 = vpack.c.bf16 %v4976_v53, %v4974_v52  ;;  %v5178_v52 = vld [vmem:[#allocation20 + $0xd08] sm:$0xff]  ;;  %v5180_v53 = vld [vmem:[#allocation20 + $0xd18] sm:$0xff] }
0x17d3   : > { %8310 = vmatpush1.bf16.msra.mxu1 %v8309_v60  ;;  %v8345_v60 = vpack.c.bf16 %v4975_v56, %v4973_v34  ;;  %v5177_v34 = vld [vmem:[#allocation20 + $0xd00] sm:$0xff]  ;;  %v5179_v56 = vld [vmem:[#allocation20 + $0xd10] sm:$0xff] }
0x17d4   : > { %8312 = vmatprep.subr.bf16.mxu1 %v8311_v61  ;;  %v8347_v61 = vpack.c.bf16 %v5064_v59, %v5062_v57  ;;  %v5182_v57 = vld [vmem:[#allocation20 + $0xd28] sm:$0xff]  ;;  %v5184_v59 = vld [vmem:[#allocation20 + $0xd38] sm:$0xff] }
0x17d7   : > { %8314 = vmatpush1.bf16.msra.mxu1 %v8313_v40  ;;  %v8349_v40 = vpack.c.bf16 %v5063_v62, %v5061_v58  ;;  %v5181_v58 = vld [vmem:[#allocation20 + $0xd20] sm:$0xff]  ;;  %v5183_v62 = vld [vmem:[#allocation20 + $0xd30] sm:$0xff] }
0x17d8   : > { %8316 = vmatprep.subr.bf16.mxu1 %v8315_v45  ;;  %v8351_v45 = vpack.c.bf16 %v5068_v3, %v5066_v63  ;;  %v5058_v63 = vld [vmem:[#allocation2 + $0x7] sm:$0xff] }
0x17d9   : > { %v5186_v3 = vld [vmem:[#allocation20 + $0xd48] sm:$0xff] }
0x17da   : > { %4930 = vmatmul.mubr.f32.vlgmr.msra.gmra.mrb[8].mxu1 %v4718_v25  ;;  %v5071_v25 = vld [vmem:[#allocation20 + $0xc50] sm:$0xff] }
0x17db   : > { %8318 = vmatpush1.bf16.msra.mxu1 %v8317_v7  ;;  %4935 = vmatprep.mubr.f32.mxu1 %v10893_v9  ;;  %v5072_v7 = vld [vmem:[#allocation20 + $0xc58] sm:$0xff] }
0x17dc   : > { %8320 = vmatprep.subr.bf16.mxu1 %v8319_v8  ;;  %v8353_v8 = vpack.c.bf16 %v5067_v35, %v5065_v4  ;;  %v8355_v11 = vpack.c.bf16 %v5072_v7, %v5070_v6  ;;  %v5185_v35 = vld [vmem:[#allocation20 + $0xd40] sm:$0xff]  ;;  %v5059_v6 = vld [vmem:[#allocation2 + $0xf] sm:$0xff] }
0x17dd   : > { %v5190_v7 = vld [vmem:[#allocation20 + $0xd68] sm:$0xff] }
0x17de   : > { %4936 = vmatmul.mubr.f32.gmra.mrb[10].mxu1 %v4719_v36  ;;  %v5075_v36 = vld [vmem:[#allocation20 + $0xc70] sm:$0xff] }
0x17df   : > { %8322 = vmatpush1.bf16.msra.mxu1 %v8321_v0  ;;  %5041 = vmatprep.mubr.f32.mxu1 %v10893_v9  ;;  %v5076_v0 = vld [vmem:[#allocation20 + $0xc78] sm:$0xff] }
0x17e0   : > { %8324 = vmatprep.subr.bf16.mxu1 %v8323_v14  ;;  %v8357_v14 = vpack.c.bf16 %v5071_v25, %v5069_v1  ;;  %v8359_v17 = vpack.c.bf16 %v5076_v0, %v5074_v13  ;;  %v5189_v25 = vld [vmem:[#allocation20 + $0xd60] sm:$0xff]  ;;  %v5194_v13 = vld [vmem:[#allocation20 + $0xd88] sm:$0xff]  ;;  %v5196_v0 = vld [vmem:[#allocation20 + $0xd98] sm:$0xff] }
0x17e3   : > { %8326 = vmatpush1.bf16.msra.mxu1 %v8325_v22  ;;  %v8361_v22 = vpack.c.bf16 %v5075_v36, %v5073_v21  ;;  %v5193_v21 = vld [vmem:[#allocation20 + $0xd80] sm:$0xff]  ;;  %v5195_v36 = vld [vmem:[#allocation20 + $0xd90] sm:$0xff] }
0x17e4   : > { %8328 = vmatprep.subr.bf16.mxu1 %v8327_v26  ;;  %v8363_v26 = vpack.c.bf16 %v5080_v30, %v5078_v23  ;;  %v5198_v23 = vld [vmem:[#allocation20 + $0xda8] sm:$0xff]  ;;  %v5200_v30 = vld [vmem:[#allocation20 + $0xdb8] sm:$0xff] }
0x17e7   : > { %8330 = vmatpush1.bf16.msra.mxu1 %v8329_v31  ;;  %v8365_v31 = vpack.c.bf16 %v5079_v2, %v5077_v27  ;;  %v5197_v27 = vld [vmem:[#allocation20 + $0xda0] sm:$0xff]  ;;  %v5199_v2 = vld [vmem:[#allocation20 + $0xdb0] sm:$0xff] }
0x17e8   : > { %8332 = vmatprep.subr.bf16.mxu1 %v8331_v32  ;;  %v8367_v32 = vpack.c.bf16 %v5084_v29, %v5082_v28  ;;  %v5202_v28 = vld [vmem:[#allocation20 + $0xdc8] sm:$0xff]  ;;  %v5204_v29 = vld [vmem:[#allocation20 + $0xdd8] sm:$0xff] }
0x17eb   : > { %8334 = vmatpush1.bf16.msra.mxu1 %v8333_v41  ;;  %v8369_v41 = vpack.c.bf16 %v5083_v37, %v5081_v33  ;;  %v5201_v33 = vld [vmem:[#allocation20 + $0xdc0] sm:$0xff]  ;;  %v5203_v37 = vld [vmem:[#allocation20 + $0xdd0] sm:$0xff] }
0x17ec   : > { %8336 = vmatprep.subr.bf16.mxu1 %v8335_v42  ;;  %v8371_v42 = vpack.c.bf16 %v5088_v39, %v5086_v38  ;;  %v5206_v38 = vld [vmem:[#allocation20 + $0xde8] sm:$0xff]  ;;  %v5208_v39 = vld [vmem:[#allocation20 + $0xdf8] sm:$0xff] }
0x17ef   : > { %8338 = vmatpush1.bf16.msra.mxu1 %v8337_v48  ;;  %v8373_v48 = vpack.c.bf16 %v5087_v44, %v5085_v43  ;;  %v5205_v43 = vld [vmem:[#allocation20 + $0xde0] sm:$0xff]  ;;  %v5207_v44 = vld [vmem:[#allocation20 + $0xdf0] sm:$0xff] }
0x17f0   : > { %8340 = vmatprep.subr.bf16.mxu1 %v8339_v49  ;;  %v8375_v49 = vpack.c.bf16 %v5092_v47, %v5090_v46  ;;  %v5294_v46 = vld [vmem:[#allocation20 + $0xe08] sm:$0xff]  ;;  %v5296_v47 = vld [vmem:[#allocation20 + $0xe18] sm:$0xff] }
0x17f3   : > { %8342 = vmatpush1.bf16.msra.mxu1 %v8341_v54  ;;  %v8377_v54 = vpack.c.bf16 %v5091_v51, %v5089_v50  ;;  %v5293_v50 = vld [vmem:[#allocation20 + $0xe00] sm:$0xff]  ;;  %v5295_v51 = vld [vmem:[#allocation20 + $0xe10] sm:$0xff] }
0x17f4   : > { %8344 = vmatprep.subr.bf16.mxu1 %v8343_v55  ;;  %v8379_v55 = vpack.c.bf16 %v5180_v53, %v5178_v52  ;;  %v5298_v52 = vld [vmem:[#allocation20 + $0xe28] sm:$0xff]  ;;  %v5300_v53 = vld [vmem:[#allocation20 + $0xe38] sm:$0xff] }
0x17f7   : > { %8346 = vmatpush1.bf16.msra.mxu1 %v8345_v60  ;;  %v8381_v60 = vpack.c.bf16 %v5179_v56, %v5177_v34  ;;  %v5297_v34 = vld [vmem:[#allocation20 + $0xe20] sm:$0xff]  ;;  %v5299_v56 = vld [vmem:[#allocation20 + $0xe30] sm:$0xff] }
0x17f8   : > { %8348 = vmatprep.subr.bf16.mxu1 %v8347_v61  ;;  %v8383_v61 = vpack.c.bf16 %v5184_v59, %v5182_v57  ;;  %v5302_v57 = vld [vmem:[#allocation20 + $0xe48] sm:$0xff]  ;;  %v5304_v59 = vld [vmem:[#allocation20 + $0xe58] sm:$0xff] }
0x17fa   : > { %5042 = vmatmul.mubr.f32.vlgmr.msra.gmra.mrb[8].mxu1 %v4942_v5  ;;  %v5187_v5 = vld [vmem:[#allocation20 + $0xd50] sm:$0xff] }
0x17fb   : > { %8350 = vmatpush1.bf16.msra.mxu1 %v8349_v40  ;;  %5047 = vmatprep.mubr.f32.mxu1 %v10893_v9  ;;  %v5188_v40 = vld [vmem:[#allocation20 + $0xd58] sm:$0xff] }
0x17fc   : > { %8352 = vmatprep.subr.bf16.mxu1 %v8351_v45  ;;  %v8385_v45 = vpack.c.bf16 %v5183_v62, %v5181_v58  ;;  %v8387_v4 = vpack.c.bf16 %v5188_v40, %v5186_v3  ;;  %v5301_v58 = vld [vmem:[#allocation20 + $0xe40] sm:$0xff]  ;;  %v5303_v62 = vld [vmem:[#allocation20 + $0xe50] sm:$0xff]  ;;  %v5308_v3 = vld [vmem:[#allocation20 + $0xe78] sm:$0xff] }
0x17fd   : > { %v5305_v40 = vld [vmem:[#allocation20 + $0xe60] sm:$0xff] }
0x17fe   : > { %5048 = vmatmul.mubr.f32.gmra.mrb[10].mxu1 %v4943_v12  ;;  %v5191_v12 = vld [vmem:[#allocation20 + $0xd70] sm:$0xff] }
0x17ff   : > { %8354 = vmatpush1.bf16.msra.mxu1 %v8353_v8  ;;  %5157 = vmatprep.mubr.f32.mxu1 %v10893_v9  ;;  %v5192_v8 = vld [vmem:[#allocation20 + $0xd78] sm:$0xff] }
0x1800   : > { %8356 = vmatprep.subr.bf16.mxu1 %v8355_v11  ;;  %v8389_v11 = vpack.c.bf16 %v5187_v5, %v5185_v35  ;;  %v8391_v1 = vpack.c.bf16 %v5192_v8, %v5190_v7  ;;  %v5793_v35 = vld [vmem:[#allocation23 + $0x188] sm:$0xff]  ;;  %v5776_v5 = vld [vmem:[#allocation23 + $0x100] sm:$0xff]  ;;  %v5794_v8 = vld [vmem:[#allocation23 + $0x190] sm:$0xff] }
0x1801   : > { %v5777_v7 = vld [vmem:[#allocation23 + $0x108] sm:$0xff] }
0x1803   : > { %8358 = vmatpush1.bf16.msra.mxu1 %v8357_v14  ;;  %v8393_v14 = vpack.c.bf16 %v5191_v12, %v5189_v25  ;;  %v8541_v25 = vpack.c.bf16 %v5777_v7, %v5776_v5  ;;  %v5323_v5 = vld [vmem:[#allocation20 + $0xef0] sm:$0xff]  ;;  %v5410_v7 = vld [vmem:[#allocation20 + $0xf08] sm:$0xff] }
0x1804   : > { %8360 = vmatprep.subr.bf16.mxu1 %v8359_v17  ;;  %v8395_v17 = vpack.c.bf16 %v5196_v0, %v5194_v13  ;;  %v5778_v13 = vld [vmem:[#allocation23 + $0x110] sm:$0xff]  ;;  %v5779_v0 = vld [vmem:[#allocation23 + $0x118] sm:$0xff] }
0x1807   : > { %8362 = vmatpush1.bf16.msra.mxu1 %v8361_v22  ;;  %v8397_v22 = vpack.c.bf16 %v5195_v36, %v5193_v21  ;;  %v5797_v21 = vld [vmem:[#allocation23 + $0x1a8] sm:$0xff]  ;;  %v8545_v36 = vpack.c.bf16 %v5779_v0, %v5778_v13  ;;  %v5409_v13 = vld [vmem:[#allocation20 + $0xf00] sm:$0xff] }
0x1808   : > { %8364 = vmatprep.subr.bf16.mxu1 %v8363_v26  ;;  %v8399_v26 = vpack.c.bf16 %v5200_v30, %v5198_v23  ;;  %v5309_v30 = vld [vmem:[#allocation20 + $0xe80] sm:$0xff]  ;;  %v5411_v0 = vld [vmem:[#allocation20 + $0xf10] sm:$0xff] }
0x180b   : > { %8366 = vmatpush1.bf16.msra.mxu1 %v8365_v31  ;;  %v8401_v31 = vpack.c.bf16 %v5199_v2, %v5197_v27  ;;  %v5781_v27 = vld [vmem:[#allocation23 + $0x128] sm:$0xff] }
0x180c   : > { %8368 = vmatprep.subr.bf16.mxu1 %v8367_v32  ;;  %v8403_v32 = vpack.c.bf16 %v5204_v29, %v5202_v28  ;;  %v5311_v28 = vld [vmem:[#allocation20 + $0xe90] sm:$0xff] }
0x180d   : > { %v5798_v29 = vld [vmem:[#allocation23 + $0x1b0] sm:$0xff] }
0x180f   : > { %8370 = vmatpush1.bf16.msra.mxu1 %v8369_v41  ;;  %v8405_v41 = vpack.c.bf16 %v5203_v37, %v5201_v33  ;;  %v5316_v33 = vld [vmem:[#allocation20 + $0xeb8] sm:$0xff] }
0x1810   : > { %8372 = vmatprep.subr.bf16.mxu1 %v8371_v42  ;;  %v8407_v42 = vpack.c.bf16 %v5208_v39, %v5206_v38  ;;  %v8429_v38 = vpack.c.bf16 %v5311_v28, %v5309_v30  ;;  %v5313_v39 = vld [vmem:[#allocation20 + $0xea0] sm:$0xff] }
0x1811   : > { %v5290_v30 = vld [vmem:[#allocation2 + $0x9] sm:$0xff] }
0x1812   : > { %v5417_v28 = vld [vmem:[#allocation20 + $0xf40] sm:$0xff] }
0x1813   : > { %8374 = vmatpush1.bf16.msra.mxu1 %v8373_v48  ;;  %v8409_v48 = vpack.c.bf16 %v5207_v44, %v5205_v43  ;;  %v5783_v43 = vld [vmem:[#allocation23 + $0x138] sm:$0xff] }
0x1814   : > { %8376 = vmatprep.subr.bf16.mxu1 %v8375_v49  ;;  %v8411_v49 = vpack.c.bf16 %v5296_v47, %v5294_v46  ;;  %v5315_v46 = vld [vmem:[#allocation20 + $0xeb0] sm:$0xff]  ;;  %v5800_v47 = vld [vmem:[#allocation23 + $0x1c0] sm:$0xff] }
0x1817   : > { %8378 = vmatpush1.bf16.msra.mxu1 %v8377_v54  ;;  %v8413_v54 = vpack.c.bf16 %v5295_v51, %v5293_v50  ;;  %v5320_v50 = vld [vmem:[#allocation20 + $0xed8] sm:$0xff] }
0x1818   : > { %8380 = vmatprep.subr.bf16.mxu1 %v8379_v55  ;;  %v8415_v55 = vpack.c.bf16 %v5300_v53, %v5298_v52  ;;  %v8433_v52 = vpack.c.bf16 %v5315_v46, %v5313_v39  ;;  %v5317_v53 = vld [vmem:[#allocation20 + $0xec0] sm:$0xff] }
0x1819   : > { %v5421_v39 = vld [vmem:[#allocation20 + $0xf60] sm:$0xff] }
0x181a   : > { %5158 = vmatmul.mubr.f32.vlgmr.msra.gmra.mrb[8].mxu1 %v5058_v63  ;;  %v5306_v63 = vld [vmem:[#allocation20 + $0xe68] sm:$0xff] }
0x181b   : > { %8382 = vmatpush1.bf16.msra.mxu1 %v8381_v60  ;;  %5163 = vmatprep.mubr.f32.mxu1 %v10893_v9  ;;  %v8417_v60 = vpack.c.bf16 %v5299_v56, %v5297_v34  ;;  %v5785_v34 = vld [vmem:[#allocation23 + $0x148] sm:$0xff] }
0x181c   : > { %8384 = vmatprep.subr.bf16.mxu1 %v8383_v61  ;;  %v8419_v61 = vpack.c.bf16 %v5304_v59, %v5302_v57  ;;  %v5319_v57 = vld [vmem:[#allocation20 + $0xed0] sm:$0xff] }
0x181d   : > { %v5802_v59 = vld [vmem:[#allocation23 + $0x1d0] sm:$0xff] }
0x181e   : > { %5164 = vmatmul.mubr.f32.gmra.mrb[10].mxu1 %v5059_v6  ;;  %v8421_v6 = vpack.c.bf16 %v5303_v62, %v5301_v58  ;;  %v5324_v58 = vld [vmem:[#allocation20 + $0xef8] sm:$0xff] }
0x181f   : > { %8386 = vmatpush1.bf16.msra.mxu1 %v8385_v45  ;;  %5273 = vmatprep.mubr.f32.mxu1 %v10893_v9  ;;  %v5307_v45 = vld [vmem:[#allocation20 + $0xe70] sm:$0xff] }
0x1820   : > { %8388 = vmatprep.subr.bf16.mxu1 %v8387_v4  ;;  %v5792_v4 = vld [vmem:[#allocation23 + $0x180] sm:$0xff]  ;;  %v8425_v23 = vpack.c.bf16 %v5307_v45, %v5305_v40  ;;  %v5786_v45 = vld [vmem:[#allocation23 + $0x150] sm:$0xff] }
0x1823   : > { %8390 = vmatpush1.bf16.msra.mxu1 %v8389_v11  ;;  %v5795_v11 = vld [vmem:[#allocation23 + $0x198] sm:$0xff] }
0x1824   : > { %8392 = vmatprep.subr.bf16.mxu1 %v8391_v1  ;;  %v8423_v1 = vpack.c.bf16 %v5308_v3, %v5306_v63  ;;  %v8543_v12 = vpack.c.bf16 %v5795_v11, %v5794_v8  ;;  %v8437_v63 = vpack.c.bf16 %v5319_v57, %v5317_v53  ;;  %v5321_v3 = vld [vmem:[#allocation20 + $0xee0] sm:$0xff]  ;;  %v5412_v8 = vld [vmem:[#allocation20 + $0xf18] sm:$0xff] }
0x1825   : > { %v5429_v53 = vld [vmem:[#allocation20 + $0xfa0] sm:$0xff] }
0x1827   : > { %8394 = vmatpush1.bf16.msra.mxu1 %v8393_v14  ;;  %v5310_v14 = vld [vmem:[#allocation20 + $0xe88] sm:$0xff] }
0x1828   : > { %8396 = vmatprep.subr.bf16.mxu1 %v8395_v17  ;;  %v5312_v17 = vld [vmem:[#allocation20 + $0xe98] sm:$0xff] }
0x1829   : > { %v8427_v2 = vpack.c.bf16 %v5312_v17, %v5310_v14  ;;  %v5416_v14 = vld [vmem:[#allocation20 + $0xf38] sm:$0xff]  ;;  %v8445_v17 = vpack.c.bf16 %v5411_v0, %v5409_v13  ;;  %v5406_v13 = vld [vmem:[#allocation2 + $0xa] sm:$0xff] }
0x182a   : > { %v5534_v0 = vld [vmem:[#allocation20 + $0x1048] sm:$0xff] }
0x182b   : > { %8398 = vmatpush1.bf16.msra.mxu1 %v8397_v22 }
0x182c   : > { %8400 = vmatprep.subr.bf16.mxu1 %v8399_v26  ;;  %v5780_v26 = vld [vmem:[#allocation23 + $0x120] sm:$0xff] }
0x182d   : > { %v8549_v37 = vpack.c.bf16 %v5781_v27, %v5780_v26  ;;  %v5420_v26 = vld [vmem:[#allocation20 + $0xf58] sm:$0xff] }
0x182f   : > { %8402 = vmatpush1.bf16.msra.mxu1 %v8401_v31  ;;  %v5799_v31 = vld [vmem:[#allocation23 + $0x1b8] sm:$0xff] }
0x1830   : > { %8404 = vmatprep.subr.bf16.mxu1 %v8403_v32  ;;  %v5314_v32 = vld [vmem:[#allocation20 + $0xea8] sm:$0xff] }
0x1831   : > { %v8431_v44 = vpack.c.bf16 %v5316_v33, %v5314_v32  ;;  %v5422_v32 = vld [vmem:[#allocation20 + $0xf68] sm:$0xff]  ;;  %v5424_v33 = vld [vmem:[#allocation20 + $0xf78] sm:$0xff] }
0x1833   : > { %8406 = vmatpush1.bf16.msra.mxu1 %v8405_v41  ;;  %v8551_v41 = vpack.c.bf16 %v5799_v31, %v5798_v29  ;;  %v5419_v29 = vld [vmem:[#allocation20 + $0xf50] sm:$0xff] }
0x1834   : > { %8408 = vmatprep.subr.bf16.mxu1 %v8407_v42  ;;  %v5782_v42 = vld [vmem:[#allocation23 + $0x130] sm:$0xff] }
0x1835   : > { %v8553_v51 = vpack.c.bf16 %v5783_v43, %v5782_v42  ;;  %v5291_v31 = vld [vmem:[#allocation2 + $0x11] sm:$0xff]  ;;  %v5428_v43 = vld [vmem:[#allocation20 + $0xf98] sm:$0xff] }
0x1836   : > { %v5426_v42 = vld [vmem:[#allocation20 + $0xf88] sm:$0xff] }
0x1837   : > { %8410 = vmatpush1.bf16.msra.mxu1 %v8409_v48  ;;  %v5801_v48 = vld [vmem:[#allocation23 + $0x1c8] sm:$0xff]  ;;  %v8459_v46 = vpack.c.bf16 %v5428_v43, %v5426_v42 }
0x1838   : > { %8412 = vmatprep.subr.bf16.mxu1 %v8411_v49  ;;  %v5318_v49 = vld [vmem:[#allocation20 + $0xec8] sm:$0xff] }
0x1839   : > { %v8435_v56 = vpack.c.bf16 %v5320_v50, %v5318_v49  ;;  %v5430_v49 = vld [vmem:[#allocation20 + $0xfa8] sm:$0xff]  ;;  %v5432_v50 = vld [vmem:[#allocation20 + $0xfb8] sm:$0xff] }
0x183a   : > { %5274 = vmatmul.mubr.f32.vlgmr.msra.gmra.mrb[8].mxu1 %v10889_v19  ;;  %v8539_v19 = vpack.c.bf16 %v5793_v35, %v5792_v4  ;;  %v5787_v4 = vld [vmem:[#allocation23 + $0x158] sm:$0xff] }
0x183b   : > { %8414 = vmatpush1.bf16.msra.mxu1 %v8413_v54  ;;  %5279 = vmatprep.mubr.f32.mxu1 %v10893_v9  ;;  %v8555_v54 = vpack.c.bf16 %v5801_v48, %v5800_v47  ;;  %v8561_v11 = vpack.c.bf16 %v5787_v4, %v5786_v45  ;;  %v5425_v47 = vld [vmem:[#allocation20 + $0xf80] sm:$0xff]  ;;  %v5427_v48 = vld [vmem:[#allocation20 + $0xf90] sm:$0xff]  ;;  %v5526_v45 = vld [vmem:[#allocation20 + $0x1008] sm:$0xff] }
0x183c   : > { %8416 = vmatprep.subr.bf16.mxu1 %v8415_v55  ;;  %8540 = vmatprep.subr.bf16.mxu0 %v8539_v19  ;;  %v5784_v55 = vld [vmem:[#allocation23 + $0x140] sm:$0xff]  ;;  %v5805_v19 = vld [vmem:[#allocation23 + $0x1e8] sm:$0xff]  ;;  %v5528_v4 = vld [vmem:[#allocation20 + $0x1018] sm:$0xff] }
0x183d   : > { %8542 = vmatpush3.bf16.msra.mxu0 %v8541_v25  ;;  %v8557_v62 = vpack.c.bf16 %v5785_v34, %v5784_v55  ;;  %v5434_v55 = vld [vmem:[#allocation20 + $0xfc8] sm:$0xff]  ;;  %v5436_v34 = vld [vmem:[#allocation20 + $0xfd8] sm:$0xff] }
0x183e   : > { %5280 = vmatmul.mubr.f32.gmra.mrb[10].mxu1 %v10886_v10  ;;  %v5796_v10 = vld [vmem:[#allocation23 + $0x1a0] sm:$0xff]  ;;  %8544 = vmatprep.subr.bf16.mxu0 %v8543_v12  ;;  %v8443_v12 = vpack.c.bf16 %v5412_v8, %v5410_v7  ;;  %v8467_v57 = vpack.c.bf16 %v5436_v34, %v5434_v55  ;;  %v5532_v8 = vld [vmem:[#allocation20 + $0x1038] sm:$0xff] }
0x183f   : > { %8418 = vmatpush1.bf16.msra.mxu1 %v8417_v60  ;;  %5389 = vmatprep.mubr.f32.mxu1 %v10893_v9  ;;  %v8547_v22 = vpack.c.bf16 %v5797_v21, %v5796_v10  ;;  %v5803_v60 = vld [vmem:[#allocation23 + $0x1d8] sm:$0xff]  ;;  %v5414_v10 = vld [vmem:[#allocation20 + $0xf28] sm:$0xff] }
0x1840   : > { %8420 = vmatprep.subr.bf16.mxu1 %v8419_v61  ;;  %v5322_v61 = vld [vmem:[#allocation20 + $0xee8] sm:$0xff]  ;;  %v8559_v40 = vpack.c.bf16 %v5803_v60, %v5802_v59  ;;  %v8447_v21 = vpack.c.bf16 %v5416_v14, %v5414_v10  ;;  %v5433_v59 = vld [vmem:[#allocation20 + $0xfc0] sm:$0xff]  ;;  %v5435_v60 = vld [vmem:[#allocation20 + $0xfd0] sm:$0xff] }
0x1841   : > { %8546 = vmatpush3.bf16.msra.mxu0 %v8545_v36  ;;  %v8439_v35 = vpack.c.bf16 %v5324_v58, %v5322_v61  ;;  %v5413_v36 = vld [vmem:[#allocation20 + $0xf20] sm:$0xff]  ;;  %v5438_v61 = vld [vmem:[#allocation20 + $0xfe8] sm:$0xff]  ;;  %v5440_v58 = vld [vmem:[#allocation20 + $0xff8] sm:$0xff] }
0x1842   : > { %8548 = vmatprep.subr.bf16.mxu0 %v8547_v22  ;;  %v5418_v22 = vld [vmem:[#allocation20 + $0xf48] sm:$0xff]  ;;  %v5536_v10 = vld [vmem:[#allocation20 + $0x1058] sm:$0xff]  ;;  %v5553_v34 = vld [vmem:[#allocation20 + $0x10e0] sm:$0xff] }
0x1843   : > { %8422 = vmatpush1.bf16.msra.mxu1 %v8421_v6  ;;  %v5804_v6 = vld [vmem:[#allocation23 + $0x1e0] sm:$0xff] }
0x1844   : > { %8424 = vmatprep.subr.bf16.mxu1 %v8423_v1  ;;  %v8441_v1 = vpack.c.bf16 %v5323_v5, %v5321_v3  ;;  %v8563_v25 = vpack.c.bf16 %v5805_v19, %v5804_v6  ;;  %v5437_v3 = vld [vmem:[#allocation20 + $0xfe0] sm:$0xff]  ;;  %v8475_v5 = vpack.c.bf16 %v5528_v4, %v5526_v45  ;;  %v5527_v19 = vld [vmem:[#allocation20 + $0x1010] sm:$0xff]  ;;  %v5530_v7 = vld [vmem:[#allocation20 + $0x1028] sm:$0xff] }
0x1845   : > { %8550 = vmatpush3.bf16.msra.mxu0 %v8549_v37  ;;  %v8453_v37 = vpack.c.bf16 %v5419_v29, %v5417_v28  ;;  %v5525_v6 = vld [vmem:[#allocation20 + $0x1000] sm:$0xff]  ;;  %v5539_v28 = vld [vmem:[#allocation20 + $0x1070] sm:$0xff]  ;;  %v5542_v29 = vld [vmem:[#allocation20 + $0x1088] sm:$0xff] }
0x1846   : > { %8552 = vmatprep.subr.bf16.mxu0 %v8551_v41  ;;  %v5423_v41 = vld [vmem:[#allocation20 + $0xf70] sm:$0xff]  ;;  %v5645_v4 = vld [vmem:[#allocation20 + $0x1120] sm:$0xff] }
0x1847   : > { %8426 = vmatpush1.bf16.msra.mxu1 %v8425_v23  ;;  %v5415_v23 = vld [vmem:[#allocation20 + $0xf30] sm:$0xff] }
0x1848   : > { %8428 = vmatprep.subr.bf16.mxu1 %v8427_v2  ;;  %v8449_v27 = vpack.c.bf16 %v5415_v23, %v5413_v36  ;;  %v8451_v2 = vpack.c.bf16 %v5420_v26, %v5418_v22  ;;  %v5535_v36 = vld [vmem:[#allocation20 + $0x1050] sm:$0xff]  ;;  %v5540_v22 = vld [vmem:[#allocation20 + $0x1078] sm:$0xff] }
0x1849   : > { %8554 = vmatpush3.bf16.msra.mxu0 %v8553_v51  ;;  %v8461_v51 = vpack.c.bf16 %v5427_v48, %v5425_v47  ;;  %v5407_v23 = vld [vmem:[#allocation2 + $0x12] sm:$0xff]  ;;  %v5552_v47 = vld [vmem:[#allocation20 + $0x10d8] sm:$0xff] }
0x184a   : > { %8556 = vmatprep.subr.bf16.mxu0 %v8555_v54  ;;  %v5431_v54 = vld [vmem:[#allocation20 + $0xfb0] sm:$0xff] }
0x184b   : > { %8430 = vmatpush1.bf16.msra.mxu1 %v8429_v38  ;;  %v8455_v38 = vpack.c.bf16 %v5424_v33, %v5422_v32 }
0x184c   : > { %8432 = vmatprep.subr.bf16.mxu1 %v8431_v44  ;;  %v8457_v44 = vpack.c.bf16 %v5423_v41, %v5421_v39  ;;  %v5546_v39 = vld [vmem:[#allocation20 + $0x10a8] sm:$0xff]  ;;  %v5548_v41 = vld [vmem:[#allocation20 + $0x10b8] sm:$0xff] }
0x184d   : > { %8558 = vmatpush3.bf16.msra.mxu0 %v8557_v62  ;;  %v8469_v62 = vpack.c.bf16 %v5435_v60, %v5433_v59  ;;  %v8495_v43 = vpack.c.bf16 %v5548_v41, %v5546_v39  ;;  %v5644_v59 = vld [vmem:[#allocation20 + $0x1118] sm:$0xff] }
0x184e   : > { %8560 = vmatprep.subr.bf16.mxu0 %v8559_v40  ;;  %v5439_v40 = vld [vmem:[#allocation20 + $0xff0] sm:$0xff] }
0x184f   : > { %8434 = vmatpush1.bf16.msra.mxu1 %v8433_v52  ;;  %v8463_v52 = vpack.c.bf16 %v5432_v50, %v5430_v49  ;;  %v5549_v50 = vld [vmem:[#allocation20 + $0x10c0] sm:$0xff] }
0x1850   : > { %8436 = vmatprep.subr.bf16.mxu1 %v8435_v56  ;;  %v8465_v56 = vpack.c.bf16 %v5431_v54, %v5429_v53  ;;  %v5556_v53 = vld [vmem:[#allocation20 + $0x10f8] sm:$0xff] }
0x1851   : > { %8562 = vmatpush3.bf16.msra.mxu0 %v8561_v11  ;;  %v8477_v11 = vpack.c.bf16 %v5527_v19, %v5525_v6  ;;  %v5650_v6 = vld [vmem:[#allocation20 + $0x1148] sm:$0xff]  ;;  %v5652_v19 = vld [vmem:[#allocation20 + $0x1158] sm:$0xff] }
0x1852   : > { %8564 = vmatprep.subr.bf16.mxu0 %v8563_v25  ;;  %v5529_v25 = vld [vmem:[#allocation20 + $0x1020] sm:$0xff] }
0x1853   : > { %8438 = vmatpush1.bf16.msra.mxu1 %v8437_v63  ;;  %v8471_v63 = vpack.c.bf16 %v5440_v58, %v5438_v61  ;;  %v5641_v58 = vld [vmem:[#allocation20 + $0x1100] sm:$0xff] }
0x1854   : > { %8440 = vmatprep.subr.bf16.mxu1 %v8439_v35  ;;  %v8473_v35 = vpack.c.bf16 %v5439_v40, %v5437_v3  ;;  %v5648_v3 = vld [vmem:[#allocation20 + $0x1138] sm:$0xff] }
0x1857   : > { %8442 = vmatpush1.bf16.msra.mxu1 %v8441_v1  ;;  %v8479_v1 = vpack.c.bf16 %v5532_v8, %v5530_v7  ;;  %v8903_v7 = vld [vmem:[#allocation2] sm:$0xff] }
0x1858   : > { %8444 = vmatprep.subr.bf16.mxu1 %v8443_v12  ;;  %v5531_v12 = vld [vmem:[#allocation20 + $0x1030] sm:$0xff] }
0x1859   : > { %v8481_v14 = vpack.c.bf16 %v5531_v12, %v5529_v25  ;;  %v5651_v25 = vld [vmem:[#allocation20 + $0x1150] sm:$0xff] }
0x185a   : > { %5390 = vmatmul.mubr.f32.vlgmr.msra.gmra.mrb[8].mxu1 %v5290_v30  ;;  %v5538_v30 = vld [vmem:[#allocation20 + $0x1068] sm:$0xff] }
0x185b   : > { %8446 = vmatpush1.bf16.msra.mxu1 %v8445_v17  ;;  %5395 = vmatprep.mubr.f32.mxu1 %v10893_v9  ;;  %v8483_v17 = vpack.c.bf16 %v5536_v10, %v5534_v0  ;;  %v5523_v12 = vld [vmem:[#allocation2 + $0x13] sm:$0xff]  ;;  %v5656_v0 = vld [vmem:[#allocation20 + $0x1178] sm:$0xff] }
0x185c   : > { %8448 = vmatprep.subr.bf16.mxu1 %v8447_v21  ;;  %v5533_v21 = vld [vmem:[#allocation20 + $0x1040] sm:$0xff] }
0x185d   : > { %v8485_v26 = vpack.c.bf16 %v5535_v36, %v5533_v21  ;;  %v5655_v21 = vld [vmem:[#allocation20 + $0x1170] sm:$0xff]  ;;  %v5658_v36 = vld [vmem:[#allocation20 + $0x1188] sm:$0xff] }
0x185e   : > { %5396 = vmatmul.mubr.f32.gmra.mrb[10].mxu1 %v5291_v31  ;;  %v5544_v31 = vld [vmem:[#allocation20 + $0x1098] sm:$0xff] }
0x185f   : > { %8450 = vmatpush1.bf16.msra.mxu1 %v8449_v27  ;;  %5505 = vmatprep.mubr.f32.mxu1 %v10893_v9  ;;  %v8487_v27 = vpack.c.bf16 %v5540_v22, %v5538_v30  ;;  %v8491_v33 = vpack.c.bf16 %v5544_v31, %v5542_v29 }
0x1860   : > { %8452 = vmatprep.subr.bf16.mxu1 %v8451_v2  ;;  %v5537_v2 = vld [vmem:[#allocation20 + $0x1060] sm:$0xff] }
0x1861   : > { %v8489_v32 = vpack.c.bf16 %v5539_v28, %v5537_v2  ;;  %v5662_v2 = vld [vmem:[#allocation20 + $0x11a8] sm:$0xff]  ;;  %v5664_v28 = vld [vmem:[#allocation20 + $0x11b8] sm:$0xff] }
0x1862   : > { %v8527_v31 = vpack.c.bf16 %v5664_v28, %v5662_v2 }
0x1863   : > { %8454 = vmatpush1.bf16.msra.mxu1 %v8453_v37  ;;  %v5541_v37 = vld [vmem:[#allocation20 + $0x1080] sm:$0xff] }
0x1864   : > { %8456 = vmatprep.subr.bf16.mxu1 %v8455_v38  ;;  %v5543_v38 = vld [vmem:[#allocation20 + $0x1090] sm:$0xff] }
0x1865   : > { %v8493_v42 = vpack.c.bf16 %v5543_v38, %v5541_v37  ;;  %v5666_v37 = vld [vmem:[#allocation20 + $0x11c8] sm:$0xff]  ;;  %v5668_v38 = vld [vmem:[#allocation20 + $0x11d8] sm:$0xff] }
0x1866   : > { %v8531_v41 = vpack.c.bf16 %v5668_v38, %v5666_v37 }
0x1867   : > { %8458 = vmatpush1.bf16.msra.mxu1 %v8457_v44  ;;  %v5545_v44 = vld [vmem:[#allocation20 + $0x10a0] sm:$0xff] }
0x1868   : > { %8460 = vmatprep.subr.bf16.mxu1 %v8459_v46  ;;  %v5550_v46 = vld [vmem:[#allocation20 + $0x10c8] sm:$0xff] }
0x1869   : > { %v8499_v49 = vpack.c.bf16 %v5552_v47, %v5550_v46 }
0x186b   : > { %8462 = vmatpush1.bf16.msra.mxu1 %v8461_v51  ;;  %v5551_v51 = vld [vmem:[#allocation20 + $0x10d0] sm:$0xff] }
0x186c   : > { %8464 = vmatprep.subr.bf16.mxu1 %v8463_v52  ;;  %v5554_v52 = vld [vmem:[#allocation20 + $0x10e8] sm:$0xff]  ;;  %v8501_v54 = vpack.c.bf16 %v5551_v51, %v5549_v50 }
0x186d   : > { %v8503_v55 = vpack.c.bf16 %v5556_v53, %v5554_v52  ;;  %v8904_v51 = vld [vmem:[#allocation2 + $0xc] sm:$0xff]  ;;  %v5639_v52 = vld [vmem:[#allocation2 + $0x14] sm:$0xff] }
0x186e   : > { %v5788_v53 = vld [vmem:[#allocation23 + $0x160] sm:$0xff] }
0x186f   : > { %8466 = vmatpush1.bf16.msra.mxu1 %v8465_v56  ;;  %v5555_v56 = vld [vmem:[#allocation20 + $0x10f0] sm:$0xff] }
0x1870   : > { %8468 = vmatprep.subr.bf16.mxu1 %v8467_v57  ;;  %v5642_v57 = vld [vmem:[#allocation20 + $0x1108] sm:$0xff]  ;;  %v8505_v60 = vpack.c.bf16 %v5555_v56, %v5553_v34  ;;  %v5806_v34 = vld [vmem:[#allocation23 + $0x1f0] sm:$0xff]  ;;  %v5807_v56 = vld [vmem:[#allocation23 + $0x1f8] sm:$0xff] }
0x1871   : > { %v8507_v61 = vpack.c.bf16 %v5644_v59, %v5642_v57  ;;  %v8567_v57 = vpack.c.bf16 %v5807_v56, %v5806_v34  ;;  %v5790_v59 = vld [vmem:[#allocation23 + $0x170] sm:$0xff] }
0x1873   : > { %8470 = vmatpush1.bf16.msra.mxu1 %v8469_v62  ;;  %v5643_v62 = vld [vmem:[#allocation20 + $0x1110] sm:$0xff] }
0x1874   : > { %8472 = vmatprep.subr.bf16.mxu1 %v8471_v63  ;;  %v5646_v63 = vld [vmem:[#allocation20 + $0x1128] sm:$0xff]  ;;  %v8509_v40 = vpack.c.bf16 %v5643_v62, %v5641_v58  ;;  %v5755_v58 = vld [vmem:[#allocation21 + $0x2] sm:$0x3] }
0x1875   : > { %v8511_v45 = vpack.c.bf16 %v5648_v3, %v5646_v63  ;;  %v5760_v62 = vrot.slane %v5755_v58, %v10440_v18  ;;  %v5764_v63 = vrot.slane %v5755_v58, %v3322_v20 }
0x1877   : > { %8474 = vmatpush1.bf16.msra.mxu1 %v8473_v35  ;;  %v5647_v35 = vld [vmem:[#allocation20 + $0x1130] sm:$0xff] }
0x1878   : > { %8476 = vmatprep.subr.bf16.mxu1 %v8475_v5  ;;  %v5522_v5 = vld [vmem:[#allocation2 + $0xb] sm:$0xff]  ;;  %v8513_v8 = vpack.c.bf16 %v5647_v35, %v5645_v4 }
0x187a   : > { %5506 = vmatmul.mubr.f32.vlgmr.msra.gmra.mrb[8].mxu1 %v5406_v13  ;;  %v5654_v13 = vld [vmem:[#allocation20 + $0x1168] sm:$0xff] }
0x187b   : > { %8478 = vmatpush1.bf16.msra.mxu1 %v8477_v11  ;;  %5511 = vmatprep.mubr.f32.mxu1 %v10893_v9  ;;  %v8515_v11 = vpack.c.bf16 %v5652_v19, %v5650_v6 }
0x187c   : > { %8480 = vmatprep.subr.bf16.mxu1 %v8479_v1  ;;  %v5649_v1 = vld [vmem:[#allocation20 + $0x1140] sm:$0xff] }
0x187d   : > { %v8517_v10 = vpack.c.bf16 %v5651_v25, %v5649_v1  ;;  %v6431_v25 = vld [vmem:[#allocation24 + $0x1] ss:$0 sm:$0xff] }
0x187e   : > { %5512 = vmatmul.mubr.f32.gmra.mrb[10].mxu1 %v5407_v23  ;;  %v5660_v23 = vld [vmem:[#allocation20 + $0x1198] sm:$0xff] }
0x187f   : > { %8482 = vmatpush1.bf16.msra.mxu1 %v8481_v14  ;;  %5621 = vmatprep.mubr.f32.mxu1 %v10893_v9  ;;  %v5547_v9 = vld [vmem:[#allocation20 + $0x10b0] sm:$0xff]  ;;  %v8519_v14 = vpack.c.bf16 %v5656_v0, %v5654_v13  ;;  %v8523_v22 = vpack.c.bf16 %v5660_v23, %v5658_v36 }
0x1880   : > { %8484 = vmatprep.subr.bf16.mxu1 %v8483_v17  ;;  %v8497_v48 = vpack.c.bf16 %v5547_v9, %v5545_v44  ;;  %v5653_v17 = vld [vmem:[#allocation20 + $0x1160] sm:$0xff]  ;;  %v5670_v44 = vld [vmem:[#allocation20 + $0x11e8] sm:$0xff]  ;;  %v5672_v9 = vld [vmem:[#allocation20 + $0x11f8] sm:$0xff] }
0x1881   : > { %v8521_v30 = vpack.c.bf16 %v5655_v21, %v5653_v17  ;;  %v8535_v47 = vpack.c.bf16 %v5672_v9, %v5670_v44  ;;  %v8906_v36 = vld [vmem:[#allocation2 + $0x10] sm:$0xff]  ;;  %v6433_v9 = vld [vmem:[#allocation27 + $0x1] ss:$0 sm:$0xff] }
0x1883   : > { %8486 = vmatpush1.bf16.msra.mxu1 %v8485_v26  ;;  %v5657_v26 = vld [vmem:[#allocation20 + $0x1180] sm:$0xff] }
0x1884   : > { %8488 = vmatprep.subr.bf16.mxu1 %v8487_v27  ;;  %v5659_v27 = vld [vmem:[#allocation20 + $0x1190] sm:$0xff] }
0x1885   : > { %v8525_v29 = vpack.c.bf16 %v5659_v27, %v5657_v26 }
0x1887   : > { %8490 = vmatpush1.bf16.msra.mxu1 %v8489_v32  ;;  %v5661_v32 = vld [vmem:[#allocation20 + $0x11a0] sm:$0xff] }
0x1888   : > { %8492 = vmatprep.subr.bf16.mxu1 %v8491_v33  ;;  %v5663_v33 = vld [vmem:[#allocation20 + $0x11b0] sm:$0xff] }
0x1889   : > { %v8529_v39 = vpack.c.bf16 %v5663_v33, %v5661_v32 }
0x188b   : > { %8494 = vmatpush1.bf16.msra.mxu1 %v8493_v42  ;;  %v5665_v42 = vld [vmem:[#allocation20 + $0x11c0] sm:$0xff] }
0x188c   : > { %8496 = vmatprep.subr.bf16.mxu1 %v8495_v43  ;;  %v5667_v43 = vld [vmem:[#allocation20 + $0x11d0] sm:$0xff] }
0x188d   : > { %v8533_v46 = vpack.c.bf16 %v5667_v43, %v5665_v42  ;;  %v6432_v43 = vld [vmem:[#allocation26 + $0x1] ss:$0 sm:$0xff] }
0x188f   : > { %8498 = vmatpush1.bf16.msra.mxu1 %v8497_v48  ;;  %v5669_v48 = vld [vmem:[#allocation20 + $0x11e0] sm:$0xff] }
0x1890   : > { %8500 = vmatprep.subr.bf16.mxu1 %v8499_v49  ;;  %v5671_v49 = vld [vmem:[#allocation20 + $0x11f0] sm:$0xff] }
0x1891   : > { %v8537_v50 = vpack.c.bf16 %v5671_v49, %v5669_v48 }
0x1893   : > { %8502 = vmatpush1.bf16.msra.mxu1 %v8501_v54  ;;  %v5789_v54 = vld [vmem:[#allocation23 + $0x168] sm:$0xff] }
0x1894   : > { %8504 = vmatprep.subr.bf16.mxu1 %v8503_v55  ;;  %v8565_v55 = vpack.c.bf16 %v5789_v54, %v5788_v53 }
0x1896   : > { %8566 = vmatpush3.bf16.msra.mxu0 %v8565_v55 }
0x1897   : > { %8506 = vmatpush1.bf16.msra.mxu1 %v8505_v60  ;;  %8568 = vmatprep.subr.bf16.mxu0 %v8567_v57  ;;  %v5791_v60 = vld [vmem:[#allocation23 + $0x178] sm:$0xff] }
0x1898   : > { %8508 = vmatprep.subr.bf16.mxu1 %v8507_v61  ;;  %v8569_v61 = vpack.c.bf16 %v5791_v60, %v5790_v59 }
0x189a   : > { %5622 = vmatmul.mubr.f32.vlgmr.msra.gmra.mrb[8].mxu1 %v5522_v5  ;;  %8570 = vmatpush3.bf16.msra.mxu0 %v8569_v61 }
0x189b   : > { %8510 = vmatpush1.bf16.msra.mxu1 %v8509_v40  ;;  %5627 = vmatprep.mubr.f32.mxu1 %v8903_v7 }
0x189c   : > { %8512 = vmatprep.subr.bf16.mxu1 %v8511_v45 }
0x189e   : > { %5628 = vmatmul.mubr.f32.gmra.mrb[10].mxu1 %v5523_v12 }
0x189f   : > { %8514 = vmatpush1.bf16.msra.mxu1 %v8513_v8  ;;  %5737 = vmatprep.mubr.f32.mxu1 %v8903_v7 }
0x18a0   : > { %8516 = vmatprep.subr.bf16.mxu1 %v8515_v11 }
0x18a3   : > { %8518 = vmatpush1.bf16.msra.mxu1 %v8517_v10 }
0x18a4   : > { %8520 = vmatprep.subr.bf16.mxu1 %v8519_v14  ;;  %v8905_v14 = vld [vmem:[#allocation2 + $0x8] sm:$0xff] }
0x18a7   : > { %8522 = vmatpush1.bf16.msra.mxu1 %v8521_v30 }
0x18a8   : > { %8524 = vmatprep.subr.bf16.mxu1 %v8523_v22 }
0x18ab   : > { %8526 = vmatpush1.bf16.msra.mxu1 %v8525_v29 }
0x18ac   : > { %8528 = vmatprep.subr.bf16.mxu1 %v8527_v31 }
0x18af   : > { %8530 = vmatpush1.bf16.msra.mxu1 %v8529_v39 }
0x18b0   : > { %8532 = vmatprep.subr.bf16.mxu1 %v8531_v41 }
0x18b3   : > { %8534 = vmatpush1.bf16.msra.mxu1 %v8533_v46 }
0x18b4   : > { %8536 = vmatprep.subr.bf16.mxu1 %v8535_v47 }
0x18b7   : > { %8538 = vmatpush1.bf16.msra.mxu1 %v8537_v50 }
0x18ba   : > { %5738 = vmatmul.mubr.f32.vlgmr.msra.gmra.mrb[8].mxu1 %v8904_v51 }
0x18bb   : > { %5743 = vmatprep.mubr.f32.mxu1 %v8903_v7 }
0x18be   : > { %5744 = vmatmul.mubr.f32.gmra.mrb[10].mxu1 %v5639_v52 }
0x198d   : > { %v5739_v3 = vpop.f32.mrb[8].mxu1 }
0x198e   : > { %v5767_v40 = vadd.f32 %v5760_v62, %v5739_v3  ;;  %v5741_v45 = vpop.f32.mrb[9].mxu1 }
0x198f   : > { %v5768_v4 = vadd.f32 %v5764_v63, %v5741_v45 }
0x1990   : > { %v5771_v6 = vmax.f32 %v5767_v40, 0.0 }
0x1991   : > { %v5772_v35 = vmax.f32 %v5768_v4, 0.0  ;;  %v5745_v5 = vpop.f32.mrb[10].mxu1 }
0x1992   : > { %v5769_v19 = vadd.f32 %v5760_v62, %v5745_v5  ;;  %v5747_v7 = vpop.f32.mrb[11].mxu1 }
0x1993   : > { %v5770_v8 = vadd.f32 %v5764_v63, %v5747_v7  ;;  %5880 = vmatprep.mubr.f32.mxu0 %v5772_v35 }
0x1994   : > { %5881 = vmatmul.mubr.f32.vlgmr.msra.gmra.mrb[46].mxu0 %v5771_v6  ;;  %v5773_v1 = vmax.f32 %v5769_v19, 0.0 }
0x1995   : > { %v5774_v11 = vmax.f32 %v5770_v8, 0.0 }
0x1997   : > { %5885 = vmatprep.mubr.f32.mxu0 %v5774_v11 }
0x1998   : > { %5886 = vmatmul.mubr.f32.gmra.mrb[48].mxu0 %v5773_v1 }
0x1a67   : > { %v6818_v18 = vpop.f32.mrb[46].mxu0 }
0x1a68   : > { %v6819_v15 = vpop.f32.mrb[47].mxu0 }
0x1a69   : > { %v6820_v20 = vadd.f32 %v6819_v15, %v6818_v18 }
0x1a6b   : > { %v5883_v12 = vadd.f32 %v6820_v20, %v6431_v25  ;;  %v6821_v13 = vpop.f32.mrb[48].mxu0 }
0x1a6c   : > { %v6822_v0 = vpop.f32.mrb[49].mxu0 }
0x1a6d   : > { %v6823_v10 = vadd.f32 %v6822_v0, %v6821_v13  ;;  %v5891_v17 = vadd.f32 %v8905_v14, %v5883_v12 }
0x1a6f   : > { %v5888_v21 = vadd.f32 %v6823_v10, %v6431_v25  ;;  %5897 = vadd.xlane.f32.xlu1 %v5891_v17 }
0x1a71   : > { %v5892_v23 = vadd.f32 %v8906_v36, %v5888_v21 }
0x1a73   : > { %5899 = vadd.xlane.f32.xlu0 %v5892_v23 }
0x1afc   : > { %v5898_v30 = vpop.xlane.xlu1 %5897 }
0x1afd   : > { %v5901_v22 = vmul.f32 0.0078125, %v5898_v30 }
0x1aff   : > { %v5903_v26 = vsub.f32 %v5891_v17, %v5901_v22 }
0x1b00   : > { %v5900_v27 = vpop.xlane.xlu0 %5899 }
0x1b01   : > { %v5902_v2 = vmul.f32 0.0078125, %v5900_v27  ;;  %v5905_v28 = vmul.f32 %v5903_v26, %v5903_v26 }
0x1b03   : > { %v5904_v29 = vsub.f32 %v5892_v23, %v5902_v2  ;;  %5907 = vadd.xlane.f32.xlu1 %v5905_v28 }
0x1b05   : > { %v5906_v31 = vmul.f32 %v5904_v29, %v5904_v29 }
0x1b07   : > { %5909 = vadd.xlane.f32.xlu0 %v5906_v31 }
0x1b90   : > { %v5908_v32 = vpop.xlane.xlu1 %5907 }
0x1b91   : > { %v5911_v33 = vmul.f32 0.0078125, %v5908_v32 }
0x1b93   : > { %v5913_v37 = vadd.f32 1e-05, %v5911_v33 }
0x1b94   : > { %v5910_v38 = vpop.xlane.xlu0 %5909 }
0x1b95   : > { %8894 = vrsqrt.f32 %v5913_v37  ;;  %v5912_v39 = vmul.f32 0.0078125, %v5910_v38 }
0x1b97   : > { %v5914_v41 = vadd.f32 1e-05, %v5912_v39 }
0x1b99   : > { %8896 = vrsqrt.f32 %v5914_v41 }
0x1b9f   : > { %v8895_v42 = vpop.eup %8894 }
0x1ba0   : > { %v5917_v44 = vmul.f32 %v8895_v42, %v5903_v26 }
0x1ba2   : > { %v5925_v46 = vmul.f32 %v6432_v43, %v5917_v44 }
0x1ba3   : > { %v8897_v47 = vpop.eup %8896 }
0x1ba4   : > { %v5933_v48 = vadd.f32 %v6433_v9, %v5925_v46  ;;  %v5918_v49 = vmul.f32 %v8897_v47, %v5904_v29 }
0x1ba6   : > { %v5935_v50 = vmul.f32 %v5933_v48, %v10490_v16  ;;  %v5926_v51 = vmul.f32 %v6432_v43, %v5918_v49 }
0x1ba8   : > { %v5934_v52 = vadd.f32 %v6433_v9, %v5926_v51  ;;  %5937 = vst [vmem:[%s916_s23] sm:$0xff] %v5935_v50 }
0x1baa   : > { %v5936_v53 = vmul.f32 %v5934_v52, %v10497_v24 }
0x1bac   : > { %5938 = vst [vmem:[%s916_s23 + $0x8] sm:$0xff] %v5936_v53 }
0x1bad   : > { %9370 = shalt.err (!%p9367_p11)
}
0x1bae   : > { %s9371_s26 = scalar_lea.hbm %s10920_s28, 256  ;;  %s9375_s24 = scalar_lea.hbm %s11087_s9, 512 }
0x1baf   : > { %p9372_p12 = scmp.ne.s32.totalorder %s10920_s28, %s9371_s26  ;;  %p9376_p7 = scmp.lt.u32.totalorder %s10920_s28, %s11087_s9 }
0x1bb0   : > { %p9377_p9 = scmp.lt.u32.totalorder %s9375_s24, %s9371_s26  ;;  %p9379_p8 = scmp.lt.u32.totalorder %s9371_s26, %s10920_s28 }
0x1bb1   : > { %p9373_p13 = pnand %p9372_p12, %p11088_p0 }
0x1bb2   : > { %p9378_p4 = por %p9377_p9, %p9376_p7 }
0x1bb3   : > { %p9374_p3 = pneg %p9373_p13 }
0x1bb4   : > { %p9380_p2 = por %p9379_p8, %p9378_p4 }
0x1bb6   : > { %p9381_p6 = pnand %p9380_p2, %p9374_p3 }
0x1bb8   : > { %9384 = shalt.err (!%p9381_p6)
}
0x1bb9   : > { %s9484_s25 = smov 128   ;;  %s9485_s30 = smov 8  }
0x1bba   : > { %s11089_s4 = scalar_lea.sflag [#allocation5], %s10067_s29 }
0x1bbb   : > { %8701 = dma.vmem_to_hbm [thread:$0]  (%p11088_p0), %s10922_s10, 256, %s10920_s28, %s11089_s4, %s9484_s25, %s9484_s25, %s9485_s30  }
0x1bbc PF: > { %s11090_s23 = sld [smem:[#allocation40_spill]]  ;;  %p11091_p5 = scmp.ne.s32.totalorder %s11054_s1, 0 }
0x1bbd   : > { %p11092_p10 = scmp.ge.s32.totalorder %s9455_s27, 2 }
0x1bbf   : > { %p8754_p1 = pnand %p11092_p10, %p11091_p5 }
0x1bc2   : > { %s5968_s2 = sand.u32 1, %s11090_s23  }
0x1bc3   : > { %s5969_s26 = scalar_lea.sflag [#allocation5], %s5968_s2 }
0x1bc4   : > { %9438 = dma.done.wait (!%p8754_p1), %s5969_s26, 256  }
0x1bc5   : > { %9440 = vsyncadd (!%p8754_p1), %s5969_s26, 4294967040  ;;  %s11093_s2 = sld [smem:[#allocation41_spill]]  ;;  %s11094_s25 = sld [smem:[#allocation42_spill]] }
0x1bc6   : > { %p42_p11 = scmp.ge.s32.totalorder %s9991_s0, 4   ;;  %s11095_s26 = smov %s10002_s8 }
0x1bc7   : > { %s11096_s27 = smov %s9991_s0 }
0x1bc8   :  { %44 = sbr.rel (!%p42_p11) target bundleno = 26 (0x1a), region = 261 }
0x1bcf   :  { %5974 = vsyncpa [#allocation4], 1 }
0x1bd0   :  { %5976 = vsyncpa [#allocation4 + $0x1], 1 }
0x1bd1   :  { %5977 = vsyncpa [#allocation7], 1 }
0x1bd2   :  { %5978 = vsyncpa [#allocation10], 1 }
0x1bd3   :  { %5979 = vsyncpa [#allocation13], 1 }
0x1bd4   :  { %5980 = vsyncpa [#allocation16], 1 }
0x1bd5   :  { %5981 = vsyncpa [#allocation19], 1 }
0x1bd6   :  { %5982 = vsyncpa [#allocation22], 1 }
0x1bd7   :  { %5983 = vsyncpa [#allocation25], 1 }
0x1bd8   :  { %5984 = vsyncpa [#allocation28], 1 }
0x1bd9   :  { %5985 = vsyncpa [#allocation5], 1 }
0x1bda   :  { %5987 = vsyncpa [#allocation5 + $0x1], 1 }

</bundles_post_ra>
